<compile_context>
chip_gen: v6e
topology: v6e:2x2x1
jax: 0.10.0
libtpu: 0.0.40
codegen_flags: <defaults>
</compile_context>

<pallas_src>
import functools
import math

import jax
import jax.numpy as jnp
from jax import lax
from jax.experimental import pallas as pl
from jax.experimental.pallas import tpu as pltpu

_VMEM_LIMIT = 32 * 1024 * 1024  # conservative: fits v7x (64 MiB/TC) with headroom


def _pick_tile(dim, candidates):
    """Largest candidate that divides `dim`; falls back to the full dim."""
    for c in candidates:
        if c <= dim and dim % c == 0:
            return c
    return dim


def _round_up(x, m):
    return ((x + m - 1) // m) * m


def _pick_v_tile(vp, wk, bb, r, budget_bytes=16 * 1024 * 1024):
    """Largest V tile dividing padded vocab that keeps the per-step VMEM
    working set (double-buffered rho & bows streams + logits/p/loglik
    intermediates) under a small budget."""
    for c in (4096, 2048, 1024, 512, 256, 128):
        if c <= vp and vp % c == 0:
            work = 4 * c * (2 * r + 3 * bb + 2 * wk)
            if work <= budget_bytes:
                return c
    return 128  # vp is always a multiple of 128


# ----------------------------------------------------------------------------
# Kernel 1: theta encoder
#   grid = (B tiles [parallel], contraction tiles over padded V+K [arbitrary])
#   h1 accumulated in VMEM scratch; ReLU-MLP + fused mu/logsigma heads in the
#   finalize step -> single (block_b, 2K) output slab.
# ----------------------------------------------------------------------------
def _theta_encoder_kernel(x_ref, w1_ref, b1_ref, w2_ref, b2_ref,
                          wh_ref, bh_ref, out_ref, acc_ref):
    c = pl.program_id(1)

    @pl.when(c == 0)
    def _():
        acc_ref[...] = jnp.zeros_like(acc_ref)

    acc_ref[...] += jnp.dot(x_ref[...], w1_ref[...],
                            preferred_element_type=jnp.float32)

    @pl.when(c == pl.num_programs(1) - 1)
    def _():
        h1 = jnp.maximum(acc_ref[...] + b1_ref[...], 0.0)       # theta_act = ReLU
        h2 = jnp.maximum(
            jnp.dot(h1, w2_ref[...], preferred_element_type=jnp.float32)
            + b2_ref[...], 0.0)
        out_ref[...] = (jnp.dot(h2, wh_ref[...],
                                preferred_element_type=jnp.float32)
                        + bh_ref[...])


def theta_encoder(inp, w1, b1, w2, b2, w_heads, b_heads):
    B, C = inp.shape
    H = w1.shape[1]
    K2 = w_heads.shape[1]

    # pad the lane (V+K) axis to a multiple of 128 -> lane-dense blocks
    cpad = _round_up(C, 128)
    if cpad != C:
        inp = jnp.concatenate([inp, jnp.zeros((B, cpad - C), inp.dtype)], axis=1)
        w1 = jnp.concatenate([w1, jnp.zeros((cpad - C, H), w1.dtype)], axis=0)

    block_b = _pick_tile(B, (512, 256, 128, 64, 32, 16, 8))
    block_c = _pick_tile(cpad, (1024, 512, 384, 256, 128))
    grid = (B // block_b, cpad // block_c)

    flops = 2 * B * (cpad * H + H * H + H * K2)
    bytes_acc = 4 * (B * cpad + cpad * H + H * H + H * K2 + B * K2 + 2 * H + K2)

    return pl.pallas_call(
        _theta_encoder_kernel,
        out_shape=jax.ShapeDtypeStruct((B, K2), jnp.float32),
        grid_spec=pltpu.PrefetchScalarGridSpec(
            num_scalar_prefetch=0,
            grid=grid,
            in_specs=[
                pl.BlockSpec((block_b, block_c), lambda i, c: (i, c)),
                pl.BlockSpec((block_c, H), lambda i, c: (c, 0)),
                pl.BlockSpec((1, H), lambda i, c: (0, 0)),
                pl.BlockSpec((H, H), lambda i, c: (0, 0)),
                pl.BlockSpec((1, H), lambda i, c: (0, 0)),
                pl.BlockSpec((H, K2), lambda i, c: (0, 0)),
                pl.BlockSpec((1, K2), lambda i, c: (0, 0)),
            ],
            out_specs=pl.BlockSpec((block_b, K2), lambda i, c: (i, 0)),
            scratch_shapes=[pltpu.VMEM((block_b, H), jnp.float32)],
        ),
        compiler_params=pltpu.CompilerParams(
            dimension_semantics=("parallel", "arbitrary"),
            vmem_limit_bytes=_VMEM_LIMIT),
        cost_estimate=pl.CostEstimate(flops=int(flops), transcendentals=0,
                                      bytes_accessed=int(bytes_acc)),
    )(inp, w1, b1[None, :], w2, b2[None, :], w_heads, b_heads[None, :])


# ----------------------------------------------------------------------------
# Kernel 2: per-(window*topic) softmax statistics of the beta logits.
#   grid = (V tiles,) pure reduction.  alphas flattened to (W*K, R) so the MXU
#   LHS has W*K rows and rho is streamed from HBM exactly once per forward.
#   Only 2 * W*K floats ever hit HBM; beta itself is never materialized.
# ----------------------------------------------------------------------------
def _beta_stats_kernel(alpha_ref, rho_ref, m_ref, s_ref,
                       *, v_real, v_tile, need_mask):
    v = pl.program_id(0)

    @pl.when(v == 0)
    def _():
        m_ref[...] = jnp.full_like(m_ref, -jnp.inf)
        s_ref[...] = jnp.zeros_like(s_ref)

    logits = jnp.dot(alpha_ref[...], rho_ref[...],                 # (WK, Vt), MXU
                     preferred_element_type=jnp.float32)
    if need_mask:
        col = v * v_tile + lax.broadcasted_iota(jnp.int32, logits.shape, 1)
        logits = jnp.where(col < v_real, logits, -jnp.inf)

    m_prev = m_ref[...]                                            # (WK, 1)
    m_new = jnp.maximum(m_prev, jnp.max(logits, axis=-1, keepdims=True))
    s_ref[...] = (s_ref[...] * jnp.exp(m_prev - m_new)
                  + jnp.sum(jnp.exp(logits - m_new), axis=-1, keepdims=True))
    m_ref[...] = m_new


def beta_softmax_stats(alphas_flat, rho_t, v_real, v_tile):
    WK, R = alphas_flat.shape
    Vp = rho_t.shape[1]
    need_mask = (Vp != v_real)
    grid = (Vp // v_tile,)

    kern = functools.partial(_beta_stats_kernel, v_real=v_real,
                             v_tile=v_tile, need_mask=need_mask)
    flops = 2 * WK * Vp * R + 4 * WK * Vp
    return pl.pallas_call(
        kern,
        out_shape=(jax.ShapeDtypeStruct((WK, 1), jnp.float32),
                   jax.ShapeDtypeStruct((WK, 1), jnp.float32)),
        grid_spec=pltpu.PrefetchScalarGridSpec(
            num_scalar_prefetch=0,
            grid=grid,
            in_specs=[
                pl.BlockSpec((WK, R), lambda v: (0, 0)),
                pl.BlockSpec((R, v_tile), lambda v: (0, v)),
            ],
            out_specs=(
                pl.BlockSpec((WK, 1), lambda v: (0, 0)),
                pl.BlockSpec((WK, 1), lambda v: (0, 0)),
            ),
        ),
        compiler_params=pltpu.CompilerParams(
            dimension_semantics=("arbitrary",),
            vmem_limit_bytes=_VMEM_LIMIT),
        cost_estimate=pl.CostEstimate(
            flops=int(flops), transcendentals=int(WK * Vp),
            bytes_accessed=int(4 * (WK * R + R * Vp + 2 * WK))),
    )(alphas_flat, rho_t)


# ----------------------------------------------------------------------------
# Kernel 3: fused beta-recompute + scattered-theta likelihood + NLL reduction.
#   grid = (doc tiles [parallel], V tiles [arbitrary]).
#   Per grid step: one (W*K, R) x (R, Vt) logit matmul + exp (amortized over the
#   whole doc tile), then loglik = theta_scat(bb, W*K) @ p(W*K, Vt) on the MXU.
#   The per-doc NLL is accumulated in a VMEM scratch and stored once at the end.
# ----------------------------------------------------------------------------
def _nll_kernel(theta_ref, alpha_ref, rho_ref, m_ref, bows_ref, nll_ref,
                acc_ref, *, v_real, v_tile, need_mask):
    v = pl.program_id(1)

    @pl.when(v == 0)
    def _():
        acc_ref[...] = jnp.zeros_like(acc_ref)

    logits = jnp.dot(alpha_ref[...], rho_ref[...],                 # (WK, Vt), MXU
                     preferred_element_type=jnp.float32)
    if need_mask:
        col = v * v_tile + lax.broadcasted_iota(jnp.int32, logits.shape, 1)
        logits = jnp.where(col < v_real, logits, -jnp.inf)
    p = jnp.exp(logits - m_ref[...])                               # un-normalized beta
    loglik = jnp.dot(theta_ref[...], p,                            # (bb, Vt), MXU
                     preferred_element_type=jnp.float32)
    contrib = bows_ref[...] * jnp.log(loglik + 1e-6)               # (bb, Vt)
    acc_ref[...] += jnp.sum(contrib, axis=-1, keepdims=True)

    @pl.when(v == pl.num_programs(1) - 1)
    def _():
        nll_ref[...] = -acc_ref[...]


def fused_beta_nll(theta_scat, alphas_flat, rho_t, m_stats, bows_p,
                   v_real, v_tile):
    B, WK = theta_scat.shape
    R = alphas_flat.shape[1]
    Vp = rho_t.shape[1]
    need_mask = (Vp != v_real)

    bb = _pick_tile(B, (256, 128, 64, 32, 16, 8))
    grid = (B // bb, Vp // v_tile)

    kern = functools.partial(_nll_kernel, v_real=v_real, v_tile=v_tile,
                             need_mask=need_mask)
    n_btiles = B // bb
    flops = 2 * n_btiles * WK * Vp * R + 2 * B * WK * Vp + 4 * B * Vp
    nll = pl.pallas_call(
        kern,
        out_shape=jax.ShapeDtypeStruct((B, 1), jnp.float32),
        grid_spec=pltpu.PrefetchScalarGridSpec(
            num_scalar_prefetch=0,
            grid=grid,
            in_specs=[
                pl.BlockSpec((bb, WK), lambda b, v: (b, 0)),
                pl.BlockSpec((WK, R), lambda b, v: (0, 0)),
                pl.BlockSpec((R, v_tile), lambda b, v: (0, v)),
                pl.BlockSpec((WK, 1), lambda b, v: (0, 0)),
                pl.BlockSpec((bb, v_tile), lambda b, v: (b, v)),
            ],
            out_specs=pl.BlockSpec((bb, 1), lambda b, v: (b, 0)),
            scratch_shapes=[pltpu.VMEM((bb, 1), jnp.float32)],
        ),
        compiler_params=pltpu.CompilerParams(
            dimension_semantics=("parallel", "arbitrary"),
            vmem_limit_bytes=_VMEM_LIMIT),
        cost_estimate=pl.CostEstimate(
            flops=int(flops),
            transcendentals=int(n_btiles * WK * Vp + B * Vp),
            bytes_accessed=int(4 * (B * WK + WK * R + n_btiles * R * Vp
                                    + WK + B * Vp + B))),
    )(theta_scat, alphas_flat, rho_t, m_stats, bows_p)
    return nll[:, 0]


# ----------------------------------------------------------------------------
# Plain-JAX glue (LSTM recurrence, sequential eta chain, KL terms)
# ----------------------------------------------------------------------------
def kl_gauss(q_mu, q_ls, p_mu, p_ls):
    kl = (jnp.exp(q_ls) + (q_mu - p_mu) ** 2) / (jnp.exp(p_ls) + 1e-6)
    kl = kl - 1.0 + p_ls - q_ls
    return 0.5 * jnp.sum(kl, axis=-1)


def lstm_forward(x, layer_params, hidden):
    # x: (T, H_in); PyTorch gate order i, f, g, o ; batch size 1 squeezed out.
    # TODO(synk): the sequential LSTM / eta chains stay in lax.scan (tiny, O(W*H)).
    h_seq = x
    for (w_ih, w_hh, b_ih, b_hh) in layer_params:
        def step(carry, xt):
            h_prev, c_prev = carry
            gates = xt @ w_ih.T + b_ih + h_prev @ w_hh.T + b_hh
            i, f, g, o = jnp.split(gates, 4)
            i = jax.nn.sigmoid(i)
            f = jax.nn.sigmoid(f)
            g = jnp.tanh(g)
            o = jax.nn.sigmoid(o)
            c = f * c_prev + i * g
            h = o * jnp.tanh(c)
            return (h, c), h

        init = (jnp.zeros((hidden,), jnp.float32), jnp.zeros((hidden,), jnp.float32))
        _, h_seq = lax.scan(step, init, h_seq)
    return h_seq                                    # (T, hidden)


# ----------------------------------------------------------------------------
# DETM forward
# ----------------------------------------------------------------------------
def detm_forward(params, bows, normalized_bows, times, rnn_inp, num_docs, eps):
    K = params["num_topics"]
    W = params["num_windows"]
    R = params["rho_size"]
    delta = params["delta"]
    bsz = normalized_bows.shape[0]
    coeff = num_docs / bsz

    # ---------------- get_alpha ----------------
    mu_a = params["mu_q_alpha"]                     # (K, W, R)
    ls_a = params["logsigma_q_alpha"]               # (K, W, R)
    eps_a = eps["alpha"]                            # (W, K, R)
    alphas = jnp.transpose(mu_a, (1, 0, 2)) + eps_a * jnp.exp(
        0.5 * jnp.transpose(ls_a, (1, 0, 2)))       # (W, K, R)

    kl0 = kl_gauss(mu_a[:, 0, :], ls_a[:, 0, :],
                   jnp.zeros((K, R)), jnp.zeros((K, R)))          # (K,)
    p_mu_rest = alphas[:-1]                                        # (W-1, K, R)
    p_ls_rest = jnp.full((W - 1, K, R), jnp.log(delta), jnp.float32)
    kl_rest = kl_gauss(jnp.transpose(mu_a, (1, 0, 2))[1:],
                       jnp.transpose(ls_a, (1, 0, 2))[1:],
                       p_mu_rest, p_ls_rest)                       # (W-1, K)
    kl_alpha = jnp.sum(kl0) + jnp.sum(kl_rest)

    # ---------------- get_eta -------------------
    lstm_in = rnn_inp @ params["w_eta_map"] + params["b_eta_map"]  # (W, H_e)
    output = lstm_forward(lstm_in, params["lstm"], params["eta_hidden_size"])

    w_mu_e, b_mu_e = params["w_mu_eta"], params["b_mu_eta"]
    w_ls_e, b_ls_e = params["w_ls_eta"], params["b_ls_eta"]
    eps_e = eps["eta"]                                             # (W, K)

    inp0 = jnp.concatenate([output[0], jnp.zeros((K,), jnp.float32)])
    mu0 = inp0 @ w_mu_e + b_mu_e
    ls0 = inp0 @ w_ls_e + b_ls_e
    eta0 = mu0 + eps_e[0] * jnp.exp(0.5 * ls0)
    kl_eta0 = kl_gauss(mu0, ls0, jnp.zeros((K,)), jnp.zeros((K,)))

    def eta_step(eta_prev, inputs):
        out_t, eps_t = inputs
        inp_t = jnp.concatenate([out_t, eta_prev])
        mu_t = inp_t @ w_mu_e + b_mu_e
        ls_t = inp_t @ w_ls_e + b_ls_e
        eta_t = mu_t + eps_t * jnp.exp(0.5 * ls_t)
        kl_t = kl_gauss(mu_t, ls_t, eta_prev,
                        jnp.full((K,), jnp.log(delta), jnp.float32))
        return eta_t, (eta_t, kl_t)

    _, (etas_rest, kls_rest) = lax.scan(eta_step, eta0, (output[1:], eps_e[1:]))
    etas = jnp.concatenate([eta0[None], etas_rest], axis=0)        # (W, K)
    kl_eta = kl_eta0 + jnp.sum(kls_rest)

    # ---------------- get_theta (Pallas) ----------------
    eta_td = etas[times]                                           # (B, K)
    theta_inp = jnp.concatenate([normalized_bows, eta_td], axis=1) # (B, V+K)
    w_heads = jnp.concatenate([params["w_mu_theta"], params["w_ls_theta"]], axis=1)
    b_heads = jnp.concatenate([params["b_mu_theta"], params["b_ls_theta"]], axis=0)
    mu_ls = theta_encoder(theta_inp,
                          params["w_q1"], params["b_q1"],
                          params["w_q2"], params["b_q2"],
                          w_heads, b_heads)                        # (B, 2K)
    mu_theta, ls_theta = mu_ls[:, :K], mu_ls[:, K:]
    z = mu_theta + eps["theta"] * jnp.exp(0.5 * ls_theta)
    theta = jax.nn.softmax(z, axis=-1)                             # (B, K)
    kl_theta = jnp.sum(kl_gauss(mu_theta, ls_theta, eta_td,
                                jnp.zeros((K,), jnp.float32))) * coeff

    # ---------------- fused beta + scattered-theta nll (Pallas) ----------
    rho = params["rho"]                                            # (V, R)
    V = rho.shape[0]
    B = theta.shape[0]
    WK = W * K

    # lane-dense rho layout (R, V), vocab padded to a multiple of 128
    Vp = max(_round_up(V, 128), 128)
    rho_t = jnp.transpose(rho)                                     # (R, V)
    bows_p = bows
    if Vp != V:
        rho_t = jnp.concatenate(
            [rho_t, jnp.zeros((R, Vp - V), jnp.float32)], axis=1)
        bows_p = jnp.concatenate(
            [bows_p, jnp.zeros((B, Vp - V), jnp.float32)], axis=1)

    bb = _pick_tile(B, (256, 128, 64, 32, 16, 8))
    v_tile = _pick_v_tile(Vp, WK, bb, R)

    alphas_flat = alphas.reshape(WK, R)                            # (W*K, R)
    m_stats, s_stats = beta_softmax_stats(alphas_flat, rho_t, V, v_tile)

    # scatter theta into (B, W*K): doc b contributes theta[b]/s[times[b]] in
    # the columns of its window and zeros elsewhere (exact divide, no approx).
    s_wk = s_stats.reshape(W, K)                                   # (W, K)
    onehot = jax.nn.one_hot(times, W, dtype=jnp.float32)           # (B, W)
    theta_scaled = theta[:, None, :] / s_wk[None, :, :]            # (B, W, K)
    theta_scat = (onehot[:, :, None] * theta_scaled).reshape(B, WK)

    nll_per_doc = fused_beta_nll(theta_scat, alphas_flat, rho_t,
                                 m_stats, bows_p, V, v_tile)       # (B,)
    nll = jnp.sum(nll_per_doc) * coeff

    nelbo = nll + kl_alpha + kl_eta + kl_theta
    return nelbo, nll, kl_alpha, kl_eta, kl_theta


# ----------------------------------------------------------------------------
# Deterministic parameter / input construction
# ----------------------------------------------------------------------------
def make_params(key, V, K, R, W, t_hidden, eta_hidden, eta_nlayers, delta):
    keys = iter(jax.random.split(key, 32))

    def rnd(shape, scale=0.1):
        return scale * jax.random.normal(next(keys), shape, jnp.float32)

    lstm = []
    for _ in range(eta_nlayers):
        lstm.append((rnd((4 * eta_hidden, eta_hidden)),
                     rnd((4 * eta_hidden, eta_hidden)),
                     rnd((4 * eta_hidden,)),
                     rnd((4 * eta_hidden,))))

    return dict(
        num_topics=K, num_windows=W, rho_size=R, delta=delta,
        eta_hidden_size=eta_hidden,
        rho=rnd((V, R)),                               # word embeddings (V, R)
        mu_q_alpha=rnd((K, W, R), 1.0),
        logsigma_q_alpha=rnd((K, W, R), 0.1),
        # q_theta MLP (weights stored as (in, out))
        w_q1=rnd((V + K, t_hidden)), b_q1=rnd((t_hidden,)),
        w_q2=rnd((t_hidden, t_hidden)), b_q2=rnd((t_hidden,)),
        w_mu_theta=rnd((t_hidden, K)), b_mu_theta=rnd((K,)),
        w_ls_theta=rnd((t_hidden, K)), b_ls_theta=rnd((K,)),
        # eta network
        w_eta_map=rnd((V, eta_hidden)), b_eta_map=rnd((eta_hidden,)),
        lstm=lstm,
        w_mu_eta=rnd((eta_hidden + K, K)), b_mu_eta=rnd((K,)),
        w_ls_eta=rnd((eta_hidden + K, K)), b_ls_eta=rnd((K,)),
    )


if __name__ == "__main__":
    # small, forward-consistent shapes.  V=1500 deliberately exercises the
    # padded-vocab masking path and a multi-step V-reduction grid.
    V, K, R = 1500, 16, 64          # vocab, topics, embedding size
    W = 4                           # num_windows
    T_HIDDEN, ETA_HIDDEN, ETA_NLAYERS = 128, 64, 2
    B = 32                          # batch of documents
    NUM_DOCS = 1000.0
    DELTA = 0.005

    key = jax.random.PRNGKey(0)
    kp, kb, kt, kr, ka, ke, kth = jax.random.split(key, 7)

    params = make_params(kp, V, K, R, W, T_HIDDEN, ETA_HIDDEN, ETA_NLAYERS, DELTA)

    bows = jnp.abs(jax.random.normal(kb, (B, V), jnp.float32)) * 3.0
    normalized_bows = bows / jnp.sum(bows, axis=1, keepdims=True)
    times = jax.random.randint(kt, (B,), 0, W)
    rnn_inp = jnp.abs(jax.random.normal(kr, (W, V), jnp.float32))

    # reparameterization noise (training-mode semantics, made deterministic)
    eps = dict(alpha=jax.random.normal(ka, (W, K, R), jnp.float32),
               eta=jax.random.normal(ke, (W, K), jnp.float32),
               theta=jax.random.normal(kth, (B, K), jnp.float32))

    fwd = jax.jit(functools.partial(detm_forward, params))
    nelbo, nll, kl_alpha, kl_eta, kl_theta = fwd(
        bows, normalized_bows, times, rnn_inp, NUM_DOCS, eps)
    jax.block_until_ready(nelbo)

    for name, val in [("nelbo", nelbo), ("nll", nll), ("kl_alpha", kl_alpha),
                      ("kl_eta", kl_eta), ("kl_theta", kl_theta)]:
        assert math.isfinite(float(val)), name
    print("KERNEL_OK")
</pallas_src>

<mosaic_0001>
module attributes {stable_mosaic.version = 11 : i64} {
  func.func @_theta_encoder_kernel(%arg0: i32, %arg1: i32, %arg2: memref<32x512xf32, #tpu.memory_space<vmem>>, %arg3: memref<512x128xf32, #tpu.memory_space<vmem>>, %arg4: memref<1x128xf32, #tpu.memory_space<vmem>>, %arg5: memref<128x128xf32, #tpu.memory_space<vmem>>, %arg6: memref<1x128xf32, #tpu.memory_space<vmem>>, %arg7: memref<128x32xf32, #tpu.memory_space<vmem>>, %arg8: memref<1x32xf32, #tpu.memory_space<vmem>>, %arg9: memref<32x32xf32, #tpu.memory_space<vmem>>, %arg10: memref<32x128xf32, #tpu.memory_space<vmem>>) attributes {dimension_semantics = [#tpu.dimension_semantics<parallel>, #tpu.dimension_semantics<arbitrary>], iteration_bounds = array<i64: 1, 3>, scalar_prefetch = 0 : i64, scratch_operands = 1 : i64, tpu.core_type = #tpu.core_type<tc>, window_params = [{transform_indices = @transform_0, window_bounds = array<i64: 32, 512>}, {transform_indices = @transform_1, window_bounds = array<i64: 512, 128>}, {pipeline_mode = #tpu.pipeline_mode<synchronous>, transform_indices = @transform_2, window_bounds = array<i64: 1, 128>}, {pipeline_mode = #tpu.pipeline_mode<synchronous>, transform_indices = @transform_3, window_bounds = array<i64: 128, 128>}, {pipeline_mode = #tpu.pipeline_mode<synchronous>, transform_indices = @transform_4, window_bounds = array<i64: 1, 128>}, {pipeline_mode = #tpu.pipeline_mode<synchronous>, transform_indices = @transform_5, window_bounds = array<i64: 128, 32>}, {pipeline_mode = #tpu.pipeline_mode<synchronous>, transform_indices = @transform_6, window_bounds = array<i64: 1, 32>}, {transform_indices = @transform_7, window_bounds = array<i64: 32, 32>}]} {
    %c0_i32 = arith.constant 0 : i32
    %0 = arith.cmpi eq, %arg1, %c0_i32 : i32
    %1 = arith.extui %0 : i1 to i32
    %c0_i32_0 = arith.constant 0 : i32
    %2 = arith.cmpi ne, %1, %c0_i32_0 : i32
    scf.if %2 {
      %cst_9 = arith.constant 0.000000e+00 : f32
      %12 = vector.broadcast %cst_9 : f32 to vector<32x128xf32>
      %c0_10 = arith.constant 0 : index
      %c0_11 = arith.constant 0 : index
      %13 = vector.load %arg10[%c0_10, %c0_11] : memref<32x128xf32, #tpu.memory_space<vmem>>, vector<32x128xf32>
      tpu.vector_store %arg10[%c0_10, %c0_11], %12 {strides = array<i32>} : memref<32x128xf32, #tpu.memory_space<vmem>>, vector<32x128xf32>,
    } else {
    }
    %c0 = arith.constant 0 : index
    %c0_1 = arith.constant 0 : index
    %3 = vector.load %arg10[%c0, %c0_1] : memref<32x128xf32, #tpu.memory_space<vmem>>, vector<32x128xf32>
    %c0_2 = arith.constant 0 : index
    %c0_3 = arith.constant 0 : index
    %4 = vector.load %arg2[%c0_2, %c0_3] : memref<32x512xf32, #tpu.memory_space<vmem>>, vector<32x512xf32>
    %c0_4 = arith.constant 0 : index
    %c0_5 = arith.constant 0 : index
    %5 = vector.load %arg3[%c0_4, %c0_5] : memref<512x128xf32, #tpu.memory_space<vmem>>, vector<512x128xf32>
    %cst = arith.constant dense<0.000000e+00> : vector<32x128xf32>
    %6 = tpu.matmul %4, %5, %cst {dimension_numbers = #tpu.dot_dimension_numbers<[1], [0], [0], [1], [0, 0, 1, 1], [], []>} : vector<32x512xf32>, vector<512x128xf32>, vector<32x128xf32> -> vector<32x128xf32>
    %7 = arith.addf %3, %6 : vector<32x128xf32>
    %c0_6 = arith.constant 0 : index
    %c0_7 = arith.constant 0 : index
    %8 = vector.load %arg10[%c0_6, %c0_7] : memref<32x128xf32, #tpu.memory_space<vmem>>, vector<32x128xf32>
    tpu.vector_store %arg10[%c0_6, %c0_7], %7 {strides = array<i32>} : memref<32x128xf32, #tpu.memory_space<vmem>>, vector<32x128xf32>,
    %c2_i32 = arith.constant 2 : i32
    %9 = arith.cmpi eq, %arg1, %c2_i32 : i32
    %10 = arith.extui %9 : i1 to i32
    %c0_i32_8 = arith.constant 0 : i32
    %11 = arith.cmpi ne, %10, %c0_i32_8 : i32
    scf.if %11 {
      %c0_9 = arith.constant 0 : index
      %c0_10 = arith.constant 0 : index
      %12 = vector.load %arg10[%c0_9, %c0_10] : memref<32x128xf32, #tpu.memory_space<vmem>>, vector<32x128xf32>
      %c0_11 = arith.constant 0 : index
      %c0_12 = arith.constant 0 : index
      %13 = vector.load %arg4[%c0_11, %c0_12] : memref<1x128xf32, #tpu.memory_space<vmem>>, vector<1x128xf32>
      %14 = vector.broadcast %13 : vector<1x128xf32> to vector<32x128xf32>
      %15 = arith.addf %12, %14 : vector<32x128xf32>
      %cst_13 = arith.constant 0.000000e+00 : f32
      %16 = vector.broadcast %cst_13 : f32 to vector<32x128xf32>
      %17 = arith.maximumf %15, %16 : vector<32x128xf32>
      %c0_14 = arith.constant 0 : index
      %c0_15 = arith.constant 0 : index
      %18 = vector.load %arg5[%c0_14, %c0_15] : memref<128x128xf32, #tpu.memory_space<vmem>>, vector<128x128xf32>
      %cst_16 = arith.constant dense<0.000000e+00> : vector<32x128xf32>
      %19 = tpu.matmul %17, %18, %cst_16 {dimension_numbers = #tpu.dot_dimension_numbers<[1], [0], [0], [1], [0, 0, 1, 1], [], []>} : vector<32x128xf32>, vector<128x128xf32>, vector<32x128xf32> -> vector<32x128xf32>
      %c0_17 = arith.constant 0 : index
      %c0_18 = arith.constant 0 : index
      %20 = vector.load %arg6[%c0_17, %c0_18] : memref<1x128xf32, #tpu.memory_space<vmem>>, vector<1x128xf32>
      %21 = vector.broadcast %20 : vector<1x128xf32> to vector<32x128xf32>
      %22 = arith.addf %19, %21 : vector<32x128xf32>
      %cst_19 = arith.constant 0.000000e+00 : f32
      %23 = vector.broadcast %cst_19 : f32 to vector<32x128xf32>
      %24 = arith.maximumf %22, %23 : vector<32x128xf32>
      %c0_20 = arith.constant 0 : index
      %c0_21 = arith.constant 0 : index
      %25 = vector.load %arg7[%c0_20, %c0_21] : memref<128x32xf32, #tpu.memory_space<vmem>>, vector<128x32xf32>
      %cst_22 = arith.constant dense<0.000000e+00> : vector<32x32xf32>
      %26 = tpu.matmul %24, %25, %cst_22 {dimension_numbers = #tpu.dot_dimension_numbers<[1], [0], [0], [1], [0, 0, 1, 1], [], []>} : vector<32x128xf32>, vector<128x32xf32>, vector<32x32xf32> -> vector<32x32xf32>
      %c0_23 = arith.constant 0 : index
      %c0_24 = arith.constant 0 : index
      %27 = vector.load %arg8[%c0_23, %c0_24] : memref<1x32xf32, #tpu.memory_space<vmem>>, vector<1x32xf32>
      %28 = vector.broadcast %27 : vector<1x32xf32> to vector<32x32xf32>
      %29 = arith.addf %26, %28 : vector<32x32xf32>
      %c0_25 = arith.constant 0 : index
      %c0_26 = arith.constant 0 : index
      %30 = vector.load %arg9[%c0_25, %c0_26] : memref<32x32xf32, #tpu.memory_space<vmem>>, vector<32x32xf32>
      tpu.vector_store %arg9[%c0_25, %c0_26], %29 {strides = array<i32>} : memref<32x32xf32, #tpu.memory_space<vmem>>, vector<32x32xf32>,
    } else {
    }
    return
  }
  func.func @transform_0(%arg0: i32, %arg1: i32) -> (i32, i32) {
    %c0_i32 = arith.constant 0 : i32
    return %arg0, %arg1 : i32, i32
  }
  func.func @transform_1(%arg0: i32, %arg1: i32) -> (i32, i32) {
    %c0_i32 = arith.constant 0 : i32
    %c0_i32_0 = arith.constant 0 : i32
    return %arg1, %c0_i32 : i32, i32
  }
  func.func @transform_2(%arg0: i32, %arg1: i32) -> (i32, i32) {
    %c0_i32 = arith.constant 0 : i32
    %c0_i32_0 = arith.constant 0 : i32
    %c0_i32_1 = arith.constant 0 : i32
    return %c0_i32, %c0_i32_0 : i32, i32
  }
  func.func @transform_3(%arg0: i32, %arg1: i32) -> (i32, i32) {
    %c0_i32 = arith.constant 0 : i32
    %c0_i32_0 = arith.constant 0 : i32
    %c0_i32_1 = arith.constant 0 : i32
    return %c0_i32, %c0_i32_0 : i32, i32
  }
  func.func @transform_4(%arg0: i32, %arg1: i32) -> (i32, i32) {
    %c0_i32 = arith.constant 0 : i32
    %c0_i32_0 = arith.constant 0 : i32
    %c0_i32_1 = arith.constant 0 : i32
    return %c0_i32, %c0_i32_0 : i32, i32
  }
  func.func @transform_5(%arg0: i32, %arg1: i32) -> (i32, i32) {
    %c0_i32 = arith.constant 0 : i32
    %c0_i32_0 = arith.constant 0 : i32
    %c0_i32_1 = arith.constant 0 : i32
    return %c0_i32, %c0_i32_0 : i32, i32
  }
  func.func @transform_6(%arg0: i32, %arg1: i32) -> (i32, i32) {
    %c0_i32 = arith.constant 0 : i32
    %c0_i32_0 = arith.constant 0 : i32
    %c0_i32_1 = arith.constant 0 : i32
    return %c0_i32, %c0_i32_0 : i32, i32
  }
  func.func @transform_7(%arg0: i32, %arg1: i32) -> (i32, i32) {
    %c0_i32 = arith.constant 0 : i32
    %c0_i32_0 = arith.constant 0 : i32
    return %arg0, %c0_i32 : i32, i32
  }
}

module attributes {stable_mosaic.version = 11 : i64} {
  func.func @_beta_stats_kernel(%arg0: i32, %arg1: memref<64x64xf32, #tpu.memory_space<vmem>>, %arg2: memref<64x512xf32, #tpu.memory_space<vmem>>, %arg3: memref<64x1xf32, #tpu.memory_space<vmem>>, %arg4: memref<64x1xf32, #tpu.memory_space<vmem>>) attributes {dimension_semantics = [#tpu.dimension_semantics<arbitrary>], iteration_bounds = array<i64: 3>, scalar_prefetch = 0 : i64, scratch_operands = 0 : i64, tpu.core_type = #tpu.core_type<tc>, window_params = [{pipeline_mode = #tpu.pipeline_mode<synchronous>, transform_indices = @transform_0, window_bounds = array<i64: 64, 64>}, {transform_indices = @transform_1, window_bounds = array<i64: 64, 512>}, {pipeline_mode = #tpu.pipeline_mode<synchronous>, transform_indices = @transform_2, window_bounds = array<i64: 64, 1>}, {pipeline_mode = #tpu.pipeline_mode<synchronous>, transform_indices = @transform_3, window_bounds = array<i64: 64, 1>}]} {
    %c0_i32 = arith.constant 0 : i32
    %0 = arith.cmpi eq, %arg0, %c0_i32 : i32
    %1 = arith.extui %0 : i1 to i32
    %c0_i32_0 = arith.constant 0 : i32
    %2 = arith.cmpi ne, %1, %c0_i32_0 : i32
    scf.if %2 {
      %cst_15 = arith.constant 0xFF800000 : f32
      %30 = vector.broadcast %cst_15 : f32 to vector<64x1xf32>
      %c0_16 = arith.constant 0 : index
      %c0_17 = arith.constant 0 : index
      %31 = vector.load %arg3[%c0_16, %c0_17] : memref<64x1xf32, #tpu.memory_space<vmem>>, vector<64x1xf32>
      tpu.vector_store %arg3[%c0_16, %c0_17], %30 {strides = array<i32>} : memref<64x1xf32, #tpu.memory_space<vmem>>, vector<64x1xf32>,
      %cst_18 = arith.constant 0.000000e+00 : f32
      %32 = vector.broadcast %cst_18 : f32 to vector<64x1xf32>
      %c0_19 = arith.constant 0 : index
      %c0_20 = arith.constant 0 : index
      %33 = vector.load %arg4[%c0_19, %c0_20] : memref<64x1xf32, #tpu.memory_space<vmem>>, vector<64x1xf32>
      tpu.vector_store %arg4[%c0_19, %c0_20], %32 {strides = array<i32>} : memref<64x1xf32, #tpu.memory_space<vmem>>, vector<64x1xf32>,
    } else {
    }
    %c0 = arith.constant 0 : index
    %c0_1 = arith.constant 0 : index
    %3 = vector.load %arg1[%c0, %c0_1] : memref<64x64xf32, #tpu.memory_space<vmem>>, vector<64x64xf32>
    %c0_2 = arith.constant 0 : index
    %c0_3 = arith.constant 0 : index
    %4 = vector.load %arg2[%c0_2, %c0_3] : memref<64x512xf32, #tpu.memory_space<vmem>>, vector<64x512xf32>
    %cst = arith.constant dense<0.000000e+00> : vector<64x512xf32>
    %5 = tpu.matmul %3, %4, %cst {dimension_numbers = #tpu.dot_dimension_numbers<[1], [0], [0], [1], [0, 0, 1, 1], [], []>} : vector<64x64xf32>, vector<64x512xf32>, vector<64x512xf32> -> vector<64x512xf32>
    %c512_i32 = arith.constant 512 : i32
    %6 = arith.muli %arg0, %c512_i32 : i32
    %7 = tpu.iota {dimensions = array<i32: 1>} : vector<64x512xi32>
    %8 = vector.broadcast %6 : i32 to vector<64x512xi32>
    %9 = arith.addi %8, %7 : vector<64x512xi32>
    %c1500_i32 = arith.constant 1500 : i32
    %10 = vector.broadcast %c1500_i32 : i32 to vector<64x512xi32>
    %11 = arith.cmpi slt, %9, %10 : vector<64x512xi32>
    %cst_4 = arith.constant 0xFF800000 : f32
    %12 = vector.broadcast %cst_4 : f32 to vector<64x512xf32>
    %13 = arith.select %11, %5, %12 : vector<64x512xi1>, vector<64x512xf32>
    %c0_5 = arith.constant 0 : index
    %c0_6 = arith.constant 0 : index
    %14 = vector.load %arg3[%c0_5, %c0_6] : memref<64x1xf32, #tpu.memory_space<vmem>>, vector<64x1xf32>
    %cst_7 = arith.constant dense<0xFF800000> : vector<64xf32>
    %15 = vector.multi_reduction <maximumf>, %13, %cst_7 [1] : vector<64x512xf32> to vector<64xf32>
    %16 = vector.shape_cast %15 : vector<64xf32> to vector<64x1xf32>
    %17 = arith.maximumf %14, %16 : vector<64x1xf32>
    %c0_8 = arith.constant 0 : index
    %c0_9 = arith.constant 0 : index
    %18 = vector.load %arg4[%c0_8, %c0_9] : memref<64x1xf32, #tpu.memory_space<vmem>>, vector<64x1xf32>
    %19 = arith.subf %14, %17 : vector<64x1xf32>
    %20 = math.exp %19 : vector<64x1xf32>
    %21 = arith.mulf %18, %20 : vector<64x1xf32>
    %22 = vector.broadcast %17 : vector<64x1xf32> to vector<64x512xf32>
    %23 = arith.subf %13, %22 : vector<64x512xf32>
    %24 = math.exp %23 : vector<64x512xf32>
    %cst_10 = arith.constant dense<0.000000e+00> : vector<64xf32>
    %25 = vector.multi_reduction <add>, %24, %cst_10 [1] : vector<64x512xf32> to vector<64xf32>
    %26 = vector.shape_cast %25 : vector<64xf32> to vector<64x1xf32>
    %27 = arith.addf %21, %26 : vector<64x1xf32>
    %c0_11 = arith.constant 0 : index
    %c0_12 = arith.constant 0 : index
    %28 = vector.load %arg4[%c0_11, %c0_12] : memref<64x1xf32, #tpu.memory_space<vmem>>, vector<64x1xf32>
    tpu.vector_store %arg4[%c0_11, %c0_12], %27 {strides = array<i32>} : memref<64x1xf32, #tpu.memory_space<vmem>>, vector<64x1xf32>,
    %c0_13 = arith.constant 0 : index
    %c0_14 = arith.constant 0 : index
    %29 = vector.load %arg3[%c0_13, %c0_14] : memref<64x1xf32, #tpu.memory_space<vmem>>, vector<64x1xf32>
    tpu.vector_store %arg3[%c0_13, %c0_14], %17 {strides = array<i32>} : memref<64x1xf32, #tpu.memory_space<vmem>>, vector<64x1xf32>,
    return
  }
  func.func @transform_0(%arg0: i32) -> (i32, i32) {
    %c0_i32 = arith.constant 0 : i32
    %c0_i32_0 = arith.constant 0 : i32
    %c0_i32_1 = arith.constant 0 : i32
    return %c0_i32, %c0_i32_0 : i32, i32
  }
  func.func @transform_1(%arg0: i32) -> (i32, i32) {
    %c0_i32 = arith.constant 0 : i32
    %c0_i32_0 = arith.constant 0 : i32
    return %c0_i32, %arg0 : i32, i32
  }
  func.func @transform_2(%arg0: i32) -> (i32, i32) {
    %c0_i32 = arith.constant 0 : i32
    %c0_i32_0 = arith.constant 0 : i32
    %c0_i32_1 = arith.constant 0 : i32
    return %c0_i32, %c0_i32_0 : i32, i32
  }
  func.func @transform_3(%arg0: i32) -> (i32, i32) {
    %c0_i32 = arith.constant 0 : i32
    %c0_i32_0 = arith.constant 0 : i32
    %c0_i32_1 = arith.constant 0 : i32
    return %c0_i32, %c0_i32_0 : i32, i32
  }
}

module attributes {stable_mosaic.version = 11 : i64} {
  func.func @_nll_kernel(%arg0: i32, %arg1: i32, %arg2: memref<32x64xf32, #tpu.memory_space<vmem>>, %arg3: memref<64x64xf32, #tpu.memory_space<vmem>>, %arg4: memref<64x512xf32, #tpu.memory_space<vmem>>, %arg5: memref<64x1xf32, #tpu.memory_space<vmem>>, %arg6: memref<32x512xf32, #tpu.memory_space<vmem>>, %arg7: memref<32x1xf32, #tpu.memory_space<vmem>>, %arg8: memref<32x1xf32, #tpu.memory_space<vmem>>) attributes {dimension_semantics = [#tpu.dimension_semantics<parallel>, #tpu.dimension_semantics<arbitrary>], iteration_bounds = array<i64: 1, 3>, scalar_prefetch = 0 : i64, scratch_operands = 1 : i64, tpu.core_type = #tpu.core_type<tc>, window_params = [{transform_indices = @transform_0, window_bounds = array<i64: 32, 64>}, {pipeline_mode = #tpu.pipeline_mode<synchronous>, transform_indices = @transform_1, window_bounds = array<i64: 64, 64>}, {transform_indices = @transform_2, window_bounds = array<i64: 64, 512>}, {pipeline_mode = #tpu.pipeline_mode<synchronous>, transform_indices = @transform_3, window_bounds = array<i64: 64, 1>}, {transform_indices = @transform_4, window_bounds = array<i64: 32, 512>}, {transform_indices = @transform_5, window_bounds = array<i64: 32, 1>}]} {
    %c0_i32 = arith.constant 0 : i32
    %0 = arith.cmpi eq, %arg1, %c0_i32 : i32
    %1 = arith.extui %0 : i1 to i32
    %c0_i32_0 = arith.constant 0 : i32
    %2 = arith.cmpi ne, %1, %c0_i32_0 : i32
    scf.if %2 {
      %cst_19 = arith.constant 0.000000e+00 : f32
      %33 = vector.broadcast %cst_19 : f32 to vector<32x1xf32>
      %c0_20 = arith.constant 0 : index
      %c0_21 = arith.constant 0 : index
      %34 = vector.load %arg8[%c0_20, %c0_21] : memref<32x1xf32, #tpu.memory_space<vmem>>, vector<32x1xf32>
      tpu.vector_store %arg8[%c0_20, %c0_21], %33 {strides = array<i32>} : memref<32x1xf32, #tpu.memory_space<vmem>>, vector<32x1xf32>,
    } else {
    }
    %c0 = arith.constant 0 : index
    %c0_1 = arith.constant 0 : index
    %3 = vector.load %arg3[%c0, %c0_1] : memref<64x64xf32, #tpu.memory_space<vmem>>, vector<64x64xf32>
    %c0_2 = arith.constant 0 : index
    %c0_3 = arith.constant 0 : index
    %4 = vector.load %arg4[%c0_2, %c0_3] : memref<64x512xf32, #tpu.memory_space<vmem>>, vector<64x512xf32>
    %cst = arith.constant dense<0.000000e+00> : vector<64x512xf32>
    %5 = tpu.matmul %3, %4, %cst {dimension_numbers = #tpu.dot_dimension_numbers<[1], [0], [0], [1], [0, 0, 1, 1], [], []>} : vector<64x64xf32>, vector<64x512xf32>, vector<64x512xf32> -> vector<64x512xf32>
    %c512_i32 = arith.constant 512 : i32
    %6 = arith.muli %arg1, %c512_i32 : i32
    %7 = tpu.iota {dimensions = array<i32: 1>} : vector<64x512xi32>
    %8 = vector.broadcast %6 : i32 to vector<64x512xi32>
    %9 = arith.addi %8, %7 : vector<64x512xi32>
    %c1500_i32 = arith.constant 1500 : i32
    %10 = vector.broadcast %c1500_i32 : i32 to vector<64x512xi32>
    %11 = arith.cmpi slt, %9, %10 : vector<64x512xi32>
    %cst_4 = arith.constant 0xFF800000 : f32
    %12 = vector.broadcast %cst_4 : f32 to vector<64x512xf32>
    %13 = arith.select %11, %5, %12 : vector<64x512xi1>, vector<64x512xf32>
    %c0_5 = arith.constant 0 : index
    %c0_6 = arith.constant 0 : index
    %14 = vector.load %arg5[%c0_5, %c0_6] : memref<64x1xf32, #tpu.memory_space<vmem>>, vector<64x1xf32>
    %15 = vector.broadcast %14 : vector<64x1xf32> to vector<64x512xf32>
    %16 = arith.subf %13, %15 : vector<64x512xf32>
    %17 = math.exp %16 : vector<64x512xf32>
    %c0_7 = arith.constant 0 : index
    %c0_8 = arith.constant 0 : index
    %18 = vector.load %arg2[%c0_7, %c0_8] : memref<32x64xf32, #tpu.memory_space<vmem>>, vector<32x64xf32>
    %cst_9 = arith.constant dense<0.000000e+00> : vector<32x512xf32>
    %19 = tpu.matmul %18, %17, %cst_9 {dimension_numbers = #tpu.dot_dimension_numbers<[1], [0], [0], [1], [0, 0, 1, 1], [], []>} : vector<32x64xf32>, vector<64x512xf32>, vector<32x512xf32> -> vector<32x512xf32>
    %c0_10 = arith.constant 0 : index
    %c0_11 = arith.constant 0 : index
    %20 = vector.load %arg6[%c0_10, %c0_11] : memref<32x512xf32, #tpu.memory_space<vmem>>, vector<32x512xf32>
    %cst_12 = arith.constant 9.99999997E-7 : f32
    %21 = vector.broadcast %cst_12 : f32 to vector<32x512xf32>
    %22 = arith.addf %19, %21 : vector<32x512xf32>
    %23 = math.log %22 : vector<32x512xf32>
    %24 = arith.mulf %20, %23 : vector<32x512xf32>
    %c0_13 = arith.constant 0 : index
    %c0_14 = arith.constant 0 : index
    %25 = vector.load %arg8[%c0_13, %c0_14] : memref<32x1xf32, #tpu.memory_space<vmem>>, vector<32x1xf32>
    %cst_15 = arith.constant dense<0.000000e+00> : vector<32xf32>
    %26 = vector.multi_reduction <add>, %24, %cst_15 [1] : vector<32x512xf32> to vector<32xf32>
    %27 = vector.shape_cast %26 : vector<32xf32> to vector<32x1xf32>
    %28 = arith.addf %25, %27 : vector<32x1xf32>
    %c0_16 = arith.constant 0 : index
    %c0_17 = arith.constant 0 : index
    %29 = vector.load %arg8[%c0_16, %c0_17] : memref<32x1xf32, #tpu.memory_space<vmem>>, vector<32x1xf32>
    tpu.vector_store %arg8[%c0_16, %c0_17], %28 {strides = array<i32>} : memref<32x1xf32, #tpu.memory_space<vmem>>, vector<32x1xf32>,
    %c2_i32 = arith.constant 2 : i32
    %30 = arith.cmpi eq, %arg1, %c2_i32 : i32
    %31 = arith.extui %30 : i1 to i32
    %c0_i32_18 = arith.constant 0 : i32
    %32 = arith.cmpi ne, %31, %c0_i32_18 : i32
    scf.if %32 {
      %c0_19 = arith.constant 0 : index
      %c0_20 = arith.constant 0 : index
      %33 = vector.load %arg8[%c0_19, %c0_20] : memref<32x1xf32, #tpu.memory_space<vmem>>, vector<32x1xf32>
      %cst_21 = arith.constant 0.000000e+00 : f32
      %34 = vector.broadcast %cst_21 : f32 to vector<32x1xf32>
      %35 = arith.subf %34, %33 : vector<32x1xf32>
      %c0_22 = arith.constant 0 : index
      %c0_23 = arith.constant 0 : index
      %36 = vector.load %arg7[%c0_22, %c0_23] : memref<32x1xf32, #tpu.memory_space<vmem>>, vector<32x1xf32>
      tpu.vector_store %arg7[%c0_22, %c0_23], %35 {strides = array<i32>} : memref<32x1xf32, #tpu.memory_space<vmem>>, vector<32x1xf32>,
    } else {
    }
    return
  }
  func.func @transform_0(%arg0: i32, %arg1: i32) -> (i32, i32) {
    %c0_i32 = arith.constant 0 : i32
    %c0_i32_0 = arith.constant 0 : i32
    return %arg0, %c0_i32 : i32, i32
  }
  func.func @transform_1(%arg0: i32, %arg1: i32) -> (i32, i32) {
    %c0_i32 = arith.constant 0 : i32
    %c0_i32_0 = arith.constant 0 : i32
    %c0_i32_1 = arith.constant 0 : i32
    return %c0_i32, %c0_i32_0 : i32, i32
  }
  func.func @transform_2(%arg0: i32, %arg1: i32) -> (i32, i32) {
    %c0_i32 = arith.constant 0 : i32
    %c0_i32_0 = arith.constant 0 : i32
    return %c0_i32, %arg1 : i32, i32
  }
  func.func @transform_3(%arg0: i32, %arg1: i32) -> (i32, i32) {
    %c0_i32 = arith.constant 0 : i32
    %c0_i32_0 = arith.constant 0 : i32
    %c0_i32_1 = arith.constant 0 : i32
    return %c0_i32, %c0_i32_0 : i32, i32
  }
  func.func @transform_4(%arg0: i32, %arg1: i32) -> (i32, i32) {
    %c0_i32 = arith.constant 0 : i32
    return %arg0, %arg1 : i32, i32
  }
  func.func @transform_5(%arg0: i32, %arg1: i32) -> (i32, i32) {
    %c0_i32 = arith.constant 0 : i32
    %c0_i32_0 = arith.constant 0 : i32
    return %arg0, %c0_i32 : i32, i32
  }
}

</mosaic_0001>

<bundles_post_ra>
// kernel: custom-call
= control target key start
LH: loop header
LB: loop body
LE: loop exit
PB: predicated region body
PF: predicated region fallthrough
CT: control target
= control target key end

     0   :  { %s6_s0 = inlined_call_operand.vmem [shape: f32[64], index: 0, kind: output, shape index: {}]  }

// kernel: custom-call.6
= control target key start
LH: loop header
LB: loop body
LE: loop exit
PB: predicated region body
PF: predicated region fallthrough
CT: control target
= control target key end

     0   :  { %s6_s0 = inlined_call_operand.vmem [shape: f32[3,16], index: 0, kind: output, shape index: {}]  }

// kernel: custom-call.7
= control target key start
LH: loop header
LB: loop body
LE: loop exit
PB: predicated region body
PF: predicated region fallthrough
CT: control target
= control target key end

     0   :  { %s6_s0 = inlined_call_operand.vmem [shape: f32[3], index: 0, kind: output, shape index: {}]  }

// kernel: detm_forward.3
= control target key start
LH: loop header
LB: loop body
LE: loop exit
PB: predicated region body
PF: predicated region fallthrough
CT: control target
= control target key end

     0   :  { %s1318_s24 = smov 0   ;;  %s1320_s25 = smov 0   ;;  %s1610_s0 = inlined_call_operand.vmem [shape: f32[32,1536], index: 0, kind: input, shape index: {}]   ;;  %s1611_s1 = inlined_call_operand.vmem [shape: f32[1536,128], index: 1, kind: input, shape index: {}]   ;;  %s1612_s2 = inlined_call_operand.vmem [shape: f32[1,128], index: 2, kind: input, shape index: {}]   ;;  %s1613_s3 = inlined_call_operand.vmem [shape: f32[128,128], index: 3, kind: input, shape index: {}]   ;;  %s1614_s4 = inlined_call_operand.vmem [shape: f32[1,128], index: 4, kind: input, shape index: {}]   ;;  %s1615_s5 = inlined_call_operand.vmem [shape: f32[128,32], index: 5, kind: input, shape index: {}]   ;;  %s1616_s6 = inlined_call_operand.vmem [shape: f32[1,32], index: 6, kind: input, shape index: {}]   ;;  %s1617_s7 = inlined_call_operand.vmem [shape: f32[32,32], index: 7, kind: output, shape index: {}]  }
   0x1   :  { %s1322_s26 = smov 0   ;;  %s1324_s27 = smov 0  }
   0x2   :  { %s1326_s28 = smov 0  }
   0x3 LB: > { %s26_s29 = sadd.s32 1, %s1271_s27  ;;  %p45_p1 = scmp.ne.s32.totalorder %s1263_s25, %s1259_s24  ;;  %s1275_s28 = sphi %s1326_s28, %s17_s28   ;;  %s1271_s27 = sphi %s1324_s27, %s1621_s27   ;;  %s1267_s26 = sphi %s1322_s26, %s1620_s26   ;;  %s1263_s25 = sphi %s1320_s25, %s1619_s25   ;;  %s1259_s24 = sphi %s1318_s24, %s1618_s24  }
   0x4   : > { %p27_p0 = scmp.ge.s32.totalorder %s26_s29, 3  ;;  %p46_p2 = scmp.eq.s32.totalorder %s1275_s28, 0 }
   0x5   : > { %s38_s8 = sadd.s32 1, %s1263_s25  ;;  %p974_p5 = scmp.ge.s32.totalorder %s1275_s28, 3 }
   0x6   : > { %s1623_s29 = smov (%p27_p0, %s26_s29), 0  ;;  %p47_p3 = por %p46_p2, %p45_p1 }
   0x7   : > { %s34_s30 = ssub.s32 %s1271_s27, %s1623_s29  ;;  %243 = sbr.rel (%p974_p5) target bundleno = 24 (0x18), region = 36 }
   0x8   : > { %p36_p4 = scmp.eq.s32.totalorder %s34_s30, 0 }
   0xa   : > { %s1353_s9 = scalar_select %p36_p4, %s1263_s25, %s38_s8  }
   0xc   : > { %246 = sbr.rel (!%p47_p3) target bundleno = 24 (0x18), region = 40  ;;  %s248_s10 = sand.u32 (%p47_p3), 1, %s1263_s25  }
   0xd   : > { %s991_s11 = sshll.u32 (%p47_p3), %s1271_s27, 5  ;;  %s975_s12 = sshll.u32 (%p47_p3), %s248_s10, 7 }
   0xe   : > { %s1361_s15 = scalar_lea.vmem (%p47_p3), %s1610_s0, %s991_s11  ;;  %s250_s16 = scalar_lea.vmem (%p47_p3), [#allocation3], %s975_s12 }
   0xf   : > { %v269_v0 = vld [vmem:[%s1361_s15] sm:$0xff] (%p47_p3)  ;;  %v271_v1 = vld [vmem:[%s1361_s15 + $0x8] sm:$0xff] (%p47_p3)  ;;  %v273_v2 = vld [vmem:[%s1361_s15 + $0x10] sm:$0xff] (%p47_p3) }
  0x10   : > { %270 = vst [vmem:[%s250_s16] sm:$0xff] (%p47_p3), %v269_v0  ;;  %272 = vst [vmem:[%s250_s16 + $0x8] sm:$0xff] (%p47_p3), %v271_v1  ;;  %v275_v3 = vld [vmem:[%s1361_s15 + $0x18] sm:$0xff] (%p47_p3)  ;;  %v277_v4 = vld [vmem:[%s1361_s15 + $0x60] sm:$0xff] (%p47_p3) }
  0x11   : > { %274 = vst [vmem:[%s250_s16 + $0x10] sm:$0xff] %v273_v2  ;;  %v279_v5 = vld [vmem:[%s1361_s15 + $0x68] sm:$0xff]  ;;  %276 = vst [vmem:[%s250_s16 + $0x18] sm:$0xff] %v275_v3  ;;  %v281_v6 = vld [vmem:[%s1361_s15 + $0x70] sm:$0xff] }
  0x12   : > { %278 = vst [vmem:[%s250_s16 + $0x20] sm:$0xff] %v277_v4  ;;  %280 = vst [vmem:[%s250_s16 + $0x28] sm:$0xff] %v279_v5  ;;  %v283_v7 = vld [vmem:[%s1361_s15 + $0x78] sm:$0xff]  ;;  %v285_v8 = vld [vmem:[%s1361_s15 + $0xc0] sm:$0xff] }
  0x13   : > { %282 = vst [vmem:[%s250_s16 + $0x30] sm:$0xff] %v281_v6  ;;  %284 = vst [vmem:[%s250_s16 + $0x38] sm:$0xff] %v283_v7  ;;  %v287_v9 = vld [vmem:[%s1361_s15 + $0xc8] sm:$0xff]  ;;  %v289_v10 = vld [vmem:[%s1361_s15 + $0xd0] sm:$0xff] }
  0x14   : > { %286 = vst [vmem:[%s250_s16 + $0x40] sm:$0xff] %v285_v8  ;;  %v291_v11 = vld [vmem:[%s1361_s15 + $0xd8] sm:$0xff]  ;;  %288 = vst [vmem:[%s250_s16 + $0x48] sm:$0xff] %v287_v9  ;;  %v293_v12 = vld [vmem:[%s1361_s15 + $0x120] sm:$0xff] }
  0x15   : > { %290 = vst [vmem:[%s250_s16 + $0x50] sm:$0xff] %v289_v10  ;;  %292 = vst [vmem:[%s250_s16 + $0x58] sm:$0xff] %v291_v11  ;;  %v295_v13 = vld [vmem:[%s1361_s15 + $0x128] sm:$0xff]  ;;  %v297_v14 = vld [vmem:[%s1361_s15 + $0x130] sm:$0xff] }
  0x16   : > { %294 = vst [vmem:[%s250_s16 + $0x60] sm:$0xff] %v293_v12  ;;  %296 = vst [vmem:[%s250_s16 + $0x68] sm:$0xff] %v295_v13  ;;  %v299_v15 = vld [vmem:[%s1361_s15 + $0x138] sm:$0xff] }
  0x17   : > { %298 = vst [vmem:[%s250_s16 + $0x70] sm:$0xff] %v297_v14  ;;  %300 = vst [vmem:[%s250_s16 + $0x78] sm:$0xff] %v299_v15 }
  0x18 PF: > { %p978_p6 = scmp.ge.s32.totalorder %s1275_s28, 1  ;;  %p314_p7 = scmp.lt.s32.totalorder %s1275_s28, 4 }
  0x1a   : > { %p315_p8 = pnand %p978_p6, %p314_p7 }
  0x1b   : > { %s321_s17 = sand.u32 (!%p315_p8), 1, %s1259_s24   ;;  %s980_s18 = sshll.u32 (!%p315_p8), %s1267_s26, 6 }
  0x1c   : > { %318 = sbr.rel (%p315_p8) target bundleno = 726 (0x2d6), region = 67  ;;  %s979_s19 = sshll.u32 (!%p315_p8), %s321_s17, 7 }
  0x1d   : > { %p360_p9 = scmp.lt.s32.totalorder (!%p315_p8), %s980_s18, 191  ;;  %s1388_s30 = scalar_lea.vmem (!%p315_p8), [#allocation3], %s979_s19 }
  0x1e   : > { %p982_p10 = scmp.ne.s32.totalorder (!%p315_p8), %s1267_s26, 0 }
  0x21   : > { %s1625_s18 = smov (!%p360_p9, %s980_s18), 191  ;;  %374 = sbr.rel (%p982_p10) target bundleno = 41 (0x29), region = 75 }
  0x22   : > { %s981_s20 = sshll.u32 %s1625_s18, 3 }
  0x23   : > { %s1386_s23 = scalar_lea.vmem %s1611_s1, %s981_s20 }
  0x26   : > { %v1277_v16 = vmov 0.0  }
  0x27   : > { %375 = vst [vmem:[#allocation2 + $0x10] sm:$0xff] %v1277_v16  ;;  %376 = vst [vmem:[#allocation2] sm:$0xff] %v1277_v16 }
  0x28   : > { %377 = vst [vmem:[#allocation2 + $0x18] sm:$0xff] %v1277_v16  ;;  %378 = vst [vmem:[#allocation2 + $0x8] sm:$0xff] %v1277_v16 }
  0x29 PF: > { %v430_v17 = vld [vmem:[%s1386_s23 + $0xf8] sm:$0xff]  ;;  %v429_v21 = vld [vmem:[%s1386_s23 + $0xf0] sm:$0xff]  ;;  %v428_v25 = vld [vmem:[%s1386_s23 + $0xe8] sm:$0xff]  ;;  %p983_p11 = scmp.ne.s32.totalorder %s1267_s26, 2 }
  0x2a   : > { %v462_v18 = vld [vmem:[%s1386_s23 + $0x1f8] sm:$0xff]  ;;  %992 = vmatprep.subr.mxu0 %v430_v17  ;;  %v461_v22 = vld [vmem:[%s1386_s23 + $0x1f0] sm:$0xff]  ;;  %v460_v26 = vld [vmem:[%s1386_s23 + $0x1e8] sm:$0xff] }
  0x2b   : > { %v414_v19 = vld [vmem:[%s1386_s23 + $0x78] sm:$0xff]  ;;  %1036 = vmatprep.subr.mxu1 %v462_v18  ;;  %v413_v23 = vld [vmem:[%s1386_s23 + $0x70] sm:$0xff]  ;;  %v412_v27 = vld [vmem:[%s1386_s23 + $0x68] sm:$0xff] }
  0x2c   : > { %v446_v20 = vld [vmem:[%s1386_s23 + $0x178] sm:$0xff]  ;;  %993 = vmatpush3.msra.mxu0 %v414_v19  ;;  %v445_v24 = vld [vmem:[%s1386_s23 + $0x170] sm:$0xff]  ;;  %v444_v28 = vld [vmem:[%s1386_s23 + $0x168] sm:$0xff] }
  0x2d   : > { %1037 = vmatpush3.msra.mxu1 %v446_v20  ;;  %994 = vmatprep.subr.mxu0 %v429_v21  ;;  %v427_v29 = vld [vmem:[%s1386_s23 + $0xe0] sm:$0xff]  ;;  %v426_v33 = vld [vmem:[%s1386_s23 + $0xd8] sm:$0xff]  ;;  %v425_v37 = vld [vmem:[%s1386_s23 + $0xd0] sm:$0xff] }
  0x2e   : > { %1038 = vmatprep.subr.mxu1 %v461_v22  ;;  %995 = vmatpush3.msra.mxu0 %v413_v23  ;;  %v459_v30 = vld [vmem:[%s1386_s23 + $0x1e0] sm:$0xff]  ;;  %v458_v34 = vld [vmem:[%s1386_s23 + $0x1d8] sm:$0xff]  ;;  %v457_v38 = vld [vmem:[%s1386_s23 + $0x1d0] sm:$0xff] }
  0x2f   : > { %1039 = vmatpush3.msra.mxu1 %v445_v24  ;;  %996 = vmatprep.subr.mxu0 %v428_v25  ;;  %v411_v31 = vld [vmem:[%s1386_s23 + $0x60] sm:$0xff]  ;;  %v410_v35 = vld [vmem:[%s1386_s23 + $0x58] sm:$0xff]  ;;  %v409_v39 = vld [vmem:[%s1386_s23 + $0x50] sm:$0xff] }
  0x30   : > { %1040 = vmatprep.subr.mxu1 %v460_v26  ;;  %v443_v32 = vld [vmem:[%s1386_s23 + $0x160] sm:$0xff]  ;;  %997 = vmatpush3.msra.mxu0 %v412_v27  ;;  %v442_v36 = vld [vmem:[%s1386_s23 + $0x158] sm:$0xff]  ;;  %v441_v40 = vld [vmem:[%s1386_s23 + $0x150] sm:$0xff] }
  0x31   : > { %1041 = vmatpush3.msra.mxu1 %v444_v28  ;;  %998 = vmatprep.subr.mxu0 %v427_v29  ;;  %v424_v41 = vld [vmem:[%s1386_s23 + $0xc8] sm:$0xff]  ;;  %v423_v45 = vld [vmem:[%s1386_s23 + $0xc0] sm:$0xff]  ;;  %v422_v49 = vld [vmem:[%s1386_s23 + $0xb8] sm:$0xff] }
  0x32   : > { %1042 = vmatprep.subr.mxu1 %v459_v30  ;;  %999 = vmatpush3.msra.mxu0 %v411_v31  ;;  %v456_v42 = vld [vmem:[%s1386_s23 + $0x1c8] sm:$0xff]  ;;  %v455_v46 = vld [vmem:[%s1386_s23 + $0x1c0] sm:$0xff]  ;;  %v454_v50 = vld [vmem:[%s1386_s23 + $0x1b8] sm:$0xff] }
  0x33   : > { %1043 = vmatpush3.msra.mxu1 %v443_v32  ;;  %1000 = vmatprep.subr.mxu0 %v426_v33  ;;  %v408_v43 = vld [vmem:[%s1386_s23 + $0x48] sm:$0xff]  ;;  %v407_v47 = vld [vmem:[%s1386_s23 + $0x40] sm:$0xff]  ;;  %v406_v51 = vld [vmem:[%s1386_s23 + $0x38] sm:$0xff] }
  0x34   : > { %1044 = vmatprep.subr.mxu1 %v458_v34  ;;  %1001 = vmatpush3.msra.mxu0 %v410_v35  ;;  %v440_v44 = vld [vmem:[%s1386_s23 + $0x148] sm:$0xff]  ;;  %v439_v48 = vld [vmem:[%s1386_s23 + $0x140] sm:$0xff]  ;;  %v438_v52 = vld [vmem:[%s1386_s23 + $0x138] sm:$0xff] }
  0x35   : > { %1045 = vmatpush3.msra.mxu1 %v442_v36  ;;  %1002 = vmatprep.subr.mxu0 %v425_v37  ;;  %v421_v53 = vld [vmem:[%s1386_s23 + $0xb0] sm:$0xff]  ;;  %v420_v57 = vld [vmem:[%s1386_s23 + $0xa8] sm:$0xff]  ;;  %v419_v61 = vld [vmem:[%s1386_s23 + $0xa0] sm:$0xff] }
  0x36   : > { %1046 = vmatprep.subr.mxu1 %v457_v38  ;;  %1003 = vmatpush3.msra.mxu0 %v409_v39  ;;  %v453_v54 = vld [vmem:[%s1386_s23 + $0x1b0] sm:$0xff]  ;;  %v452_v58 = vld [vmem:[%s1386_s23 + $0x1a8] sm:$0xff]  ;;  %v451_v62 = vld [vmem:[%s1386_s23 + $0x1a0] sm:$0xff] }
  0x37   : > { %1047 = vmatpush3.msra.mxu1 %v441_v40  ;;  %1004 = vmatprep.subr.mxu0 %v424_v41  ;;  %v405_v55 = vld [vmem:[%s1386_s23 + $0x30] sm:$0xff]  ;;  %v404_v59 = vld [vmem:[%s1386_s23 + $0x28] sm:$0xff]  ;;  %v403_v63 = vld [vmem:[%s1386_s23 + $0x20] sm:$0xff] }
  0x38   : > { %1048 = vmatprep.subr.mxu1 %v456_v42  ;;  %1005 = vmatpush3.msra.mxu0 %v408_v43  ;;  %v437_v56 = vld [vmem:[%s1386_s23 + $0x130] sm:$0xff]  ;;  %v436_v60 = vld [vmem:[%s1386_s23 + $0x128] sm:$0xff]  ;;  %v435_v0 = vld [vmem:[%s1386_s23 + $0x120] sm:$0xff] }
  0x39   : > { %1049 = vmatpush3.msra.mxu1 %v440_v44  ;;  %1006 = vmatprep.subr.mxu0 %v423_v45  ;;  %v418_v1 = vld [vmem:[%s1386_s23 + $0x98] sm:$0xff]  ;;  %v417_v5 = vld [vmem:[%s1386_s23 + $0x90] sm:$0xff]  ;;  %v416_v9 = vld [vmem:[%s1386_s23 + $0x88] sm:$0xff] }
  0x3a   : > { %1050 = vmatprep.subr.mxu1 %v455_v46  ;;  %1007 = vmatpush3.msra.mxu0 %v407_v47  ;;  %v450_v2 = vld [vmem:[%s1386_s23 + $0x198] sm:$0xff]  ;;  %v449_v6 = vld [vmem:[%s1386_s23 + $0x190] sm:$0xff]  ;;  %v448_v10 = vld [vmem:[%s1386_s23 + $0x188] sm:$0xff] }
  0x3b   : > { %1051 = vmatpush3.msra.mxu1 %v439_v48  ;;  %1008 = vmatprep.subr.mxu0 %v422_v49  ;;  %v402_v3 = vld [vmem:[%s1386_s23 + $0x18] sm:$0xff]  ;;  %v401_v7 = vld [vmem:[%s1386_s23 + $0x10] sm:$0xff]  ;;  %v400_v11 = vld [vmem:[%s1386_s23 + $0x8] sm:$0xff] }
  0x3c   : > { %1052 = vmatprep.subr.mxu1 %v454_v50  ;;  %1009 = vmatpush3.msra.mxu0 %v406_v51  ;;  %v434_v4 = vld [vmem:[%s1386_s23 + $0x118] sm:$0xff]  ;;  %v433_v8 = vld [vmem:[%s1386_s23 + $0x110] sm:$0xff]  ;;  %v432_v12 = vld [vmem:[%s1386_s23 + $0x108] sm:$0xff] }
  0x3d   : > { %1053 = vmatpush3.msra.mxu1 %v438_v52  ;;  %1010 = vmatprep.subr.mxu0 %v421_v53  ;;  %v415_v13 = vld [vmem:[%s1386_s23 + $0x80] sm:$0xff]  ;;  %v384_v16 = vld [vmem:[%s1388_s30 + $0x8] sm:$0xff]  ;;  %v386_v18 = vld [vmem:[%s1388_s30 + $0x18] sm:$0xff] }
  0x3e   : > { %1054 = vmatprep.subr.mxu1 %v453_v54  ;;  %1011 = vmatpush3.msra.mxu0 %v405_v55  ;;  %v447_v14 = vld [vmem:[%s1386_s23 + $0x180] sm:$0xff]  ;;  %v385_v20 = vld [vmem:[%s1388_s30 + $0x10] sm:$0xff]  ;;  %v388_v21 = vld [vmem:[%s1388_s30 + $0x28] sm:$0xff] }
  0x3f   : > { %1055 = vmatpush3.msra.mxu1 %v437_v56  ;;  %1012 = vmatprep.subr.mxu0 %v420_v57  ;;  %v399_v15 = vld [vmem:[%s1386_s23] sm:$0xff]  ;;  %v390_v22 = vld [vmem:[%s1388_s30 + $0x38] sm:$0xff]  ;;  %v389_v24 = vld [vmem:[%s1388_s30 + $0x30] sm:$0xff] }
  0x40   : > { %1056 = vmatprep.subr.mxu1 %v452_v58  ;;  %1013 = vmatpush3.msra.mxu0 %v404_v59  ;;  %v431_v17 = vld [vmem:[%s1386_s23 + $0x100] sm:$0xff]  ;;  %v392_v25 = vld [vmem:[%s1388_s30 + $0x48] sm:$0xff]  ;;  %v394_v26 = vld [vmem:[%s1388_s30 + $0x58] sm:$0xff] }
  0x41   : > { %1057 = vmatpush3.msra.mxu1 %v436_v60  ;;  %1014 = vmatprep.subr.mxu0 %v419_v61  ;;  %v383_v19 = vld [vmem:[%s1388_s30] sm:$0xff]  ;;  %v393_v28 = vld [vmem:[%s1388_s30 + $0x50] sm:$0xff]  ;;  %v396_v29 = vld [vmem:[%s1388_s30 + $0x68] sm:$0xff] }
  0x42   : > { %1058 = vmatprep.subr.mxu1 %v451_v62  ;;  %1015 = vmatpush3.msra.mxu0 %v403_v63  ;;  %v387_v23 = vld [vmem:[%s1388_s30 + $0x20] sm:$0xff]  ;;  %v398_v30 = vld [vmem:[%s1388_s30 + $0x78] sm:$0xff]  ;;  %v397_v32 = vld [vmem:[%s1388_s30 + $0x70] sm:$0xff] }
  0x43   : > { %1059 = vmatpush3.msra.mxu1 %v435_v0  ;;  %1016 = vmatprep.subr.mxu0 %v418_v1  ;;  %v391_v27 = vld [vmem:[%s1388_s30 + $0x40] sm:$0xff]  ;;  %v379_v39 = vld [vmem:[#allocation2 + $0x10] sm:$0xff]  ;;  %v381_v57 = vld [vmem:[#allocation2 + $0x18] sm:$0xff] }
  0x44   : > { %1060 = vmatprep.subr.mxu1 %v450_v2  ;;  %1017 = vmatpush3.msra.mxu0 %v402_v3  ;;  %v395_v31 = vld [vmem:[%s1388_s30 + $0x60] sm:$0xff]  ;;  %v382_v2 = vld [vmem:[#allocation2 + $0x8] sm:$0xff] }
  0x45   : > { %1061 = vmatpush3.msra.mxu1 %v434_v4  ;;  %1018 = vmatprep.subr.mxu0 %v417_v5  ;;  %v380_v48 = vld [vmem:[#allocation2] sm:$0xff] }
  0x46   : > { %1062 = vmatprep.subr.mxu1 %v449_v6  ;;  %1019 = vmatpush3.msra.mxu0 %v401_v7 }
  0x47   : > { %1063 = vmatpush3.msra.mxu1 %v433_v8  ;;  %1020 = vmatprep.subr.mxu0 %v416_v9 }
  0x48   : > { %1064 = vmatprep.subr.mxu1 %v448_v10  ;;  %1021 = vmatpush3.msra.mxu0 %v400_v11 }
  0x49   : > { %1065 = vmatpush3.msra.mxu1 %v432_v12  ;;  %1022 = vmatprep.subr.mxu0 %v415_v13 }
  0x4a   : > { %1066 = vmatprep.subr.mxu1 %v447_v14  ;;  %1023 = vmatpush3.msra.mxu0 %v399_v15 }
  0x4b   : > { %527 = vmatprep.mubr.f32.mxu0 %v384_v16  ;;  %1067 = vmatpush3.msra.mxu1 %v431_v17 }
  0x4c   : > { %612 = vmatprep.mubr.f32.mxu1 %v386_v18  ;;  %528 = vmatmul.mubr.f32.vlgmr.msra.gmra.mxu0 %v383_v19 }
  0x4d   : > { %613 = vmatmul.mubr.f32.vlgmr.msra.gmra.mxu1 %v385_v20  ;;  %532 = vmatprep.mubr.f32.mxu0 %v388_v21 }
  0x4e   : > { %617 = vmatprep.mubr.f32.mxu1 %v390_v22 }
  0x50   : > { %533 = vmatmul.mubr.f32.gmra.mxu0 %v387_v23 }
  0x51   : > { %618 = vmatmul.mubr.f32.gmra.mxu1 %v389_v24  ;;  %537 = vmatprep.mubr.f32.mxu0 %v392_v25 }
  0x52   : > { %622 = vmatprep.mubr.f32.mxu1 %v394_v26 }
  0x54   : > { %538 = vmatmul.mubr.f32.gmra.mxu0 %v391_v27 }
  0x55   : > { %623 = vmatmul.mubr.f32.gmra.mxu1 %v393_v28  ;;  %542 = vmatprep.mubr.f32.mxu0 %v396_v29 }
  0x56   : > { %627 = vmatprep.mubr.f32.mxu1 %v398_v30 }
  0x58   : > { %543 = vmatmul.mubr.f32.gmra.mxu0 %v395_v31 }
  0x59   : > { %628 = vmatmul.mubr.f32.gmra.mxu1 %v397_v32 }
 0x10c   : > { %v1024_v33 = vpop.f32.mrf.mxu0 }
 0x10d   : > { %v1068_v34 = vpop.f32.mrf.mxu1 }
 0x10e   : > { %v1025_v35 = vpop.f32.mrf.mxu0 }
 0x10f   : > { %v1069_v36 = vpop.f32.mrf.mxu1  ;;  %v1026_v37 = vadd.f32 %v1025_v35, %v1024_v33 }
 0x110   : > { %v1070_v38 = vadd.f32 %v1069_v36, %v1068_v34  ;;  %v1027_v40 = vpop.f32.mrf.mxu0 }
 0x111   : > { %v1071_v41 = vpop.f32.mrf.mxu1 }
 0x112   : > { %v615_v42 = vadd.f32 %v1070_v38, %v1026_v37  ;;  %v1028_v43 = vpop.f32.mrf.mxu0 }
 0x113   : > { %v1072_v44 = vpop.f32.mrf.mxu1  ;;  %v1029_v46 = vadd.f32 %v1028_v43, %v1027_v40 }
 0x114   : > { %v633_v45 = vadd.f32 %v615_v42, %v379_v39  ;;  %v1073_v47 = vadd.f32 %v1072_v44, %v1071_v41  ;;  %v1030_v49 = vpop.f32.mrf.mxu0 }
 0x115   : > { %v1074_v50 = vpop.f32.mrf.mxu1 }
 0x116   : > { %637 = vst [vmem:[#allocation2 + $0x10] sm:$0xff] %v633_v45  ;;  %v620_v51 = vadd.f32 %v1073_v47, %v1029_v46  ;;  %v1031_v52 = vpop.f32.mrf.mxu0 }
 0x117   : > { %v1075_v53 = vpop.f32.mrf.mxu1  ;;  %v1032_v55 = vadd.f32 %v1031_v52, %v1030_v49 }
 0x118   : > { %v634_v54 = vadd.f32 %v620_v51, %v380_v48  ;;  %v1076_v56 = vadd.f32 %v1075_v53, %v1074_v50  ;;  %v1033_v58 = vpop.f32.mrf.mxu0 }
 0x119   : > { %v1077_v59 = vpop.f32.mrf.mxu1 }
 0x11a   : > { %638 = vst [vmem:[#allocation2] sm:$0xff] %v634_v54  ;;  %v625_v60 = vadd.f32 %v1076_v56, %v1032_v55  ;;  %v1034_v61 = vpop.f32.mrf.mxu0 }
 0x11b   : > { %v1078_v62 = vpop.f32.mrf.mxu1  ;;  %v1035_v0 = vadd.f32 %v1034_v61, %v1033_v58 }
 0x11c   : > { %v635_v63 = vadd.f32 %v625_v60, %v381_v57  ;;  %v1079_v1 = vadd.f32 %v1078_v62, %v1077_v59 }
 0x11e   : > { %639 = vst [vmem:[#allocation2 + $0x18] sm:$0xff] %v635_v63  ;;  %v630_v3 = vadd.f32 %v1079_v1, %v1035_v0  ;;  %644 = sbr.rel (%p983_p11) target bundleno = 726 (0x2d6), region = 79 }
 0x120   : > { %v636_v4 = vadd.f32 %v630_v3, %v382_v2 }
 0x122   : > { %640 = vst [vmem:[#allocation2 + $0x8] sm:$0xff] %v636_v4 }
 0x123   : > { %v679_v5 = vld [vmem:[%s1613_s3 + $0x78] sm:$0xff]  ;;  %v678_v6 = vld [vmem:[%s1613_s3 + $0x70] sm:$0xff]  ;;  %v677_v7 = vld [vmem:[%s1613_s3 + $0x68] sm:$0xff]  ;;  %vm884_vm0 = vcmask 261120  }
 0x124   : > { %1120 = vmatprep.subr.mxu0 %v679_v5  ;;  %v676_v8 = vld [vmem:[%s1613_s3 + $0x60] sm:$0xff]  ;;  %v645_v9 = vld [vmem:[#allocation2 + $0x10] sm:$0xff]  ;;  %v675_v11 = vld [vmem:[%s1613_s3 + $0x58] sm:$0xff] }
 0x125   : > { %1121 = vmatpush3.msra.mxu0 %v679_v5  ;;  %v1487_v10 = vld [vmem:[%s1612_s2] ss:$0 sm:$0xff]  ;;  %v791_v13 = vld [vmem:[%s1615_s5 + $0x78] sm:$0xff]  ;;  %v674_v14 = vld [vmem:[%s1613_s3 + $0x50] sm:$0xff] }
 0x126   : > { %1122 = vmatprep.subr.mxu0 %v678_v6  ;;  %v656_v12 = vadd.f32 %v1487_v10, %v645_v9  ;;  %1158 = vmatprep.subr.mxu1 %v791_v13  ;;  %v790_v16 = vld [vmem:[%s1615_s5 + $0x70] sm:$0xff]  ;;  %v673_v17 = vld [vmem:[%s1613_s3 + $0x48] sm:$0xff]  ;;  %v672_v19 = vld [vmem:[%s1613_s3 + $0x40] sm:$0xff] }
 0x127   : > { %1123 = vmatpush3.msra.mxu0 %v678_v6  ;;  %1159 = vmatpush3.msra.mxu1 %v791_v13  ;;  %v789_v18 = vld [vmem:[%s1615_s5 + $0x68] sm:$0xff]  ;;  %v788_v20 = vld [vmem:[%s1615_s5 + $0x60] sm:$0xff]  ;;  %v671_v21 = vld [vmem:[%s1613_s3 + $0x38] sm:$0xff] }
 0x128   : > { %1124 = vmatprep.subr.mxu0 %v677_v7  ;;  %v660_v15 = vmax.f32 %v656_v12, 0.0  ;;  %1160 = vmatprep.subr.mxu1 %v790_v16  ;;  %v787_v22 = vld [vmem:[%s1615_s5 + $0x58] sm:$0xff]  ;;  %v670_v23 = vld [vmem:[%s1613_s3 + $0x30] sm:$0xff]  ;;  %v669_v25 = vld [vmem:[%s1613_s3 + $0x28] sm:$0xff] }
 0x129   : > { %1125 = vmatpush3.msra.mxu0 %v677_v7  ;;  %1161 = vmatpush3.msra.mxu1 %v790_v16  ;;  %v786_v24 = vld [vmem:[%s1615_s5 + $0x50] sm:$0xff]  ;;  %v785_v26 = vld [vmem:[%s1615_s5 + $0x48] sm:$0xff]  ;;  %v668_v27 = vld [vmem:[%s1613_s3 + $0x20] sm:$0xff] }
 0x12a   : > { %1126 = vmatprep.subr.mxu0 %v676_v8  ;;  %1152 = vmatprep.mubr.f32.mxu0 %v660_v15  ;;  %v784_v28 = vld [vmem:[%s1615_s5 + $0x40] sm:$0xff]  ;;  %v667_v29 = vld [vmem:[%s1613_s3 + $0x18] sm:$0xff]  ;;  %v666_v33 = vld [vmem:[%s1613_s3 + $0x10] sm:$0xff] }
 0x12b   : > { %1127 = vmatpush3.msra.mxu0 %v676_v8  ;;  %1162 = vmatprep.subr.mxu1 %v789_v18  ;;  %v646_v30 = vld [vmem:[#allocation2] sm:$0xff]  ;;  %v783_v31 = vld [vmem:[%s1615_s5 + $0x38] sm:$0xff]  ;;  %v782_v34 = vld [vmem:[%s1615_s5 + $0x30] sm:$0xff] }
 0x12c   : > { %1128 = vmatprep.subr.mxu0 %v675_v11  ;;  %1163 = vmatpush3.msra.mxu1 %v789_v18  ;;  %v647_v32 = vld [vmem:[#allocation2 + $0x18] sm:$0xff]  ;;  %v657_v35 = vadd.f32 %v1487_v10, %v646_v30  ;;  %v665_v36 = vld [vmem:[%s1613_s3 + $0x8] sm:$0xff]  ;;  %v664_v40 = vld [vmem:[%s1613_s3] sm:$0xff] }
 0x12d   : > { %1129 = vmatpush3.msra.mxu0 %v675_v11  ;;  %1164 = vmatprep.subr.mxu1 %v788_v20  ;;  %v658_v37 = vadd.f32 %v1487_v10, %v647_v32  ;;  %v648_v38 = vld [vmem:[#allocation2 + $0x8] sm:$0xff]  ;;  %v780_v41 = vld [vmem:[%s1615_s5 + $0x20] sm:$0xff]  ;;  %v779_v46 = vld [vmem:[%s1615_s5 + $0x18] sm:$0xff] }
 0x12e   : > { %1130 = vmatprep.subr.mxu0 %v674_v14  ;;  %1165 = vmatpush3.msra.mxu1 %v788_v20  ;;  %v781_v39 = vld [vmem:[%s1615_s5 + $0x28] sm:$0xff]  ;;  %v661_v42 = vmax.f32 %v657_v35, 0.0  ;;  %v659_v43 = vadd.f32 %v1487_v10, %v648_v38  ;;  %v778_v47 = vld [vmem:[%s1615_s5 + $0x10] sm:$0xff]  ;;  %v776_v49 = vld [vmem:[%s1615_s5] sm:$0xff] }
 0x12f   : > { %1131 = vmatpush3.msra.mxu0 %v674_v14  ;;  %1166 = vmatprep.subr.mxu1 %v787_v22  ;;  %v662_v44 = vmax.f32 %v658_v37, 0.0  ;;  %v777_v48 = vld [vmem:[%s1615_s5 + $0x8] sm:$0xff]  ;;  %v985_v50 = vld [vmem:[%s1614_s4] ss:$0 sm:$0xff] }
 0x130   : > { %1132 = vmatprep.subr.mxu0 %v673_v17  ;;  %1167 = vmatpush3.msra.mxu1 %v787_v22  ;;  %v663_v45 = vmax.f32 %v659_v43, 0.0  ;;  %v986_v63 = vld [vmem:[%s1616_s6] ss:$0 sm:$0xff] }
 0x131   : > { %1133 = vmatpush3.msra.mxu0 %v673_v17  ;;  %1168 = vmatprep.subr.mxu1 %v786_v24 }
 0x132   : > { %1134 = vmatprep.subr.mxu0 %v672_v19  ;;  %1169 = vmatpush3.msra.mxu1 %v786_v24 }
 0x133   : > { %1135 = vmatpush3.msra.mxu0 %v672_v19  ;;  %1170 = vmatprep.subr.mxu1 %v785_v26 }
 0x134   : > { %1136 = vmatprep.subr.mxu0 %v671_v21  ;;  %1171 = vmatpush3.msra.mxu1 %v785_v26 }
 0x135   : > { %1137 = vmatpush3.msra.mxu0 %v671_v21  ;;  %1172 = vmatprep.subr.mxu1 %v784_v28 }
 0x136   : > { %1138 = vmatprep.subr.mxu0 %v670_v23  ;;  %1173 = vmatpush3.msra.mxu1 %v784_v28 }
 0x137   : > { %1139 = vmatpush3.msra.mxu0 %v670_v23  ;;  %1174 = vmatprep.subr.mxu1 %v783_v31 }
 0x138   : > { %1140 = vmatprep.subr.mxu0 %v669_v25  ;;  %1175 = vmatpush3.msra.mxu1 %v783_v31 }
 0x139   : > { %1141 = vmatpush3.msra.mxu0 %v669_v25  ;;  %1176 = vmatprep.subr.mxu1 %v782_v34 }
 0x13a   : > { %1142 = vmatprep.subr.mxu0 %v668_v27  ;;  %1177 = vmatpush3.msra.mxu1 %v782_v34 }
 0x13b   : > { %1143 = vmatpush3.msra.mxu0 %v668_v27  ;;  %1178 = vmatprep.subr.mxu1 %v781_v39 }
 0x13c   : > { %1144 = vmatprep.subr.mxu0 %v667_v29  ;;  %1179 = vmatpush3.msra.mxu1 %v781_v39 }
 0x13d   : > { %1145 = vmatpush3.msra.mxu0 %v667_v29  ;;  %1180 = vmatprep.subr.mxu1 %v780_v41 }
 0x13e   : > { %1146 = vmatprep.subr.mxu0 %v666_v33  ;;  %1181 = vmatpush3.msra.mxu1 %v780_v41 }
 0x13f   : > { %1147 = vmatpush3.msra.mxu0 %v666_v33  ;;  %1182 = vmatprep.subr.mxu1 %v779_v46 }
 0x140   : > { %1148 = vmatprep.subr.mxu0 %v665_v36  ;;  %1183 = vmatpush3.msra.mxu1 %v779_v46 }
 0x141   : > { %1149 = vmatpush3.msra.mxu0 %v665_v36  ;;  %1184 = vmatprep.subr.mxu1 %v778_v47 }
 0x142   : > { %1150 = vmatprep.subr.mxu0 %v664_v40  ;;  %1185 = vmatpush3.msra.mxu1 %v778_v47 }
 0x143   : > { %1151 = vmatpush3.msra.mxu0 %v664_v40  ;;  %1186 = vmatprep.subr.mxu1 %v777_v48 }
 0x144   : > { %1153 = vmatmul.mubr.f32.vlgmr.msra.gmra.mxu0 %v661_v42  ;;  %1187 = vmatpush3.msra.mxu1 %v777_v48 }
 0x145   : > { %1155 = vmatprep.mubr.f32.mxu0 %v662_v44  ;;  %1188 = vmatprep.subr.mxu1 %v776_v49 }
 0x146   : > { %1189 = vmatpush3.msra.mxu1 %v776_v49 }
 0x148   : > { %1156 = vmatmul.mubr.f32.gmra.mxu0 %v663_v45 }
 0x204   : > { %v1154_v51 = vpop.f32.mrf.mxu0 }
 0x205   : > { %v759_v52 = vadd.f32 %v1154_v51, %v985_v50 }
 0x206   : > { %v753_v53 = vpop.f32.mrf.mxu0 }
 0x207   : > { %v754_v54 = vadd.f32 %v985_v50, %v753_v53  ;;  %v773_v57 = vmax.f32 %v759_v52, 0.0 }
 0x208   : > { %v1157_v55 = vpop.f32.mrf.mxu0 }
 0x209   : > { %v772_v56 = vmax.f32 %v754_v54, 0.0  ;;  %v769_v58 = vadd.f32 %v1157_v55, %v985_v50 }
 0x20a   : > { %v763_v59 = vpop.f32.mrf.mxu0 }
 0x20b   : > { %v764_v60 = vadd.f32 %v985_v50, %v763_v59  ;;  %1190 = vmatprep.mubr.f32.mxu1 %v772_v56  ;;  %v775_v62 = vmax.f32 %v769_v58, 0.0 }
 0x20c   : > { %1191 = vmatmul.mubr.f32.vlgmr.msra.gmra.mxu1 %v773_v57 }
 0x20d   : > { %v774_v61 = vmax.f32 %v764_v60, 0.0 }
 0x20f   : > { %1193 = vmatprep.mubr.f32.mxu1 %v774_v61 }
 0x210   : > { %1194 = vmatmul.mubr.f32.gmra.mxu1 %v775_v62 }
 0x2cc   : > { %v1192_v0 = vpop.f32.mrf.mxu1 }
 0x2cd   : > { %v871_v1 = vadd.f32 %v1192_v0, %v986_v63 }
 0x2ce   : > { %v865_v2 = vpop.f32.mrf.mxu1 }
 0x2cf   : > { %886 = vst.msk [vmem:[%s1617_s7 + $0x8] sm:$0xff] %vm884_vm0, %v871_v1  ;;  %v866_v3 = vadd.f32 %v986_v63, %v865_v2 }
 0x2d0   : > { %v1195_v4 = vpop.f32.mrf.mxu1 }
 0x2d1   : > { %885 = vst.msk [vmem:[%s1617_s7] sm:$0xff] %vm884_vm0, %v866_v3  ;;  %v881_v5 = vadd.f32 %v1195_v4, %v986_v63 }
 0x2d2   : > { %v875_v6 = vpop.f32.mrf.mxu1 }
 0x2d3   : > { %888 = vst.msk [vmem:[%s1617_s7 + $0x18] sm:$0xff] %vm884_vm0, %v881_v5  ;;  %v876_v7 = vadd.f32 %v986_v63, %v875_v6 }
 0x2d5   : > { %887 = vst.msk [vmem:[%s1617_s7 + $0x10] sm:$0xff] %vm884_vm0, %v876_v7 }
 0x2d6 PF: > { %s17_s28 = sadd.s32 1, %s1275_s28   ;;  %s1618_s24 = smov %s1263_s25 }
 0x2d7   : > { %p14_p12 = scmp.ge.s32.totalorder %s17_s28, 5   ;;  %s1619_s25 = smov %s1353_s9 }
 0x2d8   : > { %s1620_s26 = smov %s1271_s27  ;;  %s1621_s27 = smov %s1623_s29 }
 0x2d9   :  { %16 = sbr.rel (!%p14_p12) target bundleno = 3 (0x3), region = 117 }

// kernel: detm_forward.4
= control target key start
LH: loop header
LB: loop body
LE: loop exit
PB: predicated region body
PF: predicated region fallthrough
CT: control target
= control target key end

     0   :  { %s1120_s12 = smov 0   ;;  %s1122_s13 = smov 0   ;;  %s1805_s0 = inlined_call_operand.vmem [shape: f32[64,64], index: 0, kind: input, shape index: {}]   ;;  %s1806_s1 = inlined_call_operand.vmem [shape: f32[64,1536], index: 1, kind: input, shape index: {}]   ;;  %s1807_s2 = inlined_call_operand.vmem [shape: f32[64,1], index: 2, kind: output, shape index: {0}]   ;;  %s1808_s3 = inlined_call_operand.vmem [shape: f32[64,1], index: 3, kind: output, shape index: {1}]  }
   0x1   :  { %s1124_s14 = smov 0  }
   0x2 LB: > { %s933_s15 = sadd.s32 4294967295, %s1094_s14   ;;  %s1137_s16 = sadd.s32 1, %s1094_s14   ;;  %s1094_s14 = sphi %s1124_s14, %s1817_s14   ;;  %s1090_s13 = sphi %s1122_s13, %s1816_s13   ;;  %s1086_s12 = sphi %s1120_s12, %s1815_s12  }
   0x3   : > { %s39_s17 = ssub.s32 %s1094_s14, %s1137_s16  ;;  %s42_s18 = sadd.s32 1, %s1090_s13 }
   0x4   : > { %p40_p0 = scmp.eq.s32.totalorder %s39_s17, 0  ;;  %p49_p1 = scmp.ne.s32.totalorder %s1090_s13, %s1086_s12 }
   0x5   : > { %p50_p2 = scmp.eq.s32.totalorder %s1094_s14, 0  ;;  %p935_p4 = scmp.ge.s32.totalorder %s1094_s14, 3 }
   0x6   : > { %s1146_s19 = scalar_select %p40_p0, %s1090_s13, %s42_s18  }
   0x7   : > { %p51_p3 = por %p50_p2, %p49_p1  ;;  %120 = sbr.rel (%p935_p4) target bundleno = 32 (0x20), region = 20 }
   0xc   : > { %123 = sbr.rel (!%p51_p3) target bundleno = 32 (0x20), region = 24  ;;  %s125_s20 = sand.u32 (%p51_p3), 1, %s1090_s13  }
   0xd   : > { %s961_s21 = sshll.u32 (%p51_p3), %s1094_s14, 5  ;;  %s936_s22 = sshll.u32 (%p51_p3), %s125_s20, 8 }
   0xe   : > { %s1154_s25 = scalar_lea.vmem (%p51_p3), %s1806_s1, %s961_s21  ;;  %s1159_s26 = scalar_lea.vmem (%p51_p3), [#allocation2], %s936_s22 }
   0xf   : > { %v143_v0 = vld [vmem:[%s1154_s25] sm:$0xff] (%p51_p3)  ;;  %v145_v1 = vld [vmem:[%s1154_s25 + $0x8] sm:$0xff] (%p51_p3)  ;;  %v147_v2 = vld [vmem:[%s1154_s25 + $0x10] sm:$0xff] (%p51_p3) }
  0x10   : > { %144 = vst [vmem:[%s1159_s26] sm:$0xff] (%p51_p3), %v143_v0  ;;  %146 = vst [vmem:[%s1159_s26 + $0x8] sm:$0xff] (%p51_p3), %v145_v1  ;;  %v149_v3 = vld [vmem:[%s1154_s25 + $0x18] sm:$0xff] (%p51_p3)  ;;  %v151_v4 = vld [vmem:[%s1154_s25 + $0x60] sm:$0xff] (%p51_p3) }
  0x11   : > { %148 = vst [vmem:[%s1159_s26 + $0x10] sm:$0xff] %v147_v2  ;;  %v153_v5 = vld [vmem:[%s1154_s25 + $0x68] sm:$0xff]  ;;  %150 = vst [vmem:[%s1159_s26 + $0x18] sm:$0xff] %v149_v3  ;;  %v155_v6 = vld [vmem:[%s1154_s25 + $0x70] sm:$0xff] }
  0x12   : > { %152 = vst [vmem:[%s1159_s26 + $0x20] sm:$0xff] %v151_v4  ;;  %154 = vst [vmem:[%s1159_s26 + $0x28] sm:$0xff] %v153_v5  ;;  %v157_v7 = vld [vmem:[%s1154_s25 + $0x78] sm:$0xff]  ;;  %v159_v8 = vld [vmem:[%s1154_s25 + $0xc0] sm:$0xff] }
  0x13   : > { %156 = vst [vmem:[%s1159_s26 + $0x30] sm:$0xff] %v155_v6  ;;  %158 = vst [vmem:[%s1159_s26 + $0x38] sm:$0xff] %v157_v7  ;;  %v161_v9 = vld [vmem:[%s1154_s25 + $0xc8] sm:$0xff]  ;;  %v163_v10 = vld [vmem:[%s1154_s25 + $0xd0] sm:$0xff] }
  0x14   : > { %160 = vst [vmem:[%s1159_s26 + $0x40] sm:$0xff] %v159_v8  ;;  %v165_v11 = vld [vmem:[%s1154_s25 + $0xd8] sm:$0xff]  ;;  %162 = vst [vmem:[%s1159_s26 + $0x48] sm:$0xff] %v161_v9  ;;  %v167_v12 = vld [vmem:[%s1154_s25 + $0x120] sm:$0xff] }
  0x15   : > { %164 = vst [vmem:[%s1159_s26 + $0x50] sm:$0xff] %v163_v10  ;;  %166 = vst [vmem:[%s1159_s26 + $0x58] sm:$0xff] %v165_v11  ;;  %v169_v13 = vld [vmem:[%s1154_s25 + $0x128] sm:$0xff]  ;;  %v171_v14 = vld [vmem:[%s1154_s25 + $0x130] sm:$0xff] }
  0x16   : > { %168 = vst [vmem:[%s1159_s26 + $0x60] sm:$0xff] %v167_v12  ;;  %170 = vst [vmem:[%s1159_s26 + $0x68] sm:$0xff] %v169_v13  ;;  %v173_v15 = vld [vmem:[%s1154_s25 + $0x138] sm:$0xff]  ;;  %v175_v16 = vld [vmem:[%s1154_s25 + $0x180] sm:$0xff] }
  0x17   : > { %172 = vst [vmem:[%s1159_s26 + $0x70] sm:$0xff] %v171_v14  ;;  %v177_v17 = vld [vmem:[%s1154_s25 + $0x188] sm:$0xff]  ;;  %174 = vst [vmem:[%s1159_s26 + $0x78] sm:$0xff] %v173_v15  ;;  %v179_v18 = vld [vmem:[%s1154_s25 + $0x190] sm:$0xff] }
  0x18   : > { %176 = vst [vmem:[%s1159_s26 + $0x80] sm:$0xff] %v175_v16  ;;  %178 = vst [vmem:[%s1159_s26 + $0x88] sm:$0xff] %v177_v17  ;;  %v181_v19 = vld [vmem:[%s1154_s25 + $0x198] sm:$0xff]  ;;  %v183_v20 = vld [vmem:[%s1154_s25 + $0x1e0] sm:$0xff] }
  0x19   : > { %180 = vst [vmem:[%s1159_s26 + $0x90] sm:$0xff] %v179_v18  ;;  %182 = vst [vmem:[%s1159_s26 + $0x98] sm:$0xff] %v181_v19  ;;  %v185_v21 = vld [vmem:[%s1154_s25 + $0x1e8] sm:$0xff]  ;;  %v187_v22 = vld [vmem:[%s1154_s25 + $0x1f0] sm:$0xff] }
  0x1a   : > { %184 = vst [vmem:[%s1159_s26 + $0xa0] sm:$0xff] %v183_v20  ;;  %v189_v23 = vld [vmem:[%s1154_s25 + $0x1f8] sm:$0xff]  ;;  %186 = vst [vmem:[%s1159_s26 + $0xa8] sm:$0xff] %v185_v21  ;;  %v191_v24 = vld [vmem:[%s1154_s25 + $0x240] sm:$0xff] }
  0x1b   : > { %188 = vst [vmem:[%s1159_s26 + $0xb0] sm:$0xff] %v187_v22  ;;  %190 = vst [vmem:[%s1159_s26 + $0xb8] sm:$0xff] %v189_v23  ;;  %v193_v25 = vld [vmem:[%s1154_s25 + $0x248] sm:$0xff]  ;;  %v195_v26 = vld [vmem:[%s1154_s25 + $0x250] sm:$0xff] }
  0x1c   : > { %192 = vst [vmem:[%s1159_s26 + $0xc0] sm:$0xff] %v191_v24  ;;  %194 = vst [vmem:[%s1159_s26 + $0xc8] sm:$0xff] %v193_v25  ;;  %v197_v27 = vld [vmem:[%s1154_s25 + $0x258] sm:$0xff]  ;;  %v199_v28 = vld [vmem:[%s1154_s25 + $0x2a0] sm:$0xff] }
  0x1d   : > { %196 = vst [vmem:[%s1159_s26 + $0xd0] sm:$0xff] %v195_v26  ;;  %v201_v29 = vld [vmem:[%s1154_s25 + $0x2a8] sm:$0xff]  ;;  %198 = vst [vmem:[%s1159_s26 + $0xd8] sm:$0xff] %v197_v27  ;;  %v203_v30 = vld [vmem:[%s1154_s25 + $0x2b0] sm:$0xff] }
  0x1e   : > { %200 = vst [vmem:[%s1159_s26 + $0xe0] sm:$0xff] %v199_v28  ;;  %202 = vst [vmem:[%s1159_s26 + $0xe8] sm:$0xff] %v201_v29  ;;  %v205_v31 = vld [vmem:[%s1154_s25 + $0x2b8] sm:$0xff] }
  0x1f   : > { %204 = vst [vmem:[%s1159_s26 + $0xf0] sm:$0xff] %v203_v30  ;;  %206 = vst [vmem:[%s1159_s26 + $0xf8] sm:$0xff] %v205_v31 }
  0x20 PF: > { %p939_p5 = scmp.ge.s32.totalorder %s1094_s14, 1  ;;  %p211_p6 = scmp.lt.s32.totalorder %s1094_s14, 4 }
  0x22   : > { %p212_p7 = pnand %p939_p5, %p211_p6 }
  0x23   : > { %s218_s27 = sand.u32 (!%p212_p7), 1, %s1086_s12   ;;  %p941_p8 = scmp.ne.s32.totalorder (!%p212_p7), %s933_s15, 0 }
  0x24   : > { %215 = sbr.rel (%p212_p7) target bundleno = 732 (0x2dc), region = 47  ;;  %s940_s28 = sshll.u32 (!%p212_p7), %s218_s27, 8 }
  0x25   : > { %s1225_s29 = scalar_lea.vmem (!%p212_p7), [#allocation2], %s940_s28 }
  0x29   : > { %240 = sbr.rel (%p941_p8) target bundleno = 55 (0x37), region = 55 }
  0x2e   : > { %vm241_vm0 = vcmask 7168   ;;  %v1096_v32 = vmov -inf   ;;  %v1097_v33 = vmov 0.0  }
  0x2f   : > { %242 = vst.msk [vmem:[%s1807_s2] sm:$0xff] %vm241_vm0, %v1096_v32  ;;  %243 = vst.msk [vmem:[%s1807_s2 + $0x8] sm:$0xff] %vm241_vm0, %v1096_v32 }
  0x30   : > { %244 = vst.msk [vmem:[%s1807_s2 + $0x10] sm:$0xff] %vm241_vm0, %v1096_v32  ;;  %245 = vst.msk [vmem:[%s1807_s2 + $0x18] sm:$0xff] %vm241_vm0, %v1096_v32 }
  0x31   : > { %246 = vst.msk [vmem:[%s1807_s2 + $0x20] sm:$0xff] %vm241_vm0, %v1096_v32  ;;  %247 = vst.msk [vmem:[%s1807_s2 + $0x28] sm:$0xff] %vm241_vm0, %v1096_v32 }
  0x32   : > { %248 = vst.msk [vmem:[%s1807_s2 + $0x30] sm:$0xff] %vm241_vm0, %v1096_v32  ;;  %249 = vst.msk [vmem:[%s1807_s2 + $0x38] sm:$0xff] %vm241_vm0, %v1096_v32 }
  0x33   : > { %250 = vst.msk [vmem:[%s1808_s3] sm:$0xff] %vm241_vm0, %v1097_v33  ;;  %251 = vst.msk [vmem:[%s1808_s3 + $0x8] sm:$0xff] %vm241_vm0, %v1097_v33 }
  0x34   : > { %252 = vst.msk [vmem:[%s1808_s3 + $0x10] sm:$0xff] %vm241_vm0, %v1097_v33  ;;  %253 = vst.msk [vmem:[%s1808_s3 + $0x18] sm:$0xff] %vm241_vm0, %v1097_v33 }
  0x35   : > { %254 = vst.msk [vmem:[%s1808_s3 + $0x20] sm:$0xff] %vm241_vm0, %v1097_v33  ;;  %255 = vst.msk [vmem:[%s1808_s3 + $0x28] sm:$0xff] %vm241_vm0, %v1097_v33 }
  0x36   : > { %256 = vst.msk [vmem:[%s1808_s3 + $0x30] sm:$0xff] %vm241_vm0, %v1097_v33  ;;  %257 = vst.msk [vmem:[%s1808_s3 + $0x38] sm:$0xff] %vm241_vm0, %v1097_v33 }
  0x37 PF: > { %v295_v34 = vld [vmem:[%s1225_s29 + $0xe8] sm:$0xff]  ;;  %v294_v35 = vld [vmem:[%s1225_s29 + $0xe0] sm:$0xff]  ;;  %v297_v37 = vld [vmem:[%s1225_s29 + $0xf8] sm:$0xff]  ;;  %v1098_v40 = vmov 0.0   ;;  %vm298_vm1 = vcmask 523264   ;;  %v550_v11 = vlaneseq  ;;  %s958_s8 = sshll.u32 %s933_s15, 9 }
  0x38   : > { %v291_v36 = vld [vmem:[%s1225_s29 + $0xc8] sm:$0xff]  ;;  %339 = vmatprep.subr.mxu0 %v295_v34  ;;  %v290_v38 = vld [vmem:[%s1225_s29 + $0xc0] sm:$0xff]  ;;  %v296_v39 = vld [vmem:[%s1225_s29 + $0xf0] sm:$0xff]  ;;  %387 = vmatprep.mubr.f32.mxu0 %v1098_v40  ;;  %v555_v15 = vstv %s958_s8  ;;  %vm876_vm6 = vcmask 7168  }
  0x39   : > { %340 = vmatpush1.msra.mxu0 %v294_v35  ;;  %452 = vmatprep.subr.mxu1 %v297_v37  ;;  %v287_v41 = vld [vmem:[%s1225_s29 + $0xa8] sm:$0xff]  ;;  %v293_v42 = vld [vmem:[%s1225_s29 + $0xd8] sm:$0xff]  ;;  %v286_v43 = vld [vmem:[%s1225_s29 + $0xa0] sm:$0xff]  ;;  %v551_v12 = vand.u32 127, %v550_v11 }
  0x3a   : > { %341 = vmatprep.subr.mxu0 %v291_v36  ;;  %453 = vmatpush1.msra.mxu1 %v296_v39  ;;  %v292_v44 = vld [vmem:[%s1225_s29 + $0xd0] sm:$0xff]  ;;  %v289_v45 = vld [vmem:[%s1225_s29 + $0xb8] sm:$0xff]  ;;  %v283_v46 = vld [vmem:[%s1225_s29 + $0x88] sm:$0xff] }
  0x3b   : > { %342 = vmatpush1.msra.mxu0 %v290_v38  ;;  %454 = vmatprep.subr.mxu1 %v293_v42  ;;  %v288_v47 = vld [vmem:[%s1225_s29 + $0xb0] sm:$0xff]  ;;  %v282_v48 = vld [vmem:[%s1225_s29 + $0x80] sm:$0xff]  ;;  %v285_v49 = vld [vmem:[%s1225_s29 + $0x98] sm:$0xff]  ;;  %v552_v13 = vadd.s32 128, %v551_v12  ;;  %v553_v14 = vadd.s32 256, %v551_v12  ;;  %v1383_v16 = vadd.s32 %v555_v15, %v551_v12  ;;  %v554_v19 = vadd.s32 384, %v551_v12 }
  0x3c   : > { %343 = vmatprep.subr.mxu0 %v287_v41  ;;  %455 = vmatpush1.msra.mxu1 %v292_v44  ;;  %v279_v50 = vld [vmem:[%s1225_s29 + $0x68] sm:$0xff]  ;;  %v284_v51 = vld [vmem:[%s1225_s29 + $0x90] sm:$0xff]  ;;  %v278_v52 = vld [vmem:[%s1225_s29 + $0x60] sm:$0xff] }
  0x3d   : > { %344 = vmatpush1.msra.mxu0 %v286_v43  ;;  %456 = vmatprep.subr.mxu1 %v289_v45  ;;  %v281_v53 = vld [vmem:[%s1225_s29 + $0x78] sm:$0xff]  ;;  %v275_v54 = vld [vmem:[%s1225_s29 + $0x48] sm:$0xff]  ;;  %v280_v55 = vld [vmem:[%s1225_s29 + $0x70] sm:$0xff]  ;;  %v1385_v17 = vadd.s32 %v555_v15, %v552_v13  ;;  %v1387_v18 = vadd.s32 %v555_v15, %v553_v14  ;;  %vm560_vm2 = vcmp.lt.s32.totalorder %v1383_v16, 1500  ;;  %v1392_v21 = vadd.s32 %v555_v15, %v554_v19 }
  0x3e   : > { %345 = vmatprep.subr.mxu0 %v283_v46  ;;  %457 = vmatpush1.msra.mxu1 %v288_v47  ;;  %v274_v56 = vld [vmem:[%s1225_s29 + $0x40] sm:$0xff]  ;;  %v277_v57 = vld [vmem:[%s1225_s29 + $0x58] sm:$0xff]  ;;  %v271_v58 = vld [vmem:[%s1225_s29 + $0x28] sm:$0xff] }
  0x3f   : > { %346 = vmatpush1.msra.mxu0 %v282_v48  ;;  %458 = vmatprep.subr.mxu1 %v285_v49  ;;  %v276_v59 = vld [vmem:[%s1225_s29 + $0x50] sm:$0xff]  ;;  %v270_v60 = vld [vmem:[%s1225_s29 + $0x20] sm:$0xff]  ;;  %v273_v61 = vld [vmem:[%s1225_s29 + $0x38] sm:$0xff]  ;;  %vm561_vm3 = vcmp.lt.s32.totalorder %v1385_v17, 1500  ;;  %vm562_vm4 = vcmp.lt.s32.totalorder %v1387_v18, 1500  ;;  %vm563_vm5 = vcmp.lt.s32.totalorder %v1392_v21, 1500 }
  0x40   : > { %347 = vmatprep.subr.mxu0 %v279_v50  ;;  %459 = vmatpush1.msra.mxu1 %v284_v51  ;;  %v267_v62 = vld [vmem:[%s1225_s29 + $0x8] sm:$0xff]  ;;  %v272_v63 = vld [vmem:[%s1225_s29 + $0x30] sm:$0xff]  ;;  %v266_v0 = vld [vmem:[%s1225_s29] sm:$0xff] }
  0x41   : > { %348 = vmatpush1.msra.mxu0 %v278_v52  ;;  %460 = vmatprep.subr.mxu1 %v281_v53  ;;  %v269_v1 = vld [vmem:[%s1225_s29 + $0x18] sm:$0xff]  ;;  %v258_v2 = vld [vmem:[%s1805_s0] sm:$0xff]  ;;  %v268_v3 = vld [vmem:[%s1225_s29 + $0x10] sm:$0xff] }
  0x42   : > { %349 = vmatprep.subr.mxu0 %v275_v54  ;;  %461 = vmatpush1.msra.mxu1 %v280_v55  ;;  %v259_v4 = vld [vmem:[%s1805_s0 + $0x8] sm:$0xff]  ;;  %v260_v5 = vld [vmem:[%s1805_s0 + $0x10] sm:$0xff]  ;;  %v261_v6 = vld [vmem:[%s1805_s0 + $0x18] sm:$0xff] }
  0x43   : > { %350 = vmatpush1.msra.mxu0 %v274_v56  ;;  %462 = vmatprep.subr.mxu1 %v277_v57  ;;  %v262_v7 = vld [vmem:[%s1805_s0 + $0x20] sm:$0xff]  ;;  %v263_v8 = vld [vmem:[%s1805_s0 + $0x28] sm:$0xff]  ;;  %v264_v9 = vld [vmem:[%s1805_s0 + $0x30] sm:$0xff] }
  0x44   : > { %351 = vmatprep.subr.mxu0 %v271_v58  ;;  %463 = vmatpush1.msra.mxu1 %v276_v59  ;;  %v265_v10 = vld [vmem:[%s1805_s0 + $0x38] sm:$0xff]  ;;  %v1558_v17 = vld [vmem:[%s1807_s2] sm:$0xff] }
  0x45   : > { %352 = vmatpush1.msra.mxu0 %v270_v60  ;;  %464 = vmatprep.subr.mxu1 %v273_v61 }
  0x46   : > { %353 = vmatprep.subr.mxu0 %v267_v62  ;;  %465 = vmatpush1.msra.mxu1 %v272_v63 }
  0x47   : > { %354 = vmatpush1.msra.mxu0 %v266_v0  ;;  %466 = vmatprep.subr.mxu1 %v269_v1 }
  0x48   : > { %942 = vmatmul.mubr.msk.f32.vlgmr.msra.gmra.mxu0 %vm298_vm1, %v258_v2  ;;  %467 = vmatpush1.msra.mxu1 %v268_v3 }
  0x49   : > { %500 = vmatprep.mubr.f32.mxu1 %v1098_v40  ;;  %393 = vmatprep.mubr.f32.mxu0 %v1098_v40 }
  0x4a   : > { %950 = vmatmul.mubr.msk.f32.vlgmr.msra.gmra.mxu1 %vm298_vm1, %v258_v2 }
  0x4b   : > { %506 = vmatprep.mubr.f32.mxu1 %v1098_v40 }
  0x4c   : > { %943 = vmatmul.mubr.msk.f32.gmra.mxu0 %vm298_vm1, %v259_v4 }
  0x4d   : > { %399 = vmatprep.mubr.f32.mxu0 %v1098_v40 }
  0x4e   : > { %951 = vmatmul.mubr.msk.f32.gmra.mxu1 %vm298_vm1, %v259_v4 }
  0x4f   : > { %512 = vmatprep.mubr.f32.mxu1 %v1098_v40 }
  0x50   : > { %944 = vmatmul.mubr.msk.f32.gmra.mxu0 %vm298_vm1, %v260_v5 }
  0x51   : > { %405 = vmatprep.mubr.f32.mxu0 %v1098_v40 }
  0x52   : > { %952 = vmatmul.mubr.msk.f32.gmra.mxu1 %vm298_vm1, %v260_v5 }
  0x53   : > { %518 = vmatprep.mubr.f32.mxu1 %v1098_v40 }
  0x54   : > { %945 = vmatmul.mubr.msk.f32.gmra.mxu0 %vm298_vm1, %v261_v6 }
  0x55   : > { %411 = vmatprep.mubr.f32.mxu0 %v1098_v40 }
  0x56   : > { %953 = vmatmul.mubr.msk.f32.gmra.mxu1 %vm298_vm1, %v261_v6 }
  0x57   : > { %524 = vmatprep.mubr.f32.mxu1 %v1098_v40 }
  0x58   : > { %946 = vmatmul.mubr.msk.f32.gmra.mxu0 %vm298_vm1, %v262_v7 }
  0x59   : > { %417 = vmatprep.mubr.f32.mxu0 %v1098_v40 }
  0x5a   : > { %954 = vmatmul.mubr.msk.f32.gmra.mxu1 %vm298_vm1, %v262_v7 }
  0x5b   : > { %530 = vmatprep.mubr.f32.mxu1 %v1098_v40 }
  0x5c   : > { %947 = vmatmul.mubr.msk.f32.gmra.mxu0 %vm298_vm1, %v263_v8 }
  0x5d   : > { %423 = vmatprep.mubr.f32.mxu0 %v1098_v40 }
  0x5e   : > { %955 = vmatmul.mubr.msk.f32.gmra.mxu1 %vm298_vm1, %v263_v8 }
  0x5f   : > { %536 = vmatprep.mubr.f32.mxu1 %v1098_v40 }
  0x60   : > { %948 = vmatmul.mubr.msk.f32.gmra.mxu0 %vm298_vm1, %v264_v9 }
  0x61   : > { %429 = vmatprep.mubr.f32.mxu0 %v1098_v40 }
  0x62   : > { %956 = vmatmul.mubr.msk.f32.gmra.mxu1 %vm298_vm1, %v264_v9 }
  0x63   : > { %542 = vmatprep.mubr.f32.mxu1 %v1098_v40 }
  0x64   : > { %949 = vmatmul.mubr.msk.f32.gmra.mxu0 %vm298_vm1, %v265_v10 }
  0x66   : > { %957 = vmatmul.mubr.msk.f32.gmra.mxu1 %vm298_vm1, %v265_v10  ;;  %v1099_v10 = vmov 0  }
  0x67   : > { %990 = vset.pattern.permute.xlu0 %v1099_v10  ;;  %991 = vset.pattern.permute.xlu1 %v1099_v10 }
 0x108   : > { %v389_v20 = vpop.f32.mrf.mxu0 }
 0x109   : > { %v1396_v24 = vsel %vm560_vm2, %v389_v20, -inf }
 0x10a   : > { %v391_v22 = vpop.f32.mrf.mxu0  ;;  %v502_v23 = vpop.f32.mrf.mxu1 }
 0x10b   : > { %v1400_v25 = vsel %vm561_vm3, %v391_v22, -inf  ;;  %v1404_v26 = vsel %vm562_vm4, %v502_v23, -inf }
 0x10c   : > { %v604_v27 = vmax.f32 %v1396_v24, %v1400_v25  ;;  %v395_v28 = vpop.f32.mrf.mxu0  ;;  %v504_v29 = vpop.f32.mrf.mxu1 }
 0x10d   : > { %v1412_v33 = vsel %vm560_vm2, %v395_v28, -inf  ;;  %v1416_v34 = vsel %vm563_vm5, %v504_v29, -inf }
 0x10e   : > { %v605_v30 = vmax.f32 %v604_v27, %v1404_v26  ;;  %v397_v31 = vpop.f32.mrf.mxu0  ;;  %v508_v32 = vpop.f32.mrf.mxu1 }
 0x10f   : > { %v1420_v35 = vsel %vm561_vm3, %v397_v31, -inf  ;;  %v1424_v36 = vsel %vm562_vm4, %v508_v32, -inf }
 0x110   : > { %v609_v37 = vmax.f32 %v1412_v33, %v1420_v35  ;;  %v401_v38 = vpop.f32.mrf.mxu0  ;;  %v510_v39 = vpop.f32.mrf.mxu1  ;;  %v606_v40 = vmax.f32 %v605_v30, %v1416_v34 }
 0x111   : > { %v1432_v44 = vsel %vm560_vm2, %v401_v38, -inf  ;;  %v1436_v45 = vsel %vm563_vm5, %v510_v39, -inf }
 0x112   : > { %v610_v41 = vmax.f32 %v609_v37, %v1424_v36  ;;  %v514_v42 = vpop.f32.mrf.mxu1  ;;  %607 = vmax.xlane.f32.xlu0 %v606_v40  ;;  %v403_v43 = vpop.f32.mrf.mxu0 }
 0x113   : > { %v1440_v46 = vsel %vm562_vm4, %v514_v42, -inf  ;;  %v1444_v47 = vsel %vm561_vm3, %v403_v43, -inf }
 0x114   : > { %v614_v48 = vmax.f32 %v1432_v44, %v1444_v47  ;;  %v407_v49 = vpop.f32.mrf.mxu0  ;;  %v516_v50 = vpop.f32.mrf.mxu1  ;;  %v611_v51 = vmax.f32 %v610_v41, %v1436_v45 }
 0x115   : > { %v1452_v55 = vsel %vm560_vm2, %v407_v49, -inf  ;;  %v1456_v56 = vsel %vm563_vm5, %v516_v50, -inf }
 0x116   : > { %v520_v52 = vpop.f32.mrf.mxu1  ;;  %612 = vmax.xlane.f32.xlu0 %v611_v51  ;;  %v409_v53 = vpop.f32.mrf.mxu0  ;;  %v615_v54 = vmax.f32 %v614_v48, %v1440_v46 }
 0x117   : > { %v1460_v57 = vsel %vm562_vm4, %v520_v52, -inf  ;;  %v1464_v58 = vsel %vm561_vm3, %v409_v53, -inf }
 0x118   : > { %v619_v59 = vmax.f32 %v1452_v55, %v1464_v58  ;;  %v413_v60 = vpop.f32.mrf.mxu0  ;;  %v522_v61 = vpop.f32.mrf.mxu1  ;;  %v616_v62 = vmax.f32 %v615_v54, %v1456_v56 }
 0x119   : > { %v1472_v2 = vsel %vm560_vm2, %v413_v60, -inf  ;;  %v1476_v3 = vsel %vm563_vm5, %v522_v61, -inf }
 0x11a   : > { %v526_v63 = vpop.f32.mrf.mxu1  ;;  %617 = vmax.xlane.f32.xlu1 %v616_v62  ;;  %v415_v0 = vpop.f32.mrf.mxu0  ;;  %v620_v1 = vmax.f32 %v619_v59, %v1460_v57 }
 0x11b   : > { %v1480_v4 = vsel %vm562_vm4, %v526_v63, -inf  ;;  %v1484_v5 = vsel %vm561_vm3, %v415_v0, -inf }
 0x11c   : > { %v624_v6 = vmax.f32 %v1472_v2, %v1484_v5  ;;  %v419_v7 = vpop.f32.mrf.mxu0  ;;  %v528_v8 = vpop.f32.mrf.mxu1  ;;  %v621_v9 = vmax.f32 %v620_v1, %v1476_v3  ;;  %v1566_v1 = vld [vmem:[%s1807_s2 + $0x8] sm:$0xff] }
 0x11d   : > { %v1492_v14 = vsel %vm560_vm2, %v419_v7, -inf  ;;  %v1496_v15 = vsel %vm563_vm5, %v528_v8, -inf  ;;  %v1582_v8 = vld [vmem:[%s1807_s2 + $0x10] sm:$0xff] }
 0x11e   : > { %v532_v11 = vpop.f32.mrf.mxu1  ;;  %622 = vmax.xlane.f32.xlu1 %v621_v9  ;;  %v421_v12 = vpop.f32.mrf.mxu0  ;;  %v625_v13 = vmax.f32 %v624_v6, %v1480_v4 }
 0x11f   : > { %v1500_v19 = vsel %vm562_vm4, %v532_v11, -inf  ;;  %v1504_v20 = vsel %vm561_vm3, %v421_v12, -inf  ;;  %v1598_v12 = vld [vmem:[%s1807_s2 + $0x18] sm:$0xff] }
 0x120   : > { %v629_v22 = vmax.f32 %v1492_v14, %v1504_v20  ;;  %v425_v23 = vpop.f32.mrf.mxu0  ;;  %v534_v27 = vpop.f32.mrf.mxu1  ;;  %v626_v28 = vmax.f32 %v625_v13, %v1496_v15 }
 0x121   : > { %v1512_v32 = vsel %vm560_vm2, %v425_v23, -inf  ;;  %v1516_v37 = vsel %vm563_vm5, %v534_v27, -inf  ;;  %v1614_v27 = vld [vmem:[%s1807_s2 + $0x20] sm:$0xff] }
 0x122   : > { %v538_v29 = vpop.f32.mrf.mxu1  ;;  %627 = vmax.xlane.f32.xlu0 %v626_v28  ;;  %v427_v30 = vpop.f32.mrf.mxu0  ;;  %v630_v31 = vmax.f32 %v629_v22, %v1500_v19 }
 0x123   : > { %v1520_v38 = vsel %vm562_vm4, %v538_v29, -inf  ;;  %v1524_v39 = vsel %vm561_vm3, %v427_v30, -inf }
 0x124   : > { %v634_v40 = vmax.f32 %v1512_v32, %v1524_v39  ;;  %v431_v41 = vpop.f32.mrf.mxu0  ;;  %v540_v42 = vpop.f32.mrf.mxu1  ;;  %v631_v43 = vmax.f32 %v630_v31, %v1516_v37  ;;  %v1630_v31 = vld [vmem:[%s1807_s2 + $0x28] sm:$0xff] }
 0x125   : > { %v1532_v51 = vsel %vm560_vm2, %v431_v41, -inf  ;;  %v1536_v52 = vsel %vm563_vm5, %v540_v42, -inf }
 0x126   : > { %v544_v48 = vpop.f32.mrf.mxu1  ;;  %632 = vmax.xlane.f32.xlu1 %v631_v43  ;;  %v433_v49 = vpop.f32.mrf.mxu0  ;;  %v635_v50 = vmax.f32 %v634_v40, %v1520_v38  ;;  %v1646_v43 = vld [vmem:[%s1807_s2 + $0x30] sm:$0xff] }
 0x127   : > { %v1540_v53 = vsel %vm562_vm4, %v544_v48, -inf  ;;  %v1544_v54 = vsel %vm561_vm3, %v433_v49, -inf }
 0x128   : > { %v639_v59 = vmax.f32 %v1532_v51, %v1544_v54  ;;  %v546_v60 = vpop.f32.mrf.mxu1  ;;  %v636_v16 = vmax.f32 %v635_v50, %v1536_v52 }
 0x129   : > { %v1552_v62 = vsel %vm563_vm5, %v546_v60, -inf }
 0x12a   : > { %637 = vmax.xlane.f32.xlu0 %v636_v16  ;;  %v640_v61 = vmax.f32 %v639_v59, %v1540_v53  ;;  %v1662_v59 = vld [vmem:[%s1807_s2 + $0x38] sm:$0xff] }
 0x12c   : > { %v641_v18 = vmax.f32 %v640_v61, %v1552_v62 }
 0x12e   : > { %642 = vmax.xlane.f32.xlu1 %v641_v18 }
 0x19b   : > { %v608_v63 = vpop.xlane.xlu0 %607 }
 0x19c   : > { %v1561_v0 = vmax.f32 %v1558_v17, %v608_v63 }
 0x19e   : > { %v660_v21 = vsub.f32 %v1558_v17, %v1561_v0  ;;  %885 = vst.msk [vmem:[%s1807_s2] sm:$0xff] %vm876_vm6, %v1561_v0  ;;  %694 = vperm.xlu0 %990, %v1561_v0  }
 0x19f   : > { %v613_v6 = vpop.xlane.xlu0 %612 }
 0x1a0   : > { %v1577_v7 = vmax.f32 %v1566_v1, %v613_v6 }
 0x1a2   : > { %v661_v9 = vsub.f32 %v1566_v1, %v1577_v7  ;;  %886 = vst.msk [vmem:[%s1807_s2 + $0x8] sm:$0xff] %vm876_vm6, %v1577_v7  ;;  %699 = vperm.xlu1 %991, %v1577_v7   ;;  %v652_v1 = vld [vmem:[%s1808_s3] sm:$0xff] }
 0x1a3   : > { %v618_v10 = vpop.xlane.xlu1 %617 }
 0x1a4   : > { %v1593_v11 = vmax.f32 %v1582_v8, %v618_v10 }
 0x1a6   : > { %887 = vst.msk [vmem:[%s1807_s2 + $0x10] sm:$0xff] %vm876_vm6, %v1593_v11  ;;  %704 = vperm.xlu1 %991, %v1593_v11  }
 0x1a7   : > { %v623_v22 = vpop.xlane.xlu1 %622 }
 0x1a8   : > { %v1609_v23 = vmax.f32 %v1598_v12, %v623_v22 }
 0x1aa   : > { %888 = vst.msk [vmem:[%s1807_s2 + $0x18] sm:$0xff] %vm876_vm6, %v1609_v23  ;;  %709 = vperm.xlu1 %991, %v1609_v23  }
 0x1ab   : > { %v628_v29 = vpop.xlane.xlu0 %627 }
 0x1ac   : > { %v1625_v30 = vmax.f32 %v1614_v27, %v628_v29 }
 0x1ae   : > { %889 = vst.msk [vmem:[%s1807_s2 + $0x20] sm:$0xff] %vm876_vm6, %v1625_v30  ;;  %714 = vperm.xlu1 %991, %v1625_v30   ;;  %v1811_v17 = vsub.f32 %v1614_v27, %v1625_v30 }
 0x1af   : > { %v633_v41 = vpop.xlane.xlu1 %632 }
 0x1b0   : > { %v1641_v42 = vmax.f32 %v1630_v31, %v633_v41  ;;  %v676_v0 = vmul.f32 1.442695, %v1811_v17 }
 0x1b2   : > { %890 = vst.msk [vmem:[%s1807_s2 + $0x28] sm:$0xff] %vm876_vm6, %v1641_v42  ;;  %719 = vperm.xlu1 %991, %v1641_v42   ;;  %v1812_v7 = vsub.f32 %v1630_v31, %v1641_v42 }
 0x1b3   : > { %v638_v49 = vpop.xlane.xlu0 %637 }
 0x1b4   : > { %v1657_v50 = vmax.f32 %v1646_v43, %v638_v49 }
 0x1b6   : > { %891 = vst.msk [vmem:[%s1807_s2 + $0x30] sm:$0xff] %vm876_vm6, %v1657_v50  ;;  %724 = vperm.xlu1 %991, %v1657_v50   ;;  %v1813_v27 = vsub.f32 %v1646_v43, %v1657_v50 }
 0x1b7   : > { %v643_v16 = vpop.xlane.xlu1 %642 }
 0x1b8   : > { %v1673_v61 = vmax.f32 %v1662_v59, %v643_v16  ;;  %v680_v30 = vmul.f32 1.442695, %v1813_v27 }
 0x1ba   : > { %892 = vst.msk [vmem:[%s1807_s2 + $0x38] sm:$0xff] %vm876_vm6, %v1673_v61  ;;  %729 = vperm.xlu1 %991, %v1673_v61  }
 0x219   : > { %v695_v63 = vpop.permute.xlu0 %694 }
 0x21a   : > { %v732_v6 = vsub.f32 %v1396_v24, %v695_v63  ;;  %v733_v10 = vsub.f32 %v1400_v25, %v695_v63  ;;  %v734_v22 = vsub.f32 %v1404_v26, %v695_v63  ;;  %v735_v29 = vsub.f32 %v1416_v34, %v695_v63 }
 0x21c   : > { %v764_v41 = vmul.f32 1.442695, %v732_v6  ;;  %v766_v49 = vmul.f32 1.442695, %v733_v10  ;;  %v768_v16 = vmul.f32 1.442695, %v734_v22 }
 0x21d   : > { %v770_v18 = vmul.f32 1.442695, %v735_v29  ;;  %v700_v60 = vpop.permute.xlu1 %699 }
 0x21e   : > { %992 = vpow2.f32 %v764_v41  ;;  %v736_v48 = vsub.f32 %v1412_v33, %v700_v60  ;;  %v737_v40 = vsub.f32 %v1420_v35, %v700_v60  ;;  %v738_v28 = vsub.f32 %v1424_v36, %v700_v60 }
 0x21f   : > { %994 = vpow2.f32 %v766_v49  ;;  %v739_v24 = vsub.f32 %v1436_v45, %v700_v60 }
 0x220   : > { %996 = vpow2.f32 %v768_v16  ;;  %v772_v25 = vmul.f32 1.442695, %v736_v48  ;;  %v774_v26 = vmul.f32 1.442695, %v737_v40  ;;  %v776_v13 = vmul.f32 1.442695, %v738_v28 }
 0x221   : > { %998 = vpow2.f32 %v770_v18  ;;  %v778_v34 = vmul.f32 1.442695, %v739_v24  ;;  %v705_v63 = vpop.permute.xlu1 %704 }
 0x222   : > { %1000 = vpow2.f32 %v772_v25  ;;  %v740_v6 = vsub.f32 %v1432_v44, %v705_v63  ;;  %v741_v10 = vsub.f32 %v1444_v47, %v705_v63  ;;  %v742_v33 = vsub.f32 %v1440_v46, %v705_v63 }
 0x223   : > { %1002 = vpow2.f32 %v774_v26  ;;  %v743_v35 = vsub.f32 %v1456_v56, %v705_v63 }
 0x224   : > { %1004 = vpow2.f32 %v776_v13  ;;  %v780_v36 = vmul.f32 1.442695, %v740_v6  ;;  %v782_v45 = vmul.f32 1.442695, %v741_v10  ;;  %v784_v60 = vmul.f32 1.442695, %v742_v33 }
 0x225   : > { %1006 = vpow2.f32 %v778_v34  ;;  %v786_v40 = vmul.f32 1.442695, %v743_v35  ;;  %v710_v28 = vpop.permute.xlu1 %709 }
 0x226   : > { %1008 = vpow2.f32 %v780_v36  ;;  %v744_v48 = vsub.f32 %v1452_v55, %v710_v28  ;;  %v745_v18 = vsub.f32 %v1464_v58, %v710_v28  ;;  %v746_v44 = vsub.f32 %v1460_v57, %v710_v28 }
 0x227   : > { %1010 = vpow2.f32 %v782_v45  ;;  %v747_v46 = vsub.f32 %v1476_v3, %v710_v28 }
 0x228   : > { %1012 = vpow2.f32 %v784_v60  ;;  %v788_v47 = vmul.f32 1.442695, %v744_v48  ;;  %v790_v56 = vmul.f32 1.442695, %v745_v18  ;;  %v792_v13 = vmul.f32 1.442695, %v746_v44 }
 0x229   : > { %1014 = vpow2.f32 %v786_v40  ;;  %v794_v22 = vmul.f32 1.442695, %v747_v46  ;;  %v715_v29 = vpop.permute.xlu1 %714 }
 0x22a   : > { %1016 = vpow2.f32 %v788_v47  ;;  %v748_v41 = vsub.f32 %v1472_v2, %v715_v29  ;;  %v749_v49 = vsub.f32 %v1484_v5, %v715_v29  ;;  %v750_v55 = vsub.f32 %v1480_v4, %v715_v29 }
 0x22b   : > { %v993_v58 = vpop.eup %992  ;;  %1018 = vpow2.f32 %v790_v56  ;;  %v751_v57 = vsub.f32 %v1496_v15, %v715_v29 }
 0x22c   : > { %v995_v16 = vpop.eup %994  ;;  %1020 = vpow2.f32 %v792_v13  ;;  %v796_v3 = vmul.f32 1.442695, %v748_v41  ;;  %v798_v24 = vmul.f32 1.442695, %v749_v49  ;;  %v800_v25 = vmul.f32 1.442695, %v750_v55 }
 0x22d   : > { %v997_v26 = vpop.eup %996  ;;  %1022 = vpow2.f32 %v794_v22  ;;  %v802_v34 = vmul.f32 1.442695, %v751_v57  ;;  %v720_v63 = vpop.permute.xlu1 %719  ;;  %v828_v6 = vadd.f32 %v995_v16, %v993_v58 }
 0x22e   : > { %v999_v10 = vpop.eup %998  ;;  %1024 = vpow2.f32 %v796_v3  ;;  %v752_v2 = vsub.f32 %v1492_v14, %v720_v63  ;;  %v753_v4 = vsub.f32 %v1504_v20, %v720_v63  ;;  %v754_v5 = vsub.f32 %v1500_v19, %v720_v63 }
 0x22f   : > { %v1001_v33 = vpop.eup %1000  ;;  %1026 = vpow2.f32 %v798_v24  ;;  %v755_v15 = vsub.f32 %v1516_v37, %v720_v63  ;;  %v829_v35 = vadd.f32 %v997_v26, %v828_v6 }
 0x230   : > { %v1003_v36 = vpop.eup %1002  ;;  %1028 = vpow2.f32 %v800_v25  ;;  %v804_v45 = vmul.f32 1.442695, %v752_v2  ;;  %v806_v60 = vmul.f32 1.442695, %v753_v4  ;;  %v808_v40 = vmul.f32 1.442695, %v754_v5 }
 0x231   : > { %v1005_v28 = vpop.eup %1004  ;;  %1030 = vpow2.f32 %v802_v34  ;;  %v810_v48 = vmul.f32 1.442695, %v755_v15  ;;  %v725_v18 = vpop.permute.xlu1 %724  ;;  %v830_v44 = vadd.f32 %v999_v10, %v829_v35  ;;  %v833_v14 = vadd.f32 %v1003_v36, %v1001_v33 }
 0x232   : > { %v1007_v46 = vpop.eup %1006  ;;  %1032 = vpow2.f32 %v804_v45  ;;  %v756_v19 = vsub.f32 %v1512_v32, %v725_v18  ;;  %v757_v20 = vsub.f32 %v1524_v39, %v725_v18  ;;  %v758_v37 = vsub.f32 %v1520_v38, %v725_v18 }
 0x233   : > { %v1009_v47 = vpop.eup %1008  ;;  %1034 = vpow2.f32 %v806_v60  ;;  %v759_v56 = vsub.f32 %v1536_v52, %v725_v18  ;;  %831 = vadd.xlane.f32.xlu1 %v830_v44  ;;  %v834_v13 = vadd.f32 %v1005_v28, %v833_v14 }
 0x234   : > { %v1011_v22 = vpop.eup %1010  ;;  %1036 = vpow2.f32 %v808_v40  ;;  %v812_v29 = vmul.f32 1.442695, %v756_v19  ;;  %v814_v41 = vmul.f32 1.442695, %v757_v20  ;;  %v816_v49 = vmul.f32 1.442695, %v758_v37 }
 0x235   : > { %v1013_v55 = vpop.eup %1012  ;;  %1038 = vpow2.f32 %v810_v48  ;;  %v818_v58 = vmul.f32 1.442695, %v759_v56  ;;  %v730_v57 = vpop.permute.xlu1 %729  ;;  %v835_v32 = vadd.f32 %v1007_v46, %v834_v13  ;;  %v838_v16 = vadd.f32 %v1011_v22, %v1009_v47 }
 0x236   : > { %v1015_v39 = vpop.eup %1014  ;;  %1040 = vpow2.f32 %v812_v29  ;;  %v760_v38 = vsub.f32 %v1532_v51, %v730_v57  ;;  %v761_v3 = vsub.f32 %v1544_v54, %v730_v57  ;;  %v762_v52 = vsub.f32 %v1540_v53, %v730_v57 }
 0x237   : > { %v1017_v24 = vpop.eup %1016  ;;  %1042 = vpow2.f32 %v814_v41  ;;  %v763_v25 = vsub.f32 %v1552_v62, %v730_v57  ;;  %836 = vadd.xlane.f32.xlu0 %v835_v32  ;;  %v839_v26 = vadd.f32 %v1013_v55, %v838_v16 }
 0x238   : > { %v1019_v34 = vpop.eup %1018  ;;  %1044 = vpow2.f32 %v816_v49  ;;  %v820_v63 = vmul.f32 1.442695, %v760_v38  ;;  %v822_v6 = vmul.f32 1.442695, %v761_v3  ;;  %v824_v2 = vmul.f32 1.442695, %v762_v52 }
 0x239   : > { %v1021_v10 = vpop.eup %1020  ;;  %1046 = vpow2.f32 %v818_v58  ;;  %v840_v4 = vadd.f32 %v1015_v39, %v839_v26  ;;  %v843_v5 = vadd.f32 %v1019_v34, %v1017_v24  ;;  %v826_v53 = vmul.f32 1.442695, %v763_v25 }
 0x23a   : > { %v1023_v51 = vpop.eup %1022  ;;  %1048 = vpow2.f32 %v820_v63  ;;  %v668_v39 = vmul.f32 1.442695, %v660_v21  ;;  %v670_v38 = vmul.f32 1.442695, %v661_v9  ;;  %v1809_v3 = vsub.f32 %v1582_v8, %v1593_v11  ;;  %v654_v63 = vld [vmem:[%s1808_s3 + $0x10] sm:$0xff] }
 0x23b   : > { %v1025_v54 = vpop.eup %1024  ;;  %1050 = vpow2.f32 %v822_v6  ;;  %841 = vadd.xlane.f32.xlu0 %v840_v4  ;;  %v844_v33 = vadd.f32 %v1021_v10, %v843_v5  ;;  %v1810_v24 = vsub.f32 %v1598_v12, %v1609_v23  ;;  %v678_v8 = vmul.f32 1.442695, %v1812_v7  ;;  %v653_v12 = vld [vmem:[%s1808_s3 + $0x8] sm:$0xff]  ;;  %v655_v5 = vld [vmem:[%s1808_s3 + $0x18] sm:$0xff] }
 0x23c   : > { %v1027_v15 = vpop.eup %1026  ;;  %1052 = vpow2.f32 %v824_v2  ;;  %v672_v52 = vmul.f32 1.442695, %v1809_v3  ;;  %v1814_v10 = vsub.f32 %v1662_v59, %v1673_v61 }
 0x23d   : > { %v1029_v62 = vpop.eup %1028  ;;  %v845_v35 = vadd.f32 %v1023_v51, %v844_v33  ;;  %v848_v36 = vadd.f32 %v1027_v15, %v1025_v54  ;;  %1054 = vpow2.f32 %v826_v53  ;;  %v674_v25 = vmul.f32 1.442695, %v1810_v24  ;;  %v656_v53 = vld [vmem:[%s1808_s3 + $0x20] sm:$0xff] }
 0x23e   : > { %v1031_v45 = vpop.eup %1030  ;;  %1056 = vpow2.f32 %v668_v39  ;;  %v682_v2 = vmul.f32 1.442695, %v1814_v10 }
 0x23f   : > { %v1033_v60 = vpop.eup %1032  ;;  %846 = vadd.xlane.f32.xlu1 %v845_v35  ;;  %v849_v40 = vadd.f32 %v1029_v62, %v848_v36  ;;  %1058 = vpow2.f32 %v670_v38  ;;  %v657_v36 = vld [vmem:[%s1808_s3 + $0x28] sm:$0xff] }
 0x240   : > { %v1035_v28 = vpop.eup %1034  ;;  %1060 = vpow2.f32 %v672_v52 }
 0x241   : > { %v1037_v48 = vpop.eup %1036  ;;  %v850_v18 = vadd.f32 %v1031_v45, %v849_v40  ;;  %v853_v44 = vadd.f32 %v1035_v28, %v1033_v60  ;;  %1062 = vpow2.f32 %v674_v25 }
 0x242   : > { %v1039_v14 = vpop.eup %1038  ;;  %1064 = vpow2.f32 %v676_v0 }
 0x243   : > { %v1041_v46 = vpop.eup %1040  ;;  %851 = vadd.xlane.f32.xlu0 %v850_v18  ;;  %v854_v19 = vadd.f32 %v1037_v48, %v853_v44  ;;  %1066 = vpow2.f32 %v678_v8  ;;  %v658_v48 = vld [vmem:[%s1808_s3 + $0x30] sm:$0xff] }
 0x244   : > { %v1043_v20 = vpop.eup %1042  ;;  %1068 = vpow2.f32 %v680_v30 }
 0x245   : > { %v1045_v37 = vpop.eup %1044  ;;  %v855_v47 = vadd.f32 %v1039_v14, %v854_v19  ;;  %v858_v56 = vadd.f32 %v1043_v20, %v1041_v46  ;;  %1070 = vpow2.f32 %v682_v2  ;;  %v659_v19 = vld [vmem:[%s1808_s3 + $0x38] sm:$0xff] }
 0x246   : > { %v1047_v13 = vpop.eup %1046 }
 0x247   : > { %v1049_v22 = vpop.eup %1048  ;;  %856 = vadd.xlane.f32.xlu1 %v855_v47  ;;  %v859_v29 = vadd.f32 %v1045_v37, %v858_v56 }
 0x248   : > { %v1051_v41 = vpop.eup %1050 }
 0x249   : > { %v860_v49 = vadd.f32 %v1047_v13, %v859_v29  ;;  %v863_v55 = vadd.f32 %v1051_v41, %v1049_v22  ;;  %v1053_v58 = vpop.eup %1052 }
 0x24a   : > { %v1055_v32 = vpop.eup %1054 }
 0x24b   : > { %861 = vadd.xlane.f32.xlu0 %v860_v49  ;;  %v864_v57 = vadd.f32 %v1053_v58, %v863_v55  ;;  %v1057_v21 = vpop.eup %1056 }
 0x24c   : > { %v684_v9 = vmul.f32 %v1057_v21, %v652_v1  ;;  %v1059_v11 = vpop.eup %1058 }
 0x24d   : > { %v865_v16 = vadd.f32 %v1055_v32, %v864_v57  ;;  %v685_v31 = vmul.f32 %v1059_v11, %v653_v12  ;;  %v1061_v42 = vpop.eup %1060 }
 0x24e   : > { %v686_v43 = vmul.f32 %v1061_v42, %v654_v63  ;;  %v1063_v50 = vpop.eup %1062 }
 0x24f   : > { %866 = vadd.xlane.f32.xlu1 %v865_v16  ;;  %v687_v59 = vmul.f32 %v1063_v50, %v655_v5  ;;  %v1065_v61 = vpop.eup %1064 }
 0x250   : > { %v688_v15 = vmul.f32 %v1065_v61, %v656_v53  ;;  %v1067_v62 = vpop.eup %1066 }
 0x251   : > { %v689_v60 = vmul.f32 %v1067_v62, %v657_v36  ;;  %v1069_v40 = vpop.eup %1068 }
 0x252   : > { %v690_v44 = vmul.f32 %v1069_v40, %v658_v48  ;;  %v1071_v14 = vpop.eup %1070 }
 0x253   : > { %v691_v37 = vmul.f32 %v1071_v14, %v659_v19 }
 0x2bc   : > { %v832_v26 = vpop.xlane.xlu1 %831 }
 0x2bd   : > { %v868_v23 = vadd.f32 %v832_v26, %v684_v9 }
 0x2bf   : > { %877 = vst.msk [vmem:[%s1808_s3] sm:$0xff] %vm876_vm6, %v868_v23 }
 0x2c0   : > { %v837_v34 = vpop.xlane.xlu0 %836 }
 0x2c1   : > { %v869_v6 = vadd.f32 %v837_v34, %v685_v31 }
 0x2c3   : > { %878 = vst.msk [vmem:[%s1808_s3 + $0x8] sm:$0xff] %vm876_vm6, %v869_v6 }
 0x2c4   : > { %v842_v4 = vpop.xlane.xlu0 %841 }
 0x2c5   : > { %v870_v51 = vadd.f32 %v842_v4, %v686_v43 }
 0x2c7   : > { %879 = vst.msk [vmem:[%s1808_s3 + $0x10] sm:$0xff] %vm876_vm6, %v870_v51 }
 0x2c8   : > { %v847_v54 = vpop.xlane.xlu1 %846 }
 0x2c9   : > { %v871_v33 = vadd.f32 %v847_v54, %v687_v59 }
 0x2cb   : > { %880 = vst.msk [vmem:[%s1808_s3 + $0x18] sm:$0xff] %vm876_vm6, %v871_v33 }
 0x2cc   : > { %v852_v35 = vpop.xlane.xlu0 %851 }
 0x2cd   : > { %v872_v45 = vadd.f32 %v852_v35, %v688_v15 }
 0x2cf   : > { %881 = vst.msk [vmem:[%s1808_s3 + $0x20] sm:$0xff] %vm876_vm6, %v872_v45 }
 0x2d0   : > { %v857_v28 = vpop.xlane.xlu1 %856 }
 0x2d1   : > { %v873_v18 = vadd.f32 %v857_v28, %v689_v60 }
 0x2d3   : > { %882 = vst.msk [vmem:[%s1808_s3 + $0x28] sm:$0xff] %vm876_vm6, %v873_v18 }
 0x2d4   : > { %v862_v46 = vpop.xlane.xlu0 %861 }
 0x2d5   : > { %v874_v20 = vadd.f32 %v862_v46, %v690_v44 }
 0x2d7   : > { %883 = vst.msk [vmem:[%s1808_s3 + $0x30] sm:$0xff] %vm876_vm6, %v874_v20 }
 0x2d8   : > { %v867_v47 = vpop.xlane.xlu1 %866 }
 0x2d9   : > { %v875_v56 = vadd.f32 %v867_v47, %v691_v37 }
 0x2db   : > { %884 = vst.msk [vmem:[%s1808_s3 + $0x38] sm:$0xff] %vm876_vm6, %v875_v56 }
 0x2dc PF: > { %p11_p9 = scmp.ge.s32.totalorder %s1137_s16, 5   ;;  %s1815_s12 = smov %s1090_s13 }
 0x2dd   : > { %s1816_s13 = smov %s1146_s19  ;;  %s1817_s14 = smov %s1137_s16 }
 0x2de   :  { %13 = sbr.rel (!%p11_p9) target bundleno = 2 (0x2), region = 94 }

// kernel: detm_forward.5
= control target key start
LH: loop header
LB: loop body
LE: loop exit
PB: predicated region body
PF: predicated region fallthrough
CT: control target
= control target key end

     0   :  { %s1582_s18 = smov 0   ;;  %s1584_s19 = smov 0   ;;  %s2103_s0 = inlined_call_operand.vmem [shape: f32[32,64], index: 0, kind: input, shape index: {}]   ;;  %s2104_s1 = inlined_call_operand.vmem [shape: f32[64,64], index: 1, kind: input, shape index: {}]   ;;  %s2105_s2 = inlined_call_operand.vmem [shape: f32[64,1536], index: 2, kind: input, shape index: {}]   ;;  %s2106_s3 = inlined_call_operand.vmem [shape: f32[64,1], index: 3, kind: input, shape index: {}]   ;;  %s2107_s4 = inlined_call_operand.vmem [shape: f32[32,1536], index: 4, kind: input, shape index: {}]   ;;  %s2108_s5 = inlined_call_operand.vmem [shape: f32[32,1], index: 5, kind: output, shape index: {}]  }
   0x1   :  { %s1586_s20 = smov 0   ;;  %s1588_s21 = smov 0  }
   0x2   :  { %s1590_s22 = smov 0  }
   0x3 LB: > { %s24_s23 = sadd.s32 1, %s1543_s21  ;;  %p88_p1 = scmp.ne.s32.totalorder %s1535_s19, %s1531_s18  ;;  %s1547_s22 = sphi %s1590_s22, %s15_s22   ;;  %s1543_s21 = sphi %s1588_s21, %s2113_s21   ;;  %s1539_s20 = sphi %s1586_s20, %s2112_s20   ;;  %s1535_s19 = sphi %s1584_s19, %s2111_s19   ;;  %s1531_s18 = sphi %s1582_s18, %s2110_s18  }
   0x4   : > { %p25_p0 = scmp.ge.s32.totalorder %s24_s23, 3  ;;  %p89_p2 = scmp.eq.s32.totalorder %s1547_s22, 0 }
   0x5   : > { %s81_s26 = sadd.s32 1, %s1535_s19  ;;  %p1325_p5 = scmp.ge.s32.totalorder %s1547_s22, 3 }
   0x6   : > { %s2115_s23 = smov (%p25_p0, %s24_s23), 0  ;;  %p1613_p3 = por %p89_p2, %p88_p1 }
   0x7   : > { %s78_s25 = ssub.s32 %s1543_s21, %s2115_s23  ;;  %204 = sbr.rel (%p1325_p5) target bundleno = 44 (0x2c), region = 28 }
   0x8   : > { %p79_p4 = scmp.eq.s32.totalorder %s78_s25, 0 }
   0xa   : > { %s1621_s27 = scalar_select %p79_p4, %s1535_s19, %s81_s26  }
   0xc   : > { %207 = sbr.rel (!%p1613_p3) target bundleno = 32 (0x20), region = 32  ;;  %s209_s28 = sand.u32 (%p1613_p3), 1, %s1535_s19  }
   0xd   : > { %s1366_s29 = sshll.u32 (%p1613_p3), %s1543_s21, 5  ;;  %s1326_s30 = sshll.u32 (%p1613_p3), %s209_s28, 8 }
   0xe   : > { %s1631_s8 = scalar_lea.vmem (%p1613_p3), %s2105_s2, %s1366_s29  ;;  %s1636_s9 = scalar_lea.vmem (%p1613_p3), [#allocation3], %s1326_s30 }
   0xf   : > { %v227_v0 = vld [vmem:[%s1631_s8] sm:$0xff] (%p1613_p3)  ;;  %v229_v1 = vld [vmem:[%s1631_s8 + $0x8] sm:$0xff] (%p1613_p3)  ;;  %v231_v2 = vld [vmem:[%s1631_s8 + $0x10] sm:$0xff] (%p1613_p3) }
  0x10   : > { %228 = vst [vmem:[%s1636_s9] sm:$0xff] (%p1613_p3), %v227_v0  ;;  %230 = vst [vmem:[%s1636_s9 + $0x8] sm:$0xff] (%p1613_p3), %v229_v1  ;;  %v233_v3 = vld [vmem:[%s1631_s8 + $0x18] sm:$0xff] (%p1613_p3)  ;;  %v235_v4 = vld [vmem:[%s1631_s8 + $0x60] sm:$0xff] (%p1613_p3) }
  0x11   : > { %232 = vst [vmem:[%s1636_s9 + $0x10] sm:$0xff] %v231_v2  ;;  %v237_v5 = vld [vmem:[%s1631_s8 + $0x68] sm:$0xff]  ;;  %234 = vst [vmem:[%s1636_s9 + $0x18] sm:$0xff] %v233_v3  ;;  %v239_v6 = vld [vmem:[%s1631_s8 + $0x70] sm:$0xff] }
  0x12   : > { %236 = vst [vmem:[%s1636_s9 + $0x20] sm:$0xff] %v235_v4  ;;  %238 = vst [vmem:[%s1636_s9 + $0x28] sm:$0xff] %v237_v5  ;;  %v241_v7 = vld [vmem:[%s1631_s8 + $0x78] sm:$0xff]  ;;  %v243_v8 = vld [vmem:[%s1631_s8 + $0xc0] sm:$0xff] }
  0x13   : > { %240 = vst [vmem:[%s1636_s9 + $0x30] sm:$0xff] %v239_v6  ;;  %242 = vst [vmem:[%s1636_s9 + $0x38] sm:$0xff] %v241_v7  ;;  %v245_v9 = vld [vmem:[%s1631_s8 + $0xc8] sm:$0xff]  ;;  %v247_v10 = vld [vmem:[%s1631_s8 + $0xd0] sm:$0xff] }
  0x14   : > { %244 = vst [vmem:[%s1636_s9 + $0x40] sm:$0xff] %v243_v8  ;;  %v249_v11 = vld [vmem:[%s1631_s8 + $0xd8] sm:$0xff]  ;;  %246 = vst [vmem:[%s1636_s9 + $0x48] sm:$0xff] %v245_v9  ;;  %v251_v12 = vld [vmem:[%s1631_s8 + $0x120] sm:$0xff] }
  0x15   : > { %248 = vst [vmem:[%s1636_s9 + $0x50] sm:$0xff] %v247_v10  ;;  %250 = vst [vmem:[%s1636_s9 + $0x58] sm:$0xff] %v249_v11  ;;  %v253_v13 = vld [vmem:[%s1631_s8 + $0x128] sm:$0xff]  ;;  %v255_v14 = vld [vmem:[%s1631_s8 + $0x130] sm:$0xff] }
  0x16   : > { %252 = vst [vmem:[%s1636_s9 + $0x60] sm:$0xff] %v251_v12  ;;  %254 = vst [vmem:[%s1636_s9 + $0x68] sm:$0xff] %v253_v13  ;;  %v257_v15 = vld [vmem:[%s1631_s8 + $0x138] sm:$0xff]  ;;  %v259_v16 = vld [vmem:[%s1631_s8 + $0x180] sm:$0xff] }
  0x17   : > { %256 = vst [vmem:[%s1636_s9 + $0x70] sm:$0xff] %v255_v14  ;;  %v261_v17 = vld [vmem:[%s1631_s8 + $0x188] sm:$0xff]  ;;  %258 = vst [vmem:[%s1636_s9 + $0x78] sm:$0xff] %v257_v15  ;;  %v263_v18 = vld [vmem:[%s1631_s8 + $0x190] sm:$0xff] }
  0x18   : > { %260 = vst [vmem:[%s1636_s9 + $0x80] sm:$0xff] %v259_v16  ;;  %262 = vst [vmem:[%s1636_s9 + $0x88] sm:$0xff] %v261_v17  ;;  %v265_v19 = vld [vmem:[%s1631_s8 + $0x198] sm:$0xff]  ;;  %v267_v20 = vld [vmem:[%s1631_s8 + $0x1e0] sm:$0xff] }
  0x19   : > { %264 = vst [vmem:[%s1636_s9 + $0x90] sm:$0xff] %v263_v18  ;;  %266 = vst [vmem:[%s1636_s9 + $0x98] sm:$0xff] %v265_v19  ;;  %v269_v21 = vld [vmem:[%s1631_s8 + $0x1e8] sm:$0xff]  ;;  %v271_v22 = vld [vmem:[%s1631_s8 + $0x1f0] sm:$0xff] }
  0x1a   : > { %268 = vst [vmem:[%s1636_s9 + $0xa0] sm:$0xff] %v267_v20  ;;  %v273_v23 = vld [vmem:[%s1631_s8 + $0x1f8] sm:$0xff]  ;;  %270 = vst [vmem:[%s1636_s9 + $0xa8] sm:$0xff] %v269_v21  ;;  %v275_v24 = vld [vmem:[%s1631_s8 + $0x240] sm:$0xff] }
  0x1b   : > { %272 = vst [vmem:[%s1636_s9 + $0xb0] sm:$0xff] %v271_v22  ;;  %274 = vst [vmem:[%s1636_s9 + $0xb8] sm:$0xff] %v273_v23  ;;  %v277_v25 = vld [vmem:[%s1631_s8 + $0x248] sm:$0xff]  ;;  %v279_v26 = vld [vmem:[%s1631_s8 + $0x250] sm:$0xff] }
  0x1c   : > { %276 = vst [vmem:[%s1636_s9 + $0xc0] sm:$0xff] %v275_v24  ;;  %278 = vst [vmem:[%s1636_s9 + $0xc8] sm:$0xff] %v277_v25  ;;  %v281_v27 = vld [vmem:[%s1631_s8 + $0x258] sm:$0xff]  ;;  %v283_v28 = vld [vmem:[%s1631_s8 + $0x2a0] sm:$0xff] }
  0x1d   : > { %280 = vst [vmem:[%s1636_s9 + $0xd0] sm:$0xff] %v279_v26  ;;  %v285_v29 = vld [vmem:[%s1631_s8 + $0x2a8] sm:$0xff]  ;;  %282 = vst [vmem:[%s1636_s9 + $0xd8] sm:$0xff] %v281_v27  ;;  %v287_v30 = vld [vmem:[%s1631_s8 + $0x2b0] sm:$0xff] }
  0x1e   : > { %284 = vst [vmem:[%s1636_s9 + $0xe0] sm:$0xff] %v283_v28  ;;  %286 = vst [vmem:[%s1636_s9 + $0xe8] sm:$0xff] %v285_v29  ;;  %v289_v31 = vld [vmem:[%s1631_s8 + $0x2b8] sm:$0xff] }
  0x1f   : > { %288 = vst [vmem:[%s1636_s9 + $0xf0] sm:$0xff] %v287_v30  ;;  %290 = vst [vmem:[%s1636_s9 + $0xf8] sm:$0xff] %v289_v31 }
  0x20 PF: > { %296 = sbr.rel (!%p1613_p3) target bundleno = 44 (0x2c), region = 55  ;;  %s298_s10 = sand.u32 (%p1613_p3), 1, %s1535_s19  }
  0x21   : > { %s1367_s11 = sshll.u32 (%p1613_p3), %s1543_s21, 5  ;;  %s1329_s12 = sshll.u32 (%p1613_p3), %s298_s10, 7 }
  0x22   : > { %s1706_s15 = scalar_lea.vmem (%p1613_p3), %s2107_s4, %s1367_s11  ;;  %s300_s16 = scalar_lea.vmem (%p1613_p3), [#allocation4], %s1329_s12 }
  0x23   : > { %v319_v32 = vld [vmem:[%s1706_s15] sm:$0xff] (%p1613_p3)  ;;  %v321_v33 = vld [vmem:[%s1706_s15 + $0x8] sm:$0xff] (%p1613_p3)  ;;  %v323_v34 = vld [vmem:[%s1706_s15 + $0x10] sm:$0xff] (%p1613_p3) }
  0x24   : > { %320 = vst [vmem:[%s300_s16] sm:$0xff] (%p1613_p3), %v319_v32  ;;  %322 = vst [vmem:[%s300_s16 + $0x8] sm:$0xff] (%p1613_p3), %v321_v33  ;;  %v325_v35 = vld [vmem:[%s1706_s15 + $0x18] sm:$0xff] (%p1613_p3)  ;;  %v327_v36 = vld [vmem:[%s1706_s15 + $0x60] sm:$0xff] (%p1613_p3) }
  0x25   : > { %324 = vst [vmem:[%s300_s16 + $0x10] sm:$0xff] %v323_v34  ;;  %v329_v37 = vld [vmem:[%s1706_s15 + $0x68] sm:$0xff]  ;;  %326 = vst [vmem:[%s300_s16 + $0x18] sm:$0xff] %v325_v35  ;;  %v331_v38 = vld [vmem:[%s1706_s15 + $0x70] sm:$0xff] }
  0x26   : > { %328 = vst [vmem:[%s300_s16 + $0x20] sm:$0xff] %v327_v36  ;;  %330 = vst [vmem:[%s300_s16 + $0x28] sm:$0xff] %v329_v37  ;;  %v333_v39 = vld [vmem:[%s1706_s15 + $0x78] sm:$0xff]  ;;  %v335_v40 = vld [vmem:[%s1706_s15 + $0xc0] sm:$0xff] }
  0x27   : > { %332 = vst [vmem:[%s300_s16 + $0x30] sm:$0xff] %v331_v38  ;;  %334 = vst [vmem:[%s300_s16 + $0x38] sm:$0xff] %v333_v39  ;;  %v337_v41 = vld [vmem:[%s1706_s15 + $0xc8] sm:$0xff]  ;;  %v339_v42 = vld [vmem:[%s1706_s15 + $0xd0] sm:$0xff] }
  0x28   : > { %336 = vst [vmem:[%s300_s16 + $0x40] sm:$0xff] %v335_v40  ;;  %v341_v43 = vld [vmem:[%s1706_s15 + $0xd8] sm:$0xff]  ;;  %338 = vst [vmem:[%s300_s16 + $0x48] sm:$0xff] %v337_v41  ;;  %v343_v44 = vld [vmem:[%s1706_s15 + $0x120] sm:$0xff] }
  0x29   : > { %340 = vst [vmem:[%s300_s16 + $0x50] sm:$0xff] %v339_v42  ;;  %342 = vst [vmem:[%s300_s16 + $0x58] sm:$0xff] %v341_v43  ;;  %v345_v45 = vld [vmem:[%s1706_s15 + $0x128] sm:$0xff]  ;;  %v347_v46 = vld [vmem:[%s1706_s15 + $0x130] sm:$0xff] }
  0x2a   : > { %344 = vst [vmem:[%s300_s16 + $0x60] sm:$0xff] %v343_v44  ;;  %346 = vst [vmem:[%s300_s16 + $0x68] sm:$0xff] %v345_v45  ;;  %v349_v47 = vld [vmem:[%s1706_s15 + $0x138] sm:$0xff] }
  0x2b   : > { %348 = vst [vmem:[%s300_s16 + $0x70] sm:$0xff] %v347_v46  ;;  %350 = vst [vmem:[%s300_s16 + $0x78] sm:$0xff] %v349_v47 }
  0x2c PF: > { %p1332_p6 = scmp.ge.s32.totalorder %s1547_s22, 1  ;;  %p355_p7 = scmp.lt.s32.totalorder %s1547_s22, 4 }
  0x2e   : > { %p356_p8 = pnand %p1332_p6, %p355_p7 }
  0x2f   : > { %s362_s17 = sand.u32 (!%p356_p8), 1, %s1531_s18   ;;  %p1335_p9 = scmp.ne.s32.totalorder (!%p356_p8), %s1539_s20, 0 }
  0x30   : > { %359 = sbr.rel (%p356_p8) target bundleno = 721 (0x2d1), region = 78  ;;  %s1333_s24 = sshll.u32 (!%p356_p8), %s362_s17, 8 }
  0x31   : > { %s1334_s25 = sshll.u32 (!%p356_p8), %s362_s17, 7  ;;  %s1727_s26 = scalar_lea.vmem (!%p356_p8), [#allocation3], %s1333_s24 }
  0x32   : > { %s1729_s28 = scalar_lea.vmem (!%p356_p8), [#allocation4], %s1334_s25 }
  0x35   : > { %423 = sbr.rel (%p1335_p9) target bundleno = 61 (0x3d), region = 90 }
  0x3a   : > { %vm424_vm0 = vcmask 7168   ;;  %v1549_v48 = vmov 0.0  }
  0x3b   : > { %425 = vst.msk [vmem:[#allocation2] sm:$0xff] %vm424_vm0, %v1549_v48  ;;  %426 = vst.msk [vmem:[#allocation2 + $0x8] sm:$0xff] %vm424_vm0, %v1549_v48 }
  0x3c   : > { %427 = vst.msk [vmem:[#allocation2 + $0x10] sm:$0xff] %vm424_vm0, %v1549_v48  ;;  %428 = vst.msk [vmem:[#allocation2 + $0x18] sm:$0xff] %vm424_vm0, %v1549_v48 }
  0x3d PF: > { %v466_v49 = vld [vmem:[%s1727_s26 + $0xe8] sm:$0xff]  ;;  %v468_v50 = vld [vmem:[%s1727_s26 + $0xf8] sm:$0xff]  ;;  %v465_v51 = vld [vmem:[%s1727_s26 + $0xe0] sm:$0xff]  ;;  %vm469_vm1 = vcmask 523264   ;;  %v1550_v18 = vmov 0.0   ;;  %v1551_v22 = vmov 0   ;;  %v721_v36 = vlaneseq }
  0x3e   : > { %510 = vmatprep.subr.mxu0 %v466_v49  ;;  %623 = vmatprep.subr.mxu1 %v468_v50  ;;  %v467_v52 = vld [vmem:[%s1727_s26 + $0xf0] sm:$0xff]  ;;  %v462_v53 = vld [vmem:[%s1727_s26 + $0xc8] sm:$0xff]  ;;  %v464_v54 = vld [vmem:[%s1727_s26 + $0xd8] sm:$0xff]  ;;  %s1352_s17 = sshll.u32 %s1539_s20, 9  ;;  %vm1197_vm6 = vcmask 7168   ;;  %p1361_p10 = scmp.ne.s32.totalorder %s1539_s20, 2 }
  0x3f   : > { %511 = vmatpush1.msra.mxu0 %v465_v51  ;;  %624 = vmatpush1.msra.mxu1 %v467_v52  ;;  %v461_v55 = vld [vmem:[%s1727_s26 + $0xc0] sm:$0xff]  ;;  %v463_v56 = vld [vmem:[%s1727_s26 + $0xd0] sm:$0xff]  ;;  %v458_v57 = vld [vmem:[%s1727_s26 + $0xa8] sm:$0xff]  ;;  %v722_v38 = vand.u32 127, %v721_v36  ;;  %v726_v41 = vstv %s1352_s17 }
  0x40   : > { %512 = vmatprep.subr.mxu0 %v462_v53  ;;  %625 = vmatprep.subr.mxu1 %v464_v54  ;;  %v460_v58 = vld [vmem:[%s1727_s26 + $0xb8] sm:$0xff]  ;;  %v457_v59 = vld [vmem:[%s1727_s26 + $0xa0] sm:$0xff]  ;;  %v459_v60 = vld [vmem:[%s1727_s26 + $0xb0] sm:$0xff] }
  0x41   : > { %513 = vmatpush1.msra.mxu0 %v461_v55  ;;  %626 = vmatpush1.msra.mxu1 %v463_v56  ;;  %v454_v61 = vld [vmem:[%s1727_s26 + $0x88] sm:$0xff]  ;;  %v456_v62 = vld [vmem:[%s1727_s26 + $0x98] sm:$0xff]  ;;  %v453_v63 = vld [vmem:[%s1727_s26 + $0x80] sm:$0xff]  ;;  %v723_v42 = vadd.s32 128, %v722_v38  ;;  %v1859_v46 = vadd.s32 %v726_v41, %v722_v38 }
  0x42   : > { %514 = vmatprep.subr.mxu0 %v458_v57  ;;  %627 = vmatprep.subr.mxu1 %v460_v58  ;;  %v455_v0 = vld [vmem:[%s1727_s26 + $0x90] sm:$0xff]  ;;  %v450_v1 = vld [vmem:[%s1727_s26 + $0x68] sm:$0xff]  ;;  %v452_v2 = vld [vmem:[%s1727_s26 + $0x78] sm:$0xff] }
  0x43   : > { %515 = vmatpush1.msra.mxu0 %v457_v59  ;;  %628 = vmatpush1.msra.mxu1 %v459_v60  ;;  %v449_v3 = vld [vmem:[%s1727_s26 + $0x60] sm:$0xff]  ;;  %v451_v4 = vld [vmem:[%s1727_s26 + $0x70] sm:$0xff]  ;;  %v446_v5 = vld [vmem:[%s1727_s26 + $0x48] sm:$0xff]  ;;  %v1861_v48 = vadd.s32 %v726_v41, %v723_v42  ;;  %vm731_vm2 = vcmp.lt.s32.totalorder %v1859_v46, 1500 }
  0x44   : > { %516 = vmatprep.subr.mxu0 %v454_v61  ;;  %629 = vmatprep.subr.mxu1 %v456_v62  ;;  %v448_v6 = vld [vmem:[%s1727_s26 + $0x58] sm:$0xff]  ;;  %v445_v7 = vld [vmem:[%s1727_s26 + $0x40] sm:$0xff]  ;;  %v447_v8 = vld [vmem:[%s1727_s26 + $0x50] sm:$0xff] }
  0x45   : > { %517 = vmatpush1.msra.mxu0 %v453_v63  ;;  %630 = vmatpush1.msra.mxu1 %v455_v0  ;;  %v442_v9 = vld [vmem:[%s1727_s26 + $0x28] sm:$0xff]  ;;  %v444_v10 = vld [vmem:[%s1727_s26 + $0x38] sm:$0xff]  ;;  %v441_v11 = vld [vmem:[%s1727_s26 + $0x20] sm:$0xff]  ;;  %vm732_vm3 = vcmp.lt.s32.totalorder %v1861_v48, 1500 }
  0x46   : > { %518 = vmatprep.subr.mxu0 %v450_v1  ;;  %631 = vmatprep.subr.mxu1 %v452_v2  ;;  %v443_v12 = vld [vmem:[%s1727_s26 + $0x30] sm:$0xff]  ;;  %v438_v13 = vld [vmem:[%s1727_s26 + $0x8] sm:$0xff]  ;;  %v440_v14 = vld [vmem:[%s1727_s26 + $0x18] sm:$0xff] }
  0x47   : > { %519 = vmatpush1.msra.mxu0 %v449_v3  ;;  %632 = vmatpush1.msra.mxu1 %v451_v4  ;;  %v437_v15 = vld [vmem:[%s1727_s26] sm:$0xff]  ;;  %v439_v16 = vld [vmem:[%s1727_s26 + $0x10] sm:$0xff]  ;;  %v772_v19 = vld [vmem:[%s2106_s3 + $0x28] sm:$0xff] }
  0x48   : > { %520 = vmatprep.subr.mxu0 %v446_v5  ;;  %633 = vmatprep.subr.mxu1 %v448_v6  ;;  %v429_v17 = vld [vmem:[%s2104_s1] sm:$0xff]  ;;  %v774_v20 = vld [vmem:[%s2106_s3 + $0x38] sm:$0xff]  ;;  %v430_v21 = vld [vmem:[%s2104_s1 + $0x8] sm:$0xff] }
  0x49   : > { %521 = vmatpush1.msra.mxu0 %v445_v7  ;;  %634 = vmatpush1.msra.mxu1 %v447_v8  ;;  %v771_v23 = vld [vmem:[%s2106_s3 + $0x20] sm:$0xff]  ;;  %v773_v24 = vld [vmem:[%s2106_s3 + $0x30] sm:$0xff]  ;;  %v770_v27 = vld [vmem:[%s2106_s3 + $0x18] sm:$0xff] }
  0x4a   : > { %522 = vmatprep.subr.mxu0 %v442_v9  ;;  %635 = vmatprep.subr.mxu1 %v444_v10  ;;  %v431_v25 = vld [vmem:[%s2104_s1 + $0x10] sm:$0xff]  ;;  %v432_v28 = vld [vmem:[%s2104_s1 + $0x18] sm:$0xff]  ;;  %v767_v29 = vld [vmem:[%s2106_s3] sm:$0xff] }
  0x4b   : > { %523 = vmatpush1.msra.mxu0 %v441_v11  ;;  %636 = vmatpush1.msra.mxu1 %v443_v12  ;;  %v769_v26 = vld [vmem:[%s2106_s3 + $0x10] sm:$0xff]  ;;  %v768_v30 = vld [vmem:[%s2106_s3 + $0x8] sm:$0xff]  ;;  %v433_v31 = vld [vmem:[%s2104_s1 + $0x20] sm:$0xff] }
  0x4c   : > { %524 = vmatprep.subr.mxu0 %v438_v13  ;;  %637 = vmatprep.subr.mxu1 %v440_v14  ;;  %v434_v32 = vld [vmem:[%s2104_s1 + $0x28] sm:$0xff]  ;;  %v435_v33 = vld [vmem:[%s2104_s1 + $0x30] sm:$0xff]  ;;  %v436_v34 = vld [vmem:[%s2104_s1 + $0x38] sm:$0xff] }
  0x4d   : > { %525 = vmatpush1.msra.mxu0 %v437_v15  ;;  %558 = vmatprep.mubr.f32.mxu0 %v1550_v18  ;;  %v724_v15 = vadd.s32 256, %v722_v38 }
  0x4e   : > { %638 = vmatpush1.msra.mxu1 %v439_v16  ;;  %671 = vmatprep.mubr.f32.mxu1 %v1550_v18 }
  0x4f   : > { %1336 = vmatmul.mubr.msk.f32.vlgmr.msra.gmra.mxu0 %vm469_vm1, %v429_v17  ;;  %1344 = vmatmul.mubr.msk.f32.vlgmr.msra.gmra.mxu1 %vm469_vm1, %v429_v17  ;;  %v725_v17 = vadd.s32 384, %v722_v38 }
  0x50   : > { %564 = vmatprep.mubr.f32.mxu0 %v1550_v18  ;;  %677 = vmatprep.mubr.f32.mxu1 %v1550_v18 }
  0x51   : > { %1412 = vset.pattern.permute.xlu1 %v1551_v22  ;;  %1411 = vset.pattern.permute.xlu0 %v1551_v22 }
  0x52   : > { %802 = vperm.xlu1 %1412, %v772_v19   ;;  %812 = vperm.xlu0 %1411, %v774_v20  }
  0x53   : > { %1337 = vmatmul.mubr.msk.f32.gmra.mxu0 %vm469_vm1, %v430_v21  ;;  %1345 = vmatmul.mubr.msk.f32.gmra.mxu1 %vm469_vm1, %v430_v21 }
  0x54   : > { %570 = vmatprep.mubr.f32.mxu0 %v1550_v18  ;;  %683 = vmatprep.mubr.f32.mxu1 %v1550_v18 }
  0x56   : > { %797 = vperm.xlu1 %1412, %v771_v23   ;;  %807 = vperm.xlu0 %1411, %v773_v24  }
  0x57   : > { %1338 = vmatmul.mubr.msk.f32.gmra.mxu0 %vm469_vm1, %v431_v25  ;;  %1346 = vmatmul.mubr.msk.f32.gmra.mxu1 %vm469_vm1, %v431_v25 }
  0x58   : > { %576 = vmatprep.mubr.f32.mxu0 %v1550_v18  ;;  %689 = vmatprep.mubr.f32.mxu1 %v1550_v18 }
  0x5a   : > { %787 = vperm.xlu1 %1412, %v769_v26   ;;  %792 = vperm.xlu0 %1411, %v770_v27  }
  0x5b   : > { %1339 = vmatmul.mubr.msk.f32.gmra.mxu0 %vm469_vm1, %v432_v28  ;;  %1347 = vmatmul.mubr.msk.f32.gmra.mxu1 %vm469_vm1, %v432_v28 }
  0x5c   : > { %582 = vmatprep.mubr.f32.mxu0 %v1550_v18  ;;  %695 = vmatprep.mubr.f32.mxu1 %v1550_v18 }
  0x5e   : > { %777 = vperm.xlu1 %1412, %v767_v29   ;;  %782 = vperm.xlu0 %1411, %v768_v30  }
  0x5f   : > { %1340 = vmatmul.mubr.msk.f32.gmra.mxu0 %vm469_vm1, %v433_v31  ;;  %1348 = vmatmul.mubr.msk.f32.gmra.mxu1 %vm469_vm1, %v433_v31 }
  0x60   : > { %588 = vmatprep.mubr.f32.mxu0 %v1550_v18  ;;  %701 = vmatprep.mubr.f32.mxu1 %v1550_v18 }
  0x63   : > { %1341 = vmatmul.mubr.msk.f32.gmra.mxu0 %vm469_vm1, %v434_v32  ;;  %1349 = vmatmul.mubr.msk.f32.gmra.mxu1 %vm469_vm1, %v434_v32  ;;  %v1914_v32 = vadd.s32 %v726_v41, %v724_v15 }
  0x64   : > { %594 = vmatprep.mubr.f32.mxu0 %v1550_v18  ;;  %707 = vmatprep.mubr.f32.mxu1 %v1550_v18 }
  0x65   : > { %vm733_vm4 = vcmp.lt.s32.totalorder %v1914_v32, 1500 }
  0x67   : > { %1342 = vmatmul.mubr.msk.f32.gmra.mxu0 %vm469_vm1, %v435_v33  ;;  %1350 = vmatmul.mubr.msk.f32.gmra.mxu1 %vm469_vm1, %v435_v33  ;;  %v1916_v33 = vadd.s32 %v726_v41, %v725_v17 }
  0x68   : > { %600 = vmatprep.mubr.f32.mxu0 %v1550_v18  ;;  %713 = vmatprep.mubr.f32.mxu1 %v1550_v18 }
  0x69   : > { %vm734_vm5 = vcmp.lt.s32.totalorder %v1916_v33, 1500 }
  0x6b   : > { %1343 = vmatmul.mubr.msk.f32.gmra.mxu0 %vm469_vm1, %v436_v34  ;;  %1351 = vmatmul.mubr.msk.f32.gmra.mxu1 %vm469_vm1, %v436_v34 }
  0x6c   : > { %1007 = vmatprep.mubr.f32.mxu0 %v1550_v18  ;;  %1096 = vmatprep.mubr.f32.mxu1 %v1550_v18 }
  0xcd   : > { %v1846_v35 = vpop.permute.xlu1 %802  ;;  %v1848_v37 = vpop.permute.xlu0 %812 }
  0xd1   : > { %v1850_v39 = vpop.permute.xlu1 %797  ;;  %v1853_v40 = vpop.permute.xlu0 %807 }
  0xd5   : > { %v1857_v45 = vpop.permute.xlu1 %787  ;;  %v1865_v50 = vpop.permute.xlu0 %792 }
  0xd9   : > { %v1873_v55 = vpop.permute.xlu1 %777  ;;  %v1881_v60 = vpop.permute.xlu0 %782 }
 0x10f   : > { %v560_v43 = vpop.f32.mrf.mxu0  ;;  %v1855_v44 = vpop.f32.mrf.mxu1 }
 0x110   : > { %v735_v56 = vsel %vm731_vm2, %v560_v43, -inf }
 0x111   : > { %v562_v47 = vpop.f32.mrf.mxu0  ;;  %v1863_v49 = vpop.f32.mrf.mxu1  ;;  %v815_v0 = vsub.f32 %v735_v56, %v1873_v55 }
 0x112   : > { %v736_v59 = vsel %vm732_vm3, %v562_v47, -inf }
 0x113   : > { %v566_v51 = vpop.f32.mrf.mxu0  ;;  %v1867_v52 = vpop.f32.mrf.mxu1  ;;  %v816_v2 = vsub.f32 %v736_v59, %v1873_v55  ;;  %v847_v12 = vmul.f32 1.442695, %v815_v0 }
 0x114   : > { %v739_v61 = vsel %vm731_vm2, %v566_v51, -inf }
 0x115   : > { %v568_v53 = vpop.f32.mrf.mxu0  ;;  %v1871_v54 = vpop.f32.mrf.mxu1  ;;  %v819_v6 = vsub.f32 %v739_v61, %v1881_v60  ;;  %v849_v16 = vmul.f32 1.442695, %v816_v2  ;;  %1413 = vpow2.f32 %v847_v12 }
 0x116   : > { %v740_v1 = vsel %vm732_vm3, %v568_v53, -inf }
 0x117   : > { %v572_v57 = vpop.f32.mrf.mxu0  ;;  %v1877_v58 = vpop.f32.mrf.mxu1  ;;  %v820_v8 = vsub.f32 %v740_v1, %v1881_v60  ;;  %v855_v22 = vmul.f32 1.442695, %v819_v6  ;;  %1415 = vpow2.f32 %v849_v16 }
 0x118   : > { %v743_v3 = vsel %vm731_vm2, %v572_v57, -inf }
 0x119   : > { %v574_v62 = vpop.f32.mrf.mxu0  ;;  %v1885_v63 = vpop.f32.mrf.mxu1  ;;  %v823_v13 = vsub.f32 %v743_v3, %v1857_v45  ;;  %v857_v25 = vmul.f32 1.442695, %v820_v8  ;;  %1417 = vpow2.f32 %v855_v22 }
 0x11a   : > { %v744_v7 = vsel %vm732_vm3, %v574_v62, -inf }
 0x11b   : > { %v578_v4 = vpop.f32.mrf.mxu0  ;;  %v1893_v5 = vpop.f32.mrf.mxu1  ;;  %v824_v19 = vsub.f32 %v744_v7, %v1857_v45  ;;  %v863_v29 = vmul.f32 1.442695, %v823_v13  ;;  %1419 = vpow2.f32 %v857_v25 }
 0x11c   : > { %v747_v9 = vsel %vm731_vm2, %v578_v4, -inf }
 0x11d   : > { %v580_v10 = vpop.f32.mrf.mxu0  ;;  %v693_v11 = vpop.f32.mrf.mxu1  ;;  %v827_v23 = vsub.f32 %v747_v9, %v1865_v50  ;;  %v865_v34 = vmul.f32 1.442695, %v824_v19  ;;  %1421 = vpow2.f32 %v863_v29 }
 0x11e   : > { %v748_v14 = vsel %vm732_vm3, %v580_v10, -inf  ;;  %v1929_v1 = vsel %vm734_vm5, %v693_v11, -inf }
 0x11f   : > { %v584_v20 = vpop.f32.mrf.mxu0  ;;  %v1905_v21 = vpop.f32.mrf.mxu1  ;;  %v828_v26 = vsub.f32 %v748_v14, %v1865_v50  ;;  %v871_v42 = vmul.f32 1.442695, %v827_v23  ;;  %1423 = vpow2.f32 %v865_v34 }
 0x120   : > { %v751_v24 = vsel %vm731_vm2, %v584_v20, -inf }
 0x121   : > { %v586_v27 = vpop.f32.mrf.mxu0  ;;  %v699_v28 = vpop.f32.mrf.mxu1  ;;  %v831_v30 = vsub.f32 %v751_v24, %v1850_v39  ;;  %v873_v51 = vmul.f32 1.442695, %v828_v26  ;;  %1425 = vpow2.f32 %v871_v42 }
 0x122   : > { %v752_v31 = vsel %vm732_vm3, %v586_v27, -inf  ;;  %v1935_v4 = vsel %vm734_vm5, %v699_v28, -inf  ;;  %v1961_v34 = vpop.eup %1413 }
 0x123   : > { %v590_v36 = vpop.f32.mrf.mxu0  ;;  %v703_v38 = vpop.f32.mrf.mxu1  ;;  %v832_v43 = vsub.f32 %v752_v31, %v1850_v39  ;;  %v879_v59 = vmul.f32 1.442695, %v831_v30  ;;  %1427 = vpow2.f32 %v873_v51 }
 0x124   : > { %v755_v47 = vsel %vm731_vm2, %v590_v36, -inf  ;;  %v757_v10 = vsel %vm733_vm4, %v703_v38, -inf }
 0x125   : > { %v835_v53 = vsub.f32 %v755_v47, %v1846_v35  ;;  %v592_v56 = vpop.f32.mrf.mxu0  ;;  %v705_v57 = vpop.f32.mrf.mxu1  ;;  %v881_v2 = vmul.f32 1.442695, %v832_v43  ;;  %1429 = vpow2.f32 %v879_v59  ;;  %v837_v48 = vsub.f32 %v757_v10, %v1846_v35 }
 0x126   : > { %v756_v41 = vsel %vm732_vm3, %v592_v56, -inf  ;;  %v758_v14 = vsel %vm734_vm5, %v705_v57, -inf  ;;  %v1965_v43 = vpop.eup %1415 }
 0x127   : > { %v836_v61 = vsub.f32 %v756_v41, %v1846_v35  ;;  %v596_v62 = vpop.f32.mrf.mxu0  ;;  %v709_v0 = vpop.f32.mrf.mxu1  ;;  %v887_v6 = vmul.f32 1.442695, %v835_v53  ;;  %1431 = vpow2.f32 %v881_v2  ;;  %v838_v47 = vsub.f32 %v758_v14, %v1846_v35 }
 0x128   : > { %v759_v3 = vsel %vm731_vm2, %v596_v62, -inf  ;;  %v761_v11 = vsel %vm733_vm4, %v709_v0, -inf  ;;  %v1972_v51 = vpop.eup %1417  ;;  %v746_v35 = vsel %vm734_vm5, %v1885_v63, -inf  ;;  %v742_v63 = vsel %vm734_vm5, %v1871_v54, -inf }
 0x129   : > { %v839_v7 = vsub.f32 %v759_v3, %v1853_v40  ;;  %v598_v8 = vpop.f32.mrf.mxu0  ;;  %v711_v9 = vpop.f32.mrf.mxu1  ;;  %v889_v13 = vmul.f32 1.442695, %v836_v61  ;;  %1433 = vpow2.f32 %v887_v6  ;;  %v841_v24 = vsub.f32 %v761_v11, %v1853_v40 }
 0x12a   : > { %v760_v12 = vsel %vm732_vm3, %v598_v8, -inf  ;;  %v762_v16 = vsel %vm734_vm5, %v711_v9, -inf  ;;  %v1974_v59 = vpop.eup %1419  ;;  %v830_v3 = vsub.f32 %v1929_v1, %v1865_v50  ;;  %v826_v1 = vsub.f32 %v746_v35, %v1857_v45 }
 0x12b   : > { %v840_v15 = vsub.f32 %v760_v12, %v1853_v40  ;;  %v602_v17 = vpop.f32.mrf.mxu0  ;;  %v715_v19 = vpop.f32.mrf.mxu1  ;;  %v895_v20 = vmul.f32 1.442695, %v839_v7  ;;  %v842_v29 = vsub.f32 %v762_v16, %v1853_v40  ;;  %1435 = vpow2.f32 %v889_v13 }
 0x12c   : > { %v763_v22 = vsel %vm731_vm2, %v602_v17, -inf  ;;  %v765_v23 = vsel %vm733_vm4, %v715_v19, -inf  ;;  %v753_v40 = vsel %vm733_vm4, %v1905_v21, -inf  ;;  %v834_v21 = vsub.f32 %v1935_v4, %v1850_v39  ;;  %v1981_v61 = vpop.eup %1421 }
 0x12d   : > { %v897_v25 = vmul.f32 1.442695, %v840_v15  ;;  %v843_v26 = vsub.f32 %v763_v22, %v1848_v37  ;;  %v604_v27 = vpop.f32.mrf.mxu0  ;;  %v717_v28 = vpop.f32.mrf.mxu1  ;;  %v845_v30 = vsub.f32 %v765_v23, %v1848_v37  ;;  %1437 = vpow2.f32 %v895_v20 }
 0x12e   : > { %v764_v31 = vsel %vm732_vm3, %v604_v27, -inf  ;;  %v766_v46 = vsel %vm734_vm5, %v717_v28, -inf  ;;  %v901_v41 = vmul.f32 1.442695, %v842_v29  ;;  %v833_v62 = vsub.f32 %v753_v40, %v1850_v39  ;;  %v1987_v2 = vpop.eup %1423 }
 0x12f   : > { %v903_v36 = vmul.f32 1.442695, %v843_v26  ;;  %v844_v38 = vsub.f32 %v764_v31, %v1848_v37  ;;  %v846_v42 = vsub.f32 %v766_v46, %v1848_v37  ;;  %1439 = vpow2.f32 %v897_v25  ;;  %v1994_v6 = vpop.eup %1425 }
 0x130   : > { %v907_v53 = vmul.f32 1.442695, %v845_v30  ;;  %v749_v37 = vsel %vm733_vm4, %v1893_v5, -inf  ;;  %v899_v0 = vmul.f32 1.442695, %v841_v24  ;;  %v745_v5 = vsel %vm733_vm4, %v1877_v58, -inf  ;;  %v2000_v8 = vpop.eup %1427 }
 0x131   : > { %v905_v56 = vmul.f32 1.442695, %v844_v38  ;;  %v909_v57 = vmul.f32 1.442695, %v846_v42  ;;  %1441 = vpow2.f32 %v903_v36  ;;  %v893_v4 = vmul.f32 1.442695, %v838_v47 }
 0x132   : > { %v829_v39 = vsub.f32 %v749_v37, %v1865_v50  ;;  %v891_v7 = vmul.f32 1.442695, %v837_v48  ;;  %v741_v58 = vsel %vm733_vm4, %v1867_v52, -inf  ;;  %v885_v9 = vmul.f32 1.442695, %v834_v21  ;;  %v1430_v10 = vpop.eup %1429 }
 0x133   : > { %1443 = vpow2.f32 %v905_v56  ;;  %v738_v11 = vsel %vm734_vm5, %v1863_v49, -inf  ;;  %v825_v54 = vsub.f32 %v745_v5, %v1857_v45  ;;  %v883_v50 = vmul.f32 1.442695, %v833_v62  ;;  %v911_v56 = vld [vmem:[%s2103_s0] sm:$0xff] }
 0x134   : > { %1445 = vpow2.f32 %v909_v57  ;;  %v737_v12 = vsel %vm733_vm4, %v1855_v44, -inf  ;;  %v822_v13 = vsub.f32 %v742_v63, %v1881_v60  ;;  %v877_v52 = vmul.f32 1.442695, %v830_v3  ;;  %v1432_v14 = vpop.eup %1431 }
 0x135   : > { %1447 = vpow2.f32 %v907_v53  ;;  %v821_v15 = vsub.f32 %v741_v58, %v1881_v60  ;;  %v875_v16 = vmul.f32 1.442695, %v829_v39  ;;  %v818_v49 = vsub.f32 %v738_v11, %v1873_v55 }
 0x136   : > { %1449 = vpow2.f32 %v901_v41  ;;  %v1434_v17 = vpop.eup %1433  ;;  %v869_v33 = vmul.f32 1.442695, %v826_v1  ;;  %v817_v45 = vsub.f32 %v737_v12, %v1873_v55  ;;  %v867_v19 = vmul.f32 1.442695, %v825_v54 }
 0x137   : > { %1451 = vpow2.f32 %v899_v0  ;;  %v861_v44 = vmul.f32 1.442695, %v822_v13  ;;  %v859_v22 = vmul.f32 1.442695, %v821_v15  ;;  %v853_v24 = vmul.f32 1.442695, %v818_v49 }
 0x138   : > { %1453 = vpow2.f32 %v893_v4  ;;  %v1436_v32 = vpop.eup %1435  ;;  %v851_v25 = vmul.f32 1.442695, %v817_v45 }
 0x139   : > { %1455 = vpow2.f32 %v891_v7 }
 0x13a   : > { %1457 = vpow2.f32 %v885_v9  ;;  %v1438_v20 = vpop.eup %1437 }
 0x13b   : > { %1459 = vpow2.f32 %v883_v50 }
 0x13c   : > { %1461 = vpow2.f32 %v877_v52  ;;  %v1440_v23 = vpop.eup %1439 }
 0x13d   : > { %1463 = vpow2.f32 %v875_v16 }
 0x13e   : > { %1465 = vpow2.f32 %v869_v33  ;;  %v1442_v60 = vpop.eup %1441 }
 0x13f   : > { %1467 = vpow2.f32 %v867_v19 }
 0x140   : > { %v1444_v26 = vpop.eup %1443  ;;  %1469 = vpow2.f32 %v861_v44  ;;  %v915_v44 = vld [vmem:[%s1729_s28] sm:$0xff] }
 0x141   : > { %v1446_v27 = vpop.eup %1445  ;;  %1471 = vpow2.f32 %v859_v22  ;;  %959 = vmatprep.subr.mxu0 %v1444_v26 }
 0x142   : > { %v1448_v55 = vpop.eup %1447  ;;  %1473 = vpow2.f32 %v853_v24  ;;  %1048 = vmatprep.subr.mxu1 %v1446_v27  ;;  %960 = vmatpush1.msra.mxu0 %v1442_v60 }
 0x143   : > { %v1450_v28 = vpop.eup %1449  ;;  %1475 = vpow2.f32 %v851_v25  ;;  %1049 = vmatpush1.msra.mxu1 %v1448_v55  ;;  %961 = vmatprep.subr.mxu0 %v1440_v23  ;;  %v917_v23 = vld [vmem:[%s1729_s28 + $0x10] sm:$0xff] }
 0x144   : > { %v1452_v29 = vpop.eup %1451  ;;  %1050 = vmatprep.subr.mxu1 %v1450_v28  ;;  %962 = vmatpush1.msra.mxu0 %v1438_v20  ;;  %v916_v20 = vld [vmem:[%s1729_s28 + $0x8] sm:$0xff] }
 0x145   : > { %v1454_v30 = vpop.eup %1453  ;;  %1051 = vmatpush1.msra.mxu1 %v1452_v29  ;;  %963 = vmatprep.subr.mxu0 %v1436_v32  ;;  %v919_v29 = vld [vmem:[%s1729_s28 + $0x20] sm:$0xff] }
 0x146   : > { %v1456_v31 = vpop.eup %1455  ;;  %1052 = vmatprep.subr.mxu1 %v1454_v30  ;;  %964 = vmatpush1.msra.mxu0 %v1434_v17 }
 0x147   : > { %v1458_v46 = vpop.eup %1457  ;;  %1053 = vmatpush1.msra.mxu1 %v1456_v31  ;;  %965 = vmatprep.subr.mxu0 %v1432_v14  ;;  %v918_v31 = vld [vmem:[%s1729_s28 + $0x18] sm:$0xff] }
 0x148   : > { %v1460_v36 = vpop.eup %1459  ;;  %1054 = vmatprep.subr.mxu1 %v1458_v46  ;;  %966 = vmatpush1.msra.mxu0 %v1430_v10 }
 0x149   : > { %v1462_v38 = vpop.eup %1461  ;;  %1055 = vmatpush1.msra.mxu1 %v1460_v36  ;;  %967 = vmatprep.subr.mxu0 %v2000_v8 }
 0x14a   : > { %v1464_v42 = vpop.eup %1463  ;;  %1056 = vmatprep.subr.mxu1 %v1462_v38  ;;  %968 = vmatpush1.msra.mxu0 %v1994_v6  ;;  %v920_v38 = vld [vmem:[%s1729_s28 + $0x28] sm:$0xff] }
 0x14b   : > { %v1466_v40 = vpop.eup %1465  ;;  %1057 = vmatpush1.msra.mxu1 %v1464_v42  ;;  %969 = vmatprep.subr.mxu0 %v1987_v2 }
 0x14c   : > { %v1468_v48 = vpop.eup %1467  ;;  %1058 = vmatprep.subr.mxu1 %v1466_v40  ;;  %970 = vmatpush1.msra.mxu0 %v1981_v61  ;;  %v921_v40 = vld [vmem:[%s1729_s28 + $0x30] sm:$0xff] }
 0x14d   : > { %v1470_v47 = vpop.eup %1469  ;;  %1059 = vmatpush1.msra.mxu1 %v1468_v48  ;;  %971 = vmatprep.subr.mxu0 %v1974_v59 }
 0x14e   : > { %v1472_v53 = vpop.eup %1471  ;;  %1060 = vmatprep.subr.mxu1 %v1470_v47  ;;  %972 = vmatpush1.msra.mxu0 %v1972_v51  ;;  %v912_v51 = vld [vmem:[%s2103_s0 + $0x8] sm:$0xff] }
 0x14f   : > { %v1474_v57 = vpop.eup %1473  ;;  %1061 = vmatpush1.msra.mxu1 %v1472_v53  ;;  %973 = vmatprep.subr.mxu0 %v1965_v43  ;;  %v914_v43 = vld [vmem:[%s2103_s0 + $0x18] sm:$0xff] }
 0x150   : > { %v1476_v37 = vpop.eup %1475  ;;  %1062 = vmatprep.subr.mxu1 %v1474_v57  ;;  %974 = vmatpush1.msra.mxu0 %v1961_v34  ;;  %v913_v34 = vld [vmem:[%s2103_s0 + $0x10] sm:$0xff] }
 0x151   : > { %1063 = vmatpush1.msra.mxu1 %v1476_v37  ;;  %1353 = vmatmul.mubr.msk.f32.vlgmr.msra.gmra.mxu0 %vm469_vm1, %v911_v56 }
 0x152   : > { %1013 = vmatprep.mubr.f32.mxu0 %v1550_v18  ;;  %1357 = vmatmul.mubr.msk.f32.vlgmr.msra.gmra.mxu1 %vm469_vm1, %v911_v56 }
 0x153   : > { %1102 = vmatprep.mubr.f32.mxu1 %v1550_v18 }
 0x155   : > { %1354 = vmatmul.mubr.msk.f32.gmra.mxu0 %vm469_vm1, %v912_v51 }
 0x156   : > { %1019 = vmatprep.mubr.f32.mxu0 %v1550_v18  ;;  %1358 = vmatmul.mubr.msk.f32.gmra.mxu1 %vm469_vm1, %v912_v51 }
 0x157   : > { %1108 = vmatprep.mubr.f32.mxu1 %v1550_v18 }
 0x159   : > { %1355 = vmatmul.mubr.msk.f32.gmra.mxu0 %vm469_vm1, %v913_v34 }
 0x15a   : > { %1025 = vmatprep.mubr.f32.mxu0 %v1550_v18  ;;  %1359 = vmatmul.mubr.msk.f32.gmra.mxu1 %vm469_vm1, %v913_v34 }
 0x15b   : > { %1114 = vmatprep.mubr.f32.mxu1 %v1550_v18 }
 0x15d   : > { %1356 = vmatmul.mubr.msk.f32.gmra.mxu0 %vm469_vm1, %v914_v43 }
 0x15e   : > { %1360 = vmatmul.mubr.msk.f32.gmra.mxu1 %vm469_vm1, %v914_v43 }
 0x211   : > { %v1009_v59 = vpop.f32.mrf.mxu0 }
 0x212   : > { %v1010_v21 = vadd.f32 1e-06, %v1009_v59  ;;  %v1098_v41 = vpop.f32.mrf.mxu1  ;;  %v923_v59 = vld [vmem:[%s1729_s28 + $0x40] sm:$0xff] }
 0x213   : > { %v1011_v61 = vpop.f32.mrf.mxu0  ;;  %v1099_v35 = vadd.f32 1e-06, %v1098_v41 }
 0x214   : > { %1477 = vlog2.f32 %v1010_v21  ;;  %v1012_v62 = vadd.f32 1e-06, %v1011_v61  ;;  %v1100_v0 = vpop.f32.mrf.mxu1  ;;  %v922_v61 = vld [vmem:[%s1729_s28 + $0x38] sm:$0xff] }
 0x215   : > { %v1015_v2 = vpop.f32.mrf.mxu0  ;;  %1479 = vlog2.f32 %v1099_v35  ;;  %v1101_v5 = vadd.f32 1e-06, %v1100_v0  ;;  %v924_v0 = vld [vmem:[%s1729_s28 + $0x48] sm:$0xff] }
 0x216   : > { %1481 = vlog2.f32 %v1012_v62  ;;  %v1016_v3 = vadd.f32 1e-06, %v1015_v2  ;;  %v1104_v4 = vpop.f32.mrf.mxu1 }
 0x217   : > { %v1017_v6 = vpop.f32.mrf.mxu0  ;;  %1483 = vlog2.f32 %v1101_v5  ;;  %v1105_v18 = vadd.f32 1e-06, %v1104_v4  ;;  %v925_v5 = vld [vmem:[%s1729_s28 + $0x50] sm:$0xff] }
 0x218   : > { %1485 = vlog2.f32 %v1016_v3  ;;  %v1018_v63 = vadd.f32 1e-06, %v1017_v6  ;;  %v1106_v39 = vpop.f32.mrf.mxu1 }
 0x219   : > { %v1021_v7 = vpop.f32.mrf.mxu0  ;;  %1487 = vlog2.f32 %v1105_v18  ;;  %v1107_v8 = vadd.f32 1e-06, %v1106_v39 }
 0x21a   : > { %1489 = vlog2.f32 %v1018_v63  ;;  %v1022_v58 = vadd.f32 1e-06, %v1021_v7  ;;  %v1110_v1 = vpop.f32.mrf.mxu1 }
 0x21b   : > { %v1023_v9 = vpop.f32.mrf.mxu0  ;;  %1491 = vlog2.f32 %v1107_v8  ;;  %v1111_v10 = vadd.f32 1e-06, %v1110_v1 }
 0x21c   : > { %1493 = vlog2.f32 %v1022_v58  ;;  %v1024_v11 = vadd.f32 1e-06, %v1023_v9  ;;  %v1112_v54 = vpop.f32.mrf.mxu1  ;;  %v927_v9 = vld [vmem:[%s1729_s28 + $0x60] sm:$0xff] }
 0x21d   : > { %v1027_v50 = vpop.f32.mrf.mxu0  ;;  %1495 = vlog2.f32 %v1111_v10  ;;  %v1113_v12 = vadd.f32 1e-06, %v1112_v54  ;;  %v926_v54 = vld [vmem:[%s1729_s28 + $0x58] sm:$0xff] }
 0x21e   : > { %1497 = vlog2.f32 %v1024_v11  ;;  %v1028_v13 = vadd.f32 1e-06, %v1027_v50  ;;  %v1116_v52 = vpop.f32.mrf.mxu1 }
 0x21f   : > { %v1029_v14 = vpop.f32.mrf.mxu0  ;;  %1499 = vlog2.f32 %v1113_v12  ;;  %v1117_v15 = vadd.f32 1e-06, %v1116_v52 }
 0x220   : > { %1501 = vlog2.f32 %v1028_v13  ;;  %v1030_v16 = vadd.f32 1e-06, %v1029_v14  ;;  %v1118_v17 = vpop.f32.mrf.mxu1  ;;  %v928_v13 = vld [vmem:[%s1729_s28 + $0x68] sm:$0xff]  ;;  %v929_v14 = vld [vmem:[%s1729_s28 + $0x70] sm:$0xff] }
 0x221   : > { %v1478_v49 = vpop.eup %1477  ;;  %1503 = vlog2.f32 %v1117_v15  ;;  %v1119_v33 = vadd.f32 1e-06, %v1118_v17 }
 0x222   : > { %v1480_v45 = vpop.eup %1479  ;;  %v1122_v19 = vmul.f32 0.6931472, %v1478_v49  ;;  %1505 = vlog2.f32 %v1030_v16 }
 0x223   : > { %v1482_v32 = vpop.eup %1481  ;;  %v1126_v22 = vmul.f32 0.6931472, %v1480_v45  ;;  %1507 = vlog2.f32 %v1119_v33 }
 0x224   : > { %v1484_v24 = vpop.eup %1483  ;;  %v1124_v60 = vmul.f32 0.6931472, %v1482_v32  ;;  %v1153_v55 = vmul.f32 %v1122_v19, %v915_v44 }
 0x225   : > { %v1486_v25 = vpop.eup %1485  ;;  %v1128_v26 = vmul.f32 0.6931472, %v1484_v24  ;;  %v1155_v46 = vmul.f32 %v1126_v22, %v917_v23  ;;  %v930_v22 = vld [vmem:[%s1729_s28 + $0x78] sm:$0xff] }
 0x226   : > { %v1488_v27 = vpop.eup %1487  ;;  %v1154_v28 = vmul.f32 %v1124_v60, %v916_v20  ;;  %v1130_v30 = vmul.f32 0.6931472, %v1486_v25 }
 0x227   : > { %v1490_v36 = vpop.eup %1489  ;;  %v1134_v42 = vmul.f32 0.6931472, %v1488_v27  ;;  %v1156_v51 = vmul.f32 %v1128_v26, %v918_v31  ;;  %v1169_v27 = vld [vmem:[#allocation2] sm:$0xff] }
 0x228   : > { %v1492_v48 = vpop.eup %1491  ;;  %v1132_v47 = vmul.f32 0.6931472, %v1490_v36  ;;  %v1173_v53 = vadd.f32 %v1154_v28, %v1153_v55  ;;  %v1157_v57 = vmul.f32 %v1130_v30, %v919_v29  ;;  %v1170_v29 = vld [vmem:[#allocation2 + $0x8] sm:$0xff] }
 0x229   : > { %v1494_v56 = vpop.eup %1493  ;;  %v1136_v37 = vmul.f32 0.6931472, %v1492_v48  ;;  %v1159_v35 = vmul.f32 %v1134_v42, %v921_v40  ;;  %v1172_v42 = vld [vmem:[#allocation2 + $0x18] sm:$0xff] }
 0x22a   : > { %v1496_v34 = vpop.eup %1495  ;;  %v1158_v43 = vmul.f32 %v1132_v47, %v920_v38  ;;  %v1138_v21 = vmul.f32 0.6931472, %v1494_v56  ;;  %v1174_v41 = vadd.f32 %v1173_v53, %v1155_v46  ;;  %v1171_v46 = vld [vmem:[#allocation2 + $0x10] sm:$0xff] }
 0x22b   : > { %v1498_v62 = vpop.eup %1497  ;;  %v1142_v2 = vmul.f32 0.6931472, %v1496_v34  ;;  %v1160_v8 = vmul.f32 %v1136_v37, %v922_v61 }
 0x22c   : > { %v1500_v3 = vpop.eup %1499  ;;  %v1140_v4 = vmul.f32 0.6931472, %v1498_v62  ;;  %v1175_v6 = vadd.f32 %v1174_v41, %v1156_v51  ;;  %v1178_v18 = vadd.f32 %v1158_v43, %v1157_v57  ;;  %v1161_v39 = vmul.f32 %v1138_v21, %v923_v59 }
 0x22d   : > { %v1502_v63 = vpop.eup %1501  ;;  %v1144_v7 = vmul.f32 0.6931472, %v1500_v3  ;;  %v1163_v50 = vmul.f32 %v1142_v2, %v925_v5 }
 0x22e   : > { %v1504_v58 = vpop.eup %1503  ;;  %v1162_v1 = vmul.f32 %v1140_v4, %v924_v0  ;;  %v1146_v10 = vmul.f32 0.6931472, %v1502_v63  ;;  %1176 = vadd.xlane.f32.xlu0 %v1175_v6  ;;  %v1179_v11 = vadd.f32 %v1178_v18, %v1159_v35 }
 0x22f   : > { %v1506_v12 = vpop.eup %1505  ;;  %v1150_v52 = vmul.f32 0.6931472, %v1504_v58  ;;  %v1164_v45 = vmul.f32 %v1144_v7, %v926_v54 }
 0x230   : > { %v1508_v15 = vpop.eup %1507  ;;  %v1148_v16 = vmul.f32 0.6931472, %v1506_v12  ;;  %v1180_v17 = vadd.f32 %v1179_v11, %v1160_v8  ;;  %v1183_v49 = vadd.f32 %v1162_v1, %v1161_v39  ;;  %v1165_v33 = vmul.f32 %v1146_v10, %v927_v9 }
 0x231   : > { %v1152_v32 = vmul.f32 0.6931472, %v1508_v15  ;;  %v1167_v20 = vmul.f32 %v1150_v52, %v929_v14 }
 0x232   : > { %v1166_v19 = vmul.f32 %v1148_v16, %v928_v13  ;;  %1181 = vadd.xlane.f32.xlu1 %v1180_v17  ;;  %v1184_v44 = vadd.f32 %v1183_v49, %v1163_v50 }
 0x233   : > { %v1168_v60 = vmul.f32 %v1152_v32, %v930_v22 }
 0x234   : > { %v1185_v23 = vadd.f32 %v1184_v44, %v1164_v45  ;;  %v1188_v24 = vadd.f32 %v1166_v19, %v1165_v33 }
 0x236   : > { %1186 = vadd.xlane.f32.xlu0 %v1185_v23  ;;  %v1189_v25 = vadd.f32 %v1188_v24, %v1167_v20 }
 0x238   : > { %v1190_v26 = vadd.f32 %v1189_v25, %v1168_v60 }
 0x23a   : > { %1191 = vadd.xlane.f32.xlu0 %v1190_v26 }
 0x2b7   : > { %v1177_v55 = vpop.xlane.xlu0 %1176 }
 0x2b8   : > { %v1193_v28 = vadd.f32 %v1177_v55, %v1169_v27 }
 0x2ba   : > { %1198 = vst.msk [vmem:[#allocation2] sm:$0xff] %vm1197_vm6, %v1193_v28 }
 0x2bb   : > { %v1182_v30 = vpop.xlane.xlu1 %1181 }
 0x2bc   : > { %v1194_v31 = vadd.f32 %v1182_v30, %v1170_v29 }
 0x2be   : > { %1199 = vst.msk [vmem:[#allocation2 + $0x8] sm:$0xff] %vm1197_vm6, %v1194_v31 }
 0x2bf   : > { %v1187_v36 = vpop.xlane.xlu0 %1186 }
 0x2c0   : > { %v1195_v38 = vadd.f32 %v1187_v36, %v1171_v46 }
 0x2c2   : > { %1200 = vst.msk [vmem:[#allocation2 + $0x10] sm:$0xff] %vm1197_vm6, %v1195_v38  ;;  %1205 = sbr.rel (%p1361_p10) target bundleno = 721 (0x2d1), region = 94 }
 0x2c3   : > { %v1192_v40 = vpop.xlane.xlu0 %1191 }
 0x2c4   : > { %v1196_v48 = vadd.f32 %v1192_v40, %v1172_v42 }
 0x2c6   : > { %1201 = vst.msk [vmem:[#allocation2 + $0x18] sm:$0xff] %vm1197_vm6, %v1196_v48 }
 0x2c7   : > { %v1206_v47 = vld [vmem:[#allocation2] sm:$0xff]  ;;  %v1207_v53 = vld [vmem:[#allocation2 + $0x8] sm:$0xff] }
 0x2c8   : > { %v1210_v57 = vsub.f32 0.0, %v1206_v47  ;;  %v1211_v37 = vsub.f32 0.0, %v1207_v53 }
 0x2c9   : > { %v1208_v56 = vld [vmem:[#allocation2 + $0x10] sm:$0xff] }
 0x2ca   : > { %v1212_v51 = vsub.f32 0.0, %v1208_v56  ;;  %1214 = vst.msk [vmem:[%s2108_s5] sm:$0xff] %vm1197_vm6, %v1210_v57  ;;  %1215 = vst.msk [vmem:[%s2108_s5 + $0x8] sm:$0xff] %vm1197_vm6, %v1211_v37 }
 0x2cc   : > { %1216 = vst.msk [vmem:[%s2108_s5 + $0x10] sm:$0xff] %vm1197_vm6, %v1212_v51 }
 0x2cd   : > { %v1209_v34 = vld [vmem:[#allocation2 + $0x18] sm:$0xff] }
 0x2ce   : > { %v1213_v43 = vsub.f32 0.0, %v1209_v34 }
 0x2d0   : > { %1217 = vst.msk [vmem:[%s2108_s5 + $0x18] sm:$0xff] %vm1197_vm6, %v1213_v43 }
 0x2d1 PF: > { %s15_s22 = sadd.s32 1, %s1547_s22   ;;  %s2110_s18 = smov %s1535_s19 }
 0x2d2   : > { %p12_p11 = scmp.ge.s32.totalorder %s15_s22, 5   ;;  %s2111_s19 = smov %s1621_s27 }
 0x2d3   : > { %s2112_s20 = smov %s1543_s21  ;;  %s2113_s21 = smov %s2115_s23 }
 0x2d4   :  { %14 = sbr.rel (!%p12_p11) target bundleno = 3 (0x3), region = 140 }

</bundles_post_ra>
